<compile_context>
chip_gen: v6e
topology: v6e:2x2x1
jax: 0.10.0
libtpu: 0.0.40
codegen_flags: <defaults>
</compile_context>

<pallas_src>
import jax
import jax.numpy as jnp
from jax.experimental import pallas as pl
from jax.experimental.pallas import tpu as pltpu

IN7 = 6 * 6 * 512      # 18432
H7 = 256
H8 = 64
OUT = 10
NSPLIT = 2             # split fc7 output 256 -> 2 x 128 (one half per TC on v7x)
H7T = H7 // NSPLIT     # 128


def fc7_relu_kernel(x_ref, w7_ref, b7_ref, h7_ref):
    # Full-K fc7 for one 128-wide column slice of W7: bf16 operands, f32 accum.
    acc = jnp.dot(x_ref[...], w7_ref[...], preferred_element_type=jnp.float32)
    h7_ref[...] = jnp.maximum(acc + b7_ref[...], 0.0)


def prepare_params(w7, b7, w8, b8, w9, b9):
    """One-time parameter prep: persist the big fc7 weight in bf16."""
    return (w7.astype(jnp.bfloat16), b7, w8, b8, w9, b9)


def mlp_block3_forward(x, params):
    w7_bf16, b7, w8, b8, w9, b9 = params
    B = x.shape[0]
    # Same semantics as torch .view(-1, 6*6*512) on an NCHW tensor.
    x_flat = x.reshape(B, IN7).astype(jnp.bfloat16)

    cost = pl.CostEstimate(
        flops=2 * B * IN7 * H7,
        transcendentals=0,
        bytes_accessed=(IN7 * H7 * 2             # w7 (bf16), streamed once total
                        + NSPLIT * B * IN7 * 2   # x (bf16), once per grid step
                        + H7 * 4 + B * H7 * 4),  # b7 + h7 out (f32)
    )

    h7 = pl.pallas_call(
        fc7_relu_kernel,
        out_shape=jax.ShapeDtypeStruct((B, H7), jnp.float32),
        grid_spec=pltpu.PrefetchScalarGridSpec(
            num_scalar_prefetch=0,
            grid=(NSPLIT,),
            in_specs=[
                pl.BlockSpec((B, IN7), lambda j: (0, 0)),    # x (grid-invariant)
                pl.BlockSpec((IN7, H7T), lambda j: (0, j)),  # w7 column half (bf16)
                pl.BlockSpec((1, H7T), lambda j: (0, j)),    # b7 half
            ],
            out_specs=pl.BlockSpec((B, H7T), lambda j: (0, j)),
        ),
        compiler_params=pltpu.CompilerParams(
            dimension_semantics=("parallel",),
            vmem_limit_bytes=32 * 1024 * 1024),
        cost_estimate=cost,
    )(x_flat, w7_bf16, b7)

    # fc8/fc9 epilogue: tiny, stays as plain jnp inside the same jit.
    h8 = jnp.maximum(h7 @ w8 + b8, 0.0)
    return h8 @ w9 + b9


def init_linear(key, fan_in, fan_out):
    # deterministic, PyTorch-style uniform(-1/sqrt(fan_in), 1/sqrt(fan_in))
    kw, kb = jax.random.split(key)
    bound = 1.0 / jnp.sqrt(fan_in)
    w = jax.random.uniform(kw, (fan_in, fan_out), jnp.float32, -bound, bound)
    b = jax.random.uniform(kb, (1, fan_out), jnp.float32, -bound, bound)
    return w, b


if __name__ == "__main__":
    key = jax.random.PRNGKey(0)
    kx, k7, k8, k9 = jax.random.split(key, 4)

    B = 2
    # conv-feature shaped input (NCHW), as the upstream network would produce
    x = jax.random.normal(kx, (B, 512, 6, 6), jnp.float32)

    w7, b7 = init_linear(k7, IN7, H7)
    w8, b8 = init_linear(k8, H7, H8)
    w9, b9 = init_linear(k9, H8, OUT)

    # bf16 weight cached once, outside the per-call path.
    params = prepare_params(w7, b7, w8, b8, w9, b9)

    fwd = jax.jit(mlp_block3_forward)
    out = jax.block_until_ready(fwd(x, params))
    assert out.shape == (B, OUT)

    x_flat = x.reshape(B, IN7)

    # Reference 1: same numerics as the kernel path (bf16 fc7 operands,
    # f32 accumulate, f32 fc8/fc9).
    h7_bf = jnp.maximum(
        jnp.dot(x_flat.astype(jnp.bfloat16), w7.astype(jnp.bfloat16),
                preferred_element_type=jnp.float32) + b7, 0.0)
    h8_bf = jnp.maximum(h7_bf @ w8 + b8, 0.0)
    ref_bf = h8_bf @ w9 + b9
    assert jnp.allclose(out, ref_bf, atol=1e-3, rtol=1e-3), \
        "mismatch vs bf16-weight reference"

    # Reference 2: original full-f32 semantics (looser tol covers the bf16
    # quantization drift of x/W7 in fc7).
    h7_f = jnp.maximum(x_flat @ w7 + b7, 0.0)
    h8_f = jnp.maximum(h7_f @ w8 + b8, 0.0)
    ref_f = h8_f @ w9 + b9
    assert jnp.allclose(out, ref_f, atol=2e-2, rtol=2e-2), \
        "mismatch vs f32 reference"

    print("KERNEL_OK")
</pallas_src>

<mosaic_0001>
module attributes {stable_mosaic.version = 11 : i64} {
  func.func @fc7_relu_kernel(%arg0: i32, %arg1: memref<2x18432xbf16, #tpu.memory_space<vmem>>, %arg2: memref<18432x128xbf16, #tpu.memory_space<vmem>>, %arg3: memref<1x128xf32, #tpu.memory_space<vmem>>, %arg4: memref<2x128xf32, #tpu.memory_space<vmem>>) attributes {dimension_semantics = [#tpu.dimension_semantics<parallel>], iteration_bounds = array<i64: 2>, scalar_prefetch = 0 : i64, scratch_operands = 0 : i64, tpu.core_type = #tpu.core_type<tc>, window_params = [{pipeline_mode = #tpu.pipeline_mode<synchronous>, transform_indices = @transform_0, window_bounds = array<i64: 2, 18432>}, {transform_indices = @transform_1, window_bounds = array<i64: 18432, 128>}, {transform_indices = @transform_2, window_bounds = array<i64: 1, 128>}, {transform_indices = @transform_3, window_bounds = array<i64: 2, 128>}]} {
    %c0 = arith.constant 0 : index
    %c0_0 = arith.constant 0 : index
    %0 = vector.load %arg1[%c0, %c0_0] : memref<2x18432xbf16, #tpu.memory_space<vmem>>, vector<2x18432xbf16>
    %c0_1 = arith.constant 0 : index
    %c0_2 = arith.constant 0 : index
    %1 = vector.load %arg2[%c0_1, %c0_2] : memref<18432x128xbf16, #tpu.memory_space<vmem>>, vector<18432x128xbf16>
    %cst = arith.constant dense<0.000000e+00> : vector<2x128xf32>
    %2 = tpu.matmul %0, %1, %cst {dimension_numbers = #tpu.dot_dimension_numbers<[1], [0], [0], [1], [0, 0, 1, 1], [], []>} : vector<2x18432xbf16>, vector<18432x128xbf16>, vector<2x128xf32> -> vector<2x128xf32>
    %c0_3 = arith.constant 0 : index
    %c0_4 = arith.constant 0 : index
    %3 = vector.load %arg3[%c0_3, %c0_4] : memref<1x128xf32, #tpu.memory_space<vmem>>, vector<1x128xf32>
    %4 = vector.broadcast %3 : vector<1x128xf32> to vector<2x128xf32>
    %5 = arith.addf %2, %4 : vector<2x128xf32>
    %cst_5 = arith.constant 0.000000e+00 : f32
    %6 = vector.broadcast %cst_5 : f32 to vector<2x128xf32>
    %7 = arith.maximumf %5, %6 : vector<2x128xf32>
    %c0_6 = arith.constant 0 : index
    %c0_7 = arith.constant 0 : index
    %8 = vector.load %arg4[%c0_6, %c0_7] : memref<2x128xf32, #tpu.memory_space<vmem>>, vector<2x128xf32>
    tpu.vector_store %arg4[%c0_6, %c0_7], %7 {strides = array<i32>} : memref<2x128xf32, #tpu.memory_space<vmem>>, vector<2x128xf32>,
    return
  }
  func.func @transform_0(%arg0: i32) -> (i32, i32) {
    %c0_i32 = arith.constant 0 : i32
    %c0_i32_0 = arith.constant 0 : i32
    %c0_i32_1 = arith.constant 0 : i32
    return %c0_i32, %c0_i32_0 : i32, i32
  }
  func.func @transform_1(%arg0: i32) -> (i32, i32) {
    %c0_i32 = arith.constant 0 : i32
    %c0_i32_0 = arith.constant 0 : i32
    return %c0_i32, %arg0 : i32, i32
  }
  func.func @transform_2(%arg0: i32) -> (i32, i32) {
    %c0_i32 = arith.constant 0 : i32
    %c0_i32_0 = arith.constant 0 : i32
    return %c0_i32, %arg0 : i32, i32
  }
  func.func @transform_3(%arg0: i32) -> (i32, i32) {
    %c0_i32 = arith.constant 0 : i32
    %c0_i32_0 = arith.constant 0 : i32
    return %c0_i32, %arg0 : i32, i32
  }
}

</mosaic_0001>

<bundles_post_ra>
// kernel: mlp_block3_forward.1
= control target key start
LH: loop header
LB: loop body
LE: loop exit
PB: predicated region body
PF: predicated region fallthrough
CT: control target
= control target key end

     0   :  { %8 = vsyncpa [#allocation3], 0  ;;  %s19207_s0 = inlined_call_operand.vmem [shape: bf16[2,18432], index: 0, kind: input, shape index: {}]   ;;  %s19208_s1 = inlined_call_operand.hbm [shape: bf16[18432,256], index: 1, kind: input, shape index: {}]   ;;  %s19209_s2 = inlined_call_operand.hbm [shape: f32[1,256], index: 2, kind: input, shape index: {}]   ;;  %s19210_s3 = inlined_call_operand.vmem [shape: f32[2,256], index: 3, kind: output, shape index: {}]  }
   0x1   :  { %10 = vsyncpa [#allocation3 + $0x1], 0 }
   0x2   :  { %11 = vsyncpa [#allocation5], 0 }
   0x3   :  { %13 = vsyncpa [#allocation5 + $0x1], 0  ;;  %s17563_s12 = smov 0   ;;  %s17565_s13 = smov 0  }
   0x4   :  { %s17567_s14 = smov 0   ;;  %s17569_s15 = smov 0  }
   0x5 LB: > { %s17582_s16 = sadd.s32 4294967295, %s17535_s15   ;;  %s17585_s17 = sadd.s32 1, %s17535_s15   ;;  %s17535_s15 = sphi %s17569_s15, %s19220_s15   ;;  %s17531_s14 = sphi %s17567_s14, %s19219_s14   ;;  %s17527_s13 = sphi %s17565_s13, %s19218_s13   ;;  %s17523_s12 = sphi %s17563_s12, %s19217_s12  }
   0x6   : > { %s44_s18 = ssub.s32 %s17535_s15, %s17585_s17  ;;  %s47_s19 = sadd.s32 1, %s17531_s14 }
   0x7   : > { %p45_p0 = scmp.eq.s32.totalorder %s44_s18, 0  ;;  %p54_p1 = scmp.ne.s32.totalorder %s17531_s14, %s17527_s13 }
   0x8   : > { %p55_p2 = scmp.eq.s32.totalorder %s17535_s15, 0  ;;  %p60_p3 = scmp.ne.s32.totalorder %s17527_s13, %s17523_s12 }
   0x9   : > { %s17595_s20 = scalar_select %p45_p0, %s17531_s14, %s47_s19  }
   0xa   : > { %p56_p4 = por %p55_p2, %p54_p1  ;;  %p61_p5 = scmp.eq.s32.totalorder %s17582_s16, 0 }
   0xb   : > { %p16234_p6 = scmp.lt.s32.totalorder %s17535_s15, 2  ;;  %s17604_s22 = sand.u32 1, %s17531_s14  }
   0xc   : > { %p17599_p7 = por %p61_p5, %p60_p3  ;;  %s16221_s23 = smul.u32 9216, %s17604_s22 }
   0xd   : > { %s13478_s24 = sshll.u32 %s17535_s15, 6  ;;  %p17608_p8 = pnand %p16234_p6, %p56_p4 }
   0xe   : > { %s19212_s21 = scalar_select %p17599_p7, 1, 0 }
   0xf   : > { %s17615_s28 = scalar_lea.hbm %s19208_s1, %s13478_s24  ;;  %s143_s29 = scalar_lea.vmem [#allocation2], %s16221_s23 }
  0x10   : > { %s149_s30 = sshll.u32 %s143_s29, 4  ;;  %s140_s4 = scalar_lea.sflag [#allocation3], %s17604_s22  ;;  %s17617_s30 = int_to_ptr.vmem [resolvable:$true] %s149_s30 }
  0x11   : > { %s17441_s5 = scalar_lea.hbm %s17615_s28, 147456  ;;  %p17443_p10 = pneg %p17608_p8 }
  0x12   : > { %p17442_p9 = scmp.ne.s32.totalorder %s17615_s28, %s17441_s5  ;;  %s17446_s8 = scalar_lea.hbm %s19208_s1, 294912 }
  0x13   : > { %p17447_p13 = scmp.lt.s32.totalorder %s17615_s28, %s19208_s1  ;;  %p17448_p0 = scmp.lt.s32.totalorder %s17446_s8, %s17441_s5 }
  0x14   : > { %p17444_p11 = pnand %p17443_p10, %p17442_p9 }
  0x15   : > { %p17449_p1 = por %p17448_p0, %p17447_p13 }
  0x16   : > { %p17445_p12 = pneg %p17444_p11 }
  0x18   : > { %p17450_p2 = pnand %p17449_p1, %p17445_p12 }
  0x1a   : > { %17453 = shalt.err (!%p17450_p2)
}
  0x1b   : > { %s17454_s11 = scalar_lea.vmem %s17617_s30, 147456  ;;  %s17537_s12 = smov [#allocation2]  }
  0x1c   : > { %p17455_p3 = scmp.ne.s32.totalorder %s17617_s30, %s17454_s11  ;;  %s17459_s18 = sshll.u32 %s17537_s12, 4  ;;  %s17460_s18 = int_to_ptr.vmem [resolvable:$false] %s17459_s18 }
  0x1d   : > { %s17461_s19 = scalar_lea.vmem %s17460_s18, 294912  ;;  %p17462_p6 = scmp.lt.s32.totalorder %s17617_s30, %s17460_s18 }
  0x1e   : > { %p17457_p4 = pnand %p17455_p3, %p17443_p10  ;;  %p17463_p9 = scmp.lt.s32.totalorder %s17461_s19, %s17454_s11 }
  0x20   : > { %p17458_p5 = pneg %p17457_p4  ;;  %p17464_p11 = por %p17463_p9, %p17462_p6 }
  0x22   : > { %p17465_p13 = pnand %p17464_p11, %p17458_p5 }
  0x24   : > { %17468 = shalt.err (!%p17465_p13)
}
  0x25   : > { %s17538_s23 = smov 128   ;;  %s17539_s24 = smov 64  }
  0x26   : > { %s17540_s26 = smov 4   ;;  %p13480_p12 = scmp.ge.s32.totalorder %s17535_s15, 1 }
  0x27   : > { %16230 = dma.hbm_to_vmem [thread:$0]  (!%p17608_p8), %s17615_s28, 147456, %s17617_s30, %s140_s4, %s17538_s23, %s17539_s24, %s17540_s26  }
  0x28   : > { %p174_p0 = scmp.lt.s32.totalorder %s17535_s15, 3  ;;  %s13479_s29 = sshll.u32 %s17535_s15, 4 }
  0x29   : > { %s17656_s7 = scalar_lea.hbm %s19209_s2, %s13479_s29  ;;  %s162_s8 = scalar_lea.vmem [#allocation4], %s17604_s22 }
  0x2a   : > { %p17648_p1 = pnand %p13480_p12, %p174_p0  ;;  %s169_s9 = sshll.u32 %s162_s8, 4  ;;  %s170_s9 = int_to_ptr.vmem [resolvable:$true] %s169_s9 }
  0x2b   : > { %s160_s10 = scalar_lea.sflag [#allocation5], %s17604_s22  ;;  %s17469_s28 = scalar_lea.hbm %s17656_s7, 16 }
  0x2c   : > { %s19214_s27 = scalar_select %p17648_p1, 1, 0 }
  0x2d   : > { %p17470_p2 = scmp.ne.s32.totalorder %s17656_s7, %s17469_s28  ;;  %s17474_s4 = scalar_lea.hbm %s19209_s2, 32 }
  0x2e   : > { %p17475_p5 = scmp.lt.s32.totalorder %s17656_s7, %s19209_s2  ;;  %p17476_p6 = scmp.lt.s32.totalorder %s17474_s4, %s17469_s28 }
  0x2f   : > { %p17472_p3 = pnand %p17470_p2, %p17443_p10 }
  0x30   : > { %p17477_p9 = por %p17476_p6, %p17475_p5 }
  0x31   : > { %p17473_p4 = pneg %p17472_p3 }
  0x33   : > { %p17478_p11 = pnand %p17477_p9, %p17473_p4 }
  0x35   : > { %17481 = shalt.err (!%p17478_p11)
}
  0x36   : > { %s17482_s18 = scalar_lea.vmem %s170_s9, 16  ;;  %s17541_s22 = smov [#allocation4]  }
  0x37   : > { %p17483_p13 = scmp.ne.s32.totalorder %s170_s9, %s17482_s18  ;;  %s17487_s19 = sshll.u32 %s17541_s22, 4  ;;  %s17488_s19 = int_to_ptr.vmem [resolvable:$false] %s17487_s19 }
  0x38   : > { %s17489_s23 = scalar_lea.vmem %s17488_s19, 32  ;;  %p17490_p2 = scmp.lt.s32.totalorder %s170_s9, %s17488_s19 }
  0x39   : > { %p17485_p12 = pnand %p17483_p13, %p17443_p10  ;;  %p17491_p3 = scmp.lt.s32.totalorder %s17489_s23, %s17482_s18 }
  0x3b   : > { %p17486_p0 = pneg %p17485_p12  ;;  %p17492_p7 = por %p17491_p3, %p17490_p2 }
  0x3d   : > { %p17493_p1 = pnand %p17492_p7, %p17486_p0 }
  0x3f   : > { %17496 = shalt.err (!%p17493_p1)
}
  0x40   : > { %16233 = dma.hbm_to_vmem [thread:$0]  (!%p17608_p8), %s17656_s7, 16, %s170_s9, %s160_s10  }
  0x41   : > { %p19215_p4 = scmp.ne.s32.totalorder %s19214_s27, 0 }
  0x42   : > { %s17681_s24 = sand.u32 (!%p19215_p4), 1, %s17527_s13   ;;  %p19216_p10 = scmp.ne.s32.totalorder (!%p19215_p4), %s19212_s21, 0 }
  0x43   : > { %178 = sbr.rel (%p19215_p4) target bundleno = 1433 (0x599), region = 32  ;;  %s181_s29 = scalar_lea.sflag (!%p19215_p4), [#allocation3], %s17681_s24 }
  0x44   : > { %s16222_s26 = smul.u32 (!%p19215_p4), 9216, %s17681_s24 }
  0x46   : > { %s17685_s5 = scalar_lea.vmem (!%p19215_p4), [#allocation2], %s16222_s26 }
  0x48   : > { %17514 = dma.done.wait (%p19216_p10), %s181_s29, 147456  }
  0x49   : > { %17516 = vsyncadd (%p19216_p10), %s181_s29, 4294819840  ;;  %s190_s25 = scalar_lea.sflag [#allocation5], %s17681_s24  ;;  %s192_s27 = scalar_lea.vmem [#allocation4], %s17681_s24 }
  0x4a   : > { %17518 = dma.done.wait (%p19216_p10), %s190_s25, 16  }
  0x4b   : > { %17520 = vsyncadd (%p19216_p10), %s190_s25, 4294967280  ;;  %v16271_v0 = vld [vmem:[%s17685_s5 + $0x78] sm:$0xff]   ;;  %v16275_v4 = vld [vmem:[%s17685_s5 + $0x70] sm:$0xff]   ;;  %v17542_v22 = vmov 1966171168   ;;  %v2574_v24 = vlaneseq  ;;  %p218_p7 = scmp.lt.s32.totalorder %s17582_s16, 1 }
  0x4c   : > { %v16272_v1 = vld [vmem:[%s17685_s5 + $0xf8] sm:$0xff]   ;;  %14637 = vmatprep.subr.bf16.mxu0 %v16271_v0  ;;  %v16276_v5 = vld [vmem:[%s17685_s5 + $0xf0] sm:$0xff]   ;;  %v16279_v8 = vld [vmem:[%s17685_s5 + $0x68] sm:$0xff]   ;;  %v2572_v23 = vunpack.c.l.s4 %v17542_v22 }
  0x4d   : > { %v16273_v2 = vld [vmem:[%s17685_s5 + $0x38] sm:$0xff]   ;;  %14659 = vmatprep.subr.bf16.mxu1 %v16272_v1  ;;  %v16277_v6 = vld [vmem:[%s17685_s5 + $0x30] sm:$0xff]   ;;  %v16280_v9 = vld [vmem:[%s17685_s5 + $0xe8] sm:$0xff]   ;;  %v2575_v30 = vshrl.u32 %v2574_v24, 7  ;;  %s19222_s16 = smov (!%p218_p7, %s17582_s16), 1 }
  0x4e   : > { %v16274_v3 = vld [vmem:[%s17685_s5 + $0xb8] sm:$0xff]   ;;  %14638 = vmatpush3.bf16.msra.mxu0 %v16273_v2  ;;  %v16278_v7 = vld [vmem:[%s17685_s5 + $0xb0] sm:$0xff]   ;;  %v16281_v10 = vld [vmem:[%s17685_s5 + $0x28] sm:$0xff]   ;;  %v2573_v29 = vunpack.c.0.s8 %v2572_v23 }
  0x4f   : > { %14660 = vmatpush3.bf16.msra.mxu1 %v16274_v3  ;;  %14639 = vmatprep.subr.bf16.mxu0 %v16275_v4  ;;  %v16282_v11 = vld [vmem:[%s17685_s5 + $0xa8] sm:$0xff]   ;;  %v16283_v12 = vld [vmem:[%s17685_s5 + $0x60] sm:$0xff]   ;;  %v16287_v16 = vld [vmem:[%s17685_s5 + $0x58] sm:$0xff]  }
  0x50   : > { %14661 = vmatprep.subr.bf16.mxu1 %v16276_v5  ;;  %v16284_v13 = vld [vmem:[%s17685_s5 + $0xe0] sm:$0xff]   ;;  %v16288_v17 = vld [vmem:[%s17685_s5 + $0xd8] sm:$0xff]   ;;  %v16291_v20 = vld [vmem:[%s17685_s5 + $0x50] sm:$0xff]   ;;  %v17727_v35 = vsub.s32 %v2573_v29, %v2575_v30 }
  0x51   : > { %v16285_v14 = vld [vmem:[%s17685_s5 + $0x20] sm:$0xff]   ;;  %v16289_v18 = vld [vmem:[%s17685_s5 + $0x18] sm:$0xff]   ;;  %v16292_v21 = vld [vmem:[%s17685_s5 + $0xd0] sm:$0xff]  }
  0x52   : > { %14640 = vmatpush3.bf16.msra.mxu0 %v16277_v6  ;;  %v16286_v15 = vld [vmem:[%s17685_s5 + $0xa0] sm:$0xff]   ;;  %v16290_v19 = vld [vmem:[%s17685_s5 + $0x98] sm:$0xff]   ;;  %v16293_v25 = vld [vmem:[%s17685_s5 + $0x10] sm:$0xff]  }
  0x53   : > { %14662 = vmatpush3.bf16.msra.mxu1 %v16278_v7  ;;  %14641 = vmatprep.subr.bf16.mxu0 %v16279_v8  ;;  %v16294_v26 = vld [vmem:[%s17685_s5 + $0x90] sm:$0xff]   ;;  %v16295_v27 = vld [vmem:[%s17685_s5 + $0x48] sm:$0xff]   ;;  %v16299_v33 = vld [vmem:[%s17685_s5 + $0x40] sm:$0xff]  }
  0x54   : > { %14663 = vmatprep.subr.bf16.mxu1 %v16280_v9  ;;  %v16296_v28 = vld [vmem:[%s17685_s5 + $0xc8] sm:$0xff]   ;;  %v16300_v34 = vld [vmem:[%s17685_s5 + $0xc0] sm:$0xff]   ;;  %v16304_v41 = vld [vmem:[%s17685_s5 + $0x178] sm:$0xff]  }
  0x55   : > { %v16297_v31 = vld [vmem:[%s17685_s5 + $0x8] sm:$0xff]   ;;  %v16301_v36 = vld [vmem:[%s17685_s5] sm:$0xff]   ;;  %v16305_v42 = vld [vmem:[%s17685_s5 + $0x1f8] sm:$0xff]  }
  0x56   : > { %14642 = vmatpush3.bf16.msra.mxu0 %v16281_v10  ;;  %v16298_v32 = vld [vmem:[%s17685_s5 + $0x88] sm:$0xff]   ;;  %v16302_v37 = vld [vmem:[%s17685_s5 + $0x80] sm:$0xff]   ;;  %v16306_v46 = vld [vmem:[%s17685_s5 + $0x138] sm:$0xff]  }
  0x57   : > { %14664 = vmatpush3.bf16.msra.mxu1 %v16282_v11  ;;  %14643 = vmatprep.subr.bf16.mxu0 %v16283_v12  ;;  %v223_v38 = vld [vmem:[%s19207_s0] sm:$0xff]  ;;  %v16307_v48 = vld [vmem:[%s17685_s5 + $0x1b8] sm:$0xff]   ;;  %v16308_v51 = vld [vmem:[%s17685_s5 + $0x170] sm:$0xff]  }
  0x58   : > { %14665 = vmatprep.subr.bf16.mxu1 %v16284_v13  ;;  %v2570_v39 = vcombine.high %v223_v38, %v223_v38  ;;  %v2577_v40 = vrot.slane %v223_v38, %v17727_v35  ;;  %v16309_v53 = vld [vmem:[%s17685_s5 + $0x1f0] sm:$0xff]   ;;  %v16312_v58 = vld [vmem:[%s17685_s5 + $0x168] sm:$0xff]   ;;  %v16316_v62 = vld [vmem:[%s17685_s5 + $0x160] sm:$0xff]  }
  0x59   : > { %v16310_v55 = vld [vmem:[%s17685_s5 + $0x130] sm:$0xff]   ;;  %v16313_v59 = vld [vmem:[%s17685_s5 + $0x1e8] sm:$0xff]   ;;  %v16317_v63 = vld [vmem:[%s17685_s5 + $0x1e0] sm:$0xff]  }
  0x5a   : > { %14644 = vmatpush3.bf16.msra.mxu0 %v16285_v14  ;;  %v2585_v43 = vcombine.high %v2577_v40, %v2577_v40  ;;  %v2593_v44 = vrot.slane %v2577_v40, %v17727_v35  ;;  %v17739_v45 = vrot.slane %v2570_v39, %v17727_v35  ;;  %v16311_v56 = vld [vmem:[%s17685_s5 + $0x1b0] sm:$0xff]   ;;  %v16314_v60 = vld [vmem:[%s17685_s5 + $0x128] sm:$0xff]   ;;  %v16318_v0 = vld [vmem:[%s17685_s5 + $0x120] sm:$0xff]  }
  0x5b   : > { %14666 = vmatpush3.bf16.msra.mxu1 %v16286_v15  ;;  %14645 = vmatprep.subr.bf16.mxu0 %v16287_v16  ;;  %v16315_v61 = vld [vmem:[%s17685_s5 + $0x1a8] sm:$0xff]   ;;  %v16319_v1 = vld [vmem:[%s17685_s5 + $0x1a0] sm:$0xff]   ;;  %v16320_v2 = vld [vmem:[%s17685_s5 + $0x158] sm:$0xff]  }
  0x5c   : > { %14667 = vmatprep.subr.bf16.mxu1 %v16288_v17  ;;  %v2607_v47 = vrot.slane %v2585_v43, %v17727_v35  ;;  %v2586_v49 = vcombine.high %v17739_v45, %v17739_v45  ;;  %v2615_v50 = vcombine.high %v2593_v44, %v2593_v44  ;;  %v16321_v3 = vld [vmem:[%s17685_s5 + $0x1d8] sm:$0xff]   ;;  %v16324_v6 = vld [vmem:[%s17685_s5 + $0x150] sm:$0xff]   ;;  %v16328_v10 = vld [vmem:[%s17685_s5 + $0x148] sm:$0xff]  }
  0x5d   : > { %v16322_v4 = vld [vmem:[%s17685_s5 + $0x118] sm:$0xff]   ;;  %v16325_v7 = vld [vmem:[%s17685_s5 + $0x1d0] sm:$0xff]   ;;  %v16329_v11 = vld [vmem:[%s17685_s5 + $0x1c8] sm:$0xff]  }
  0x5e   : > { %14646 = vmatpush3.bf16.msra.mxu0 %v16289_v18  ;;  %10540 = vmatprep.mubr.bf16.mxu0 %v2607_v47  ;;  %v2617_v52 = vcombine.high %v2607_v47, %v2607_v47  ;;  %v2614_v54 = vrot.slane %v2586_v49, %v17727_v35  ;;  %v16323_v5 = vld [vmem:[%s17685_s5 + $0x198] sm:$0xff]   ;;  %v16326_v8 = vld [vmem:[%s17685_s5 + $0x110] sm:$0xff]   ;;  %v16330_v12 = vld [vmem:[%s17685_s5 + $0x108] sm:$0xff]   ;;  %v2600_v18 = vrot.slane %v17739_v45, %v17727_v35 }
  0x5f   : > { %14668 = vmatpush3.bf16.msra.mxu1 %v16290_v19  ;;  %14647 = vmatprep.subr.bf16.mxu0 %v16291_v20  ;;  %v16327_v9 = vld [vmem:[%s17685_s5 + $0x190] sm:$0xff]   ;;  %v16331_v13 = vld [vmem:[%s17685_s5 + $0x188] sm:$0xff]   ;;  %v16332_v14 = vld [vmem:[%s17685_s5 + $0x140] sm:$0xff]  }
  0x60   : > { %14669 = vmatprep.subr.bf16.mxu1 %v16292_v21  ;;  %10580 = vmatprep.mubr.bf16.mxu1 %v2617_v52  ;;  %v2618_v57 = vcombine.high %v2614_v54, %v2614_v54  ;;  %v16333_v15 = vld [vmem:[%s17685_s5 + $0x1c0] sm:$0xff]   ;;  %v16336_v19 = vld [vmem:[%s17685_s5 + $0x278] sm:$0xff]   ;;  %v2616_v23 = vcombine.high %v2600_v18, %v2600_v18  ;;  %v16340_v24 = vld [vmem:[%s17685_s5 + $0x270] sm:$0xff]  }
  0x61   : > { %v16334_v16 = vld [vmem:[%s17685_s5 + $0x100] sm:$0xff]   ;;  %v16337_v20 = vld [vmem:[%s17685_s5 + $0x2f8] sm:$0xff]   ;;  %v16345_v29 = vld [vmem:[%s17685_s5 + $0x2e8] sm:$0xff]  }
  0x62   : > { %14648 = vmatpush3.bf16.msra.mxu0 %v16293_v25  ;;  %v16335_v17 = vld [vmem:[%s17685_s5 + $0x180] sm:$0xff]   ;;  %v16338_v21 = vld [vmem:[%s17685_s5 + $0x238] sm:$0xff]   ;;  %v16341_v25 = vld [vmem:[%s17685_s5 + $0x2f0] sm:$0xff]  }
  0x63   : > { %14670 = vmatpush3.bf16.msra.mxu1 %v16294_v26  ;;  %14649 = vmatprep.subr.bf16.mxu0 %v16295_v27  ;;  %v16339_v22 = vld [vmem:[%s17685_s5 + $0x2b8] sm:$0xff]   ;;  %v16342_v26 = vld [vmem:[%s17685_s5 + $0x230] sm:$0xff]   ;;  %v16346_v30 = vld [vmem:[%s17685_s5 + $0x228] sm:$0xff]  }
  0x64   : > { %14671 = vmatprep.subr.bf16.mxu1 %v16296_v28  ;;  %v16343_v27 = vld [vmem:[%s17685_s5 + $0x2b0] sm:$0xff]   ;;  %v16344_v28 = vld [vmem:[%s17685_s5 + $0x268] sm:$0xff]   ;;  %v16353_v38 = vld [vmem:[%s17685_s5 + $0x2d8] sm:$0xff]  }
  0x65   : > { %v16354_v39 = vld [vmem:[%s17685_s5 + $0x218] sm:$0xff]   ;;  %v16358_v43 = vld [vmem:[%s17685_s5 + $0x210] sm:$0xff]   ;;  %v16360_v45 = vld [vmem:[%s17685_s5 + $0x248] sm:$0xff]  }
  0x66   : > { %14650 = vmatpush3.bf16.msra.mxu0 %v16297_v31  ;;  %v16347_v31 = vld [vmem:[%s17685_s5 + $0x2a8] sm:$0xff]   ;;  %v16355_v40 = vld [vmem:[%s17685_s5 + $0x298] sm:$0xff]   ;;  %v16364_v49 = vld [vmem:[%s17685_s5 + $0x240] sm:$0xff]  }
  0x67   : > { %14672 = vmatpush3.bf16.msra.mxu1 %v16298_v32  ;;  %14651 = vmatprep.subr.bf16.mxu0 %v16299_v33  ;;  %v16348_v32 = vld [vmem:[%s17685_s5 + $0x260] sm:$0xff]   ;;  %v16362_v47 = vld [vmem:[%s17685_s5 + $0x208] sm:$0xff]  }
  0x68   : > { %14673 = vmatprep.subr.bf16.mxu1 %v16300_v34  ;;  %v16349_v33 = vld [vmem:[%s17685_s5 + $0x2e0] sm:$0xff]   ;;  %v224_v52 = vld [vmem:[%s19207_s0 + $0x8] sm:$0xff] }
  0x69   : > { %v16350_v34 = vld [vmem:[%s17685_s5 + $0x220] sm:$0xff]  }
  0x6a   : > { %14652 = vmatpush3.bf16.msra.mxu0 %v16301_v36  ;;  %v16351_v36 = vld [vmem:[%s17685_s5 + $0x2a0] sm:$0xff]  }
  0x6b   : > { %14674 = vmatpush3.bf16.msra.mxu1 %v16302_v37  ;;  %14681 = vmatprep.subr.bf16.mxu0 %v16304_v41  ;;  %v16352_v37 = vld [vmem:[%s17685_s5 + $0x258] sm:$0xff]   ;;  %v16356_v41 = vld [vmem:[%s17685_s5 + $0x250] sm:$0xff]  }
  0x6c   : > { %14703 = vmatprep.subr.bf16.mxu1 %v16305_v42  ;;  %v16357_v42 = vld [vmem:[%s17685_s5 + $0x2d0] sm:$0xff]  }
  0x6d   : > { %10541 = vmatmul.mubr.bf16.vlgmr.msra.gmra.mxu0 %v2593_v44  ;;  %v16359_v44 = vld [vmem:[%s17685_s5 + $0x290] sm:$0xff]  }
  0x6e   : > { %14682 = vmatpush3.bf16.msra.mxu0 %v16306_v46  ;;  %10581 = vmatmul.mubr.bf16.vlgmr.msra.gmra.mxu1 %v2615_v50  ;;  %v16361_v46 = vld [vmem:[%s17685_s5 + $0x2c8] sm:$0xff]   ;;  %v16365_v50 = vld [vmem:[%s17685_s5 + $0x2c0] sm:$0xff]  }
  0x6f   : > { %14683 = vmatprep.subr.bf16.mxu0 %v16308_v51  ;;  %14704 = vmatpush3.bf16.msra.mxu1 %v16307_v48  ;;  %v16363_v48 = vld [vmem:[%s17685_s5 + $0x288] sm:$0xff]   ;;  %v16366_v51 = vld [vmem:[%s17685_s5 + $0x200] sm:$0xff]  }
  0x70   : > { %10620 = vmatprep.mubr.bf16.mxu0 %v2614_v54  ;;  %14705 = vmatprep.subr.bf16.mxu1 %v16309_v53  ;;  %v16367_v53 = vld [vmem:[%s17685_s5 + $0x280] sm:$0xff]   ;;  %v2626_v54 = vrot.slane %v224_v52, %v17727_v35 }
  0x71   : > { %10660 = vmatprep.mubr.bf16.mxu1 %v2618_v57 }
  0x72   : > { %14684 = vmatpush3.bf16.msra.mxu0 %v16310_v55  ;;  %v2619_v55 = vcombine.high %v224_v52, %v224_v52  ;;  %v2634_v57 = vcombine.high %v2626_v54, %v2626_v54  ;;  %v16417_v52 = vld [vmem:[%s17685_s5 + $0x458] sm:$0xff]  }
  0x73   : > { %14685 = vmatprep.subr.bf16.mxu0 %v16312_v58  ;;  %14706 = vmatpush3.bf16.msra.mxu1 %v16311_v56  ;;  %v16368_v56 = vld [vmem:[%s17685_s5 + $0x378] sm:$0xff]   ;;  %v2642_v58 = vrot.slane %v2626_v54, %v17727_v35 }
  0x74   : > { %14707 = vmatprep.subr.bf16.mxu1 %v16313_v59  ;;  %v16369_v59 = vld [vmem:[%s17685_s5 + $0x3f8] sm:$0xff]  }
  0x75   : > { %v16419_v54 = vld [vmem:[%s17685_s5 + $0x418] sm:$0xff]  }
  0x76   : > { %14686 = vmatpush3.bf16.msra.mxu0 %v16314_v60  ;;  %v17817_v60 = vrot.slane %v2619_v55, %v17727_v35  ;;  %v16420_v55 = vld [vmem:[%s17685_s5 + $0x498] sm:$0xff]  }
  0x77   : > { %14687 = vmatprep.subr.bf16.mxu0 %v16316_v62  ;;  %14708 = vmatpush3.bf16.msra.mxu1 %v16315_v61  ;;  %v16370_v61 = vld [vmem:[%s17685_s5 + $0x338] sm:$0xff]   ;;  %v2656_v62 = vrot.slane %v2634_v57, %v17727_v35  ;;  %v16422_v57 = vld [vmem:[%s17685_s5 + $0x4d0] sm:$0xff]  }
  0x78   : > { %14709 = vmatprep.subr.bf16.mxu1 %v16317_v63  ;;  %v16371_v63 = vld [vmem:[%s17685_s5 + $0x3b8] sm:$0xff]  }
  0x7a   : > { %14688 = vmatpush3.bf16.msra.mxu0 %v16318_v0  ;;  %v2635_v0 = vcombine.high %v17817_v60, %v17817_v60 }
  0x7b   : > { %14689 = vmatprep.subr.bf16.mxu0 %v16320_v2  ;;  %14710 = vmatpush3.bf16.msra.mxu1 %v16319_v1  ;;  %v2664_v1 = vcombine.high %v2642_v58, %v2642_v58  ;;  %v16372_v2 = vld [vmem:[%s17685_s5 + $0x370] sm:$0xff]  }
  0x7c   : > { %14711 = vmatprep.subr.bf16.mxu1 %v16321_v3  ;;  %v2666_v3 = vcombine.high %v2656_v62, %v2656_v62 }
  0x7e   : > { %14690 = vmatpush3.bf16.msra.mxu0 %v16322_v4  ;;  %v16373_v4 = vld [vmem:[%s17685_s5 + $0x3f0] sm:$0xff]  }
  0x7f   : > { %14691 = vmatprep.subr.bf16.mxu0 %v16324_v6  ;;  %14712 = vmatpush3.bf16.msra.mxu1 %v16323_v5  ;;  %v2663_v5 = vrot.slane %v2635_v0, %v17727_v35  ;;  %v16374_v6 = vld [vmem:[%s17685_s5 + $0x330] sm:$0xff]   ;;  %v16429_v0 = vld [vmem:[%s17685_s5 + $0x440] sm:$0xff]  }
  0x80   : > { %14713 = vmatprep.subr.bf16.mxu1 %v16325_v7  ;;  %v16375_v7 = vld [vmem:[%s17685_s5 + $0x3b0] sm:$0xff]  }
  0x82   : > { %14692 = vmatpush3.bf16.msra.mxu0 %v16326_v8  ;;  %v2667_v8 = vcombine.high %v2663_v5, %v2663_v5 }
  0x83   : > { %14693 = vmatprep.subr.bf16.mxu0 %v16328_v10  ;;  %14714 = vmatpush3.bf16.msra.mxu1 %v16327_v9  ;;  %v16376_v9 = vld [vmem:[%s17685_s5 + $0x368] sm:$0xff]  }
  0x84   : > { %14715 = vmatprep.subr.bf16.mxu1 %v16329_v11  ;;  %v16377_v10 = vld [vmem:[%s17685_s5 + $0x3e8] sm:$0xff]  }
  0x85   : > { %v16378_v11 = vld [vmem:[%s17685_s5 + $0x328] sm:$0xff]  }
  0x86   : > { %14694 = vmatpush3.bf16.msra.mxu0 %v16330_v12  ;;  %v16379_v12 = vld [vmem:[%s17685_s5 + $0x3a8] sm:$0xff]  }
  0x87   : > { %14695 = vmatprep.subr.bf16.mxu0 %v16332_v14  ;;  %14716 = vmatpush3.bf16.msra.mxu1 %v16331_v13  ;;  %v16380_v13 = vld [vmem:[%s17685_s5 + $0x360] sm:$0xff]  }
  0x88   : > { %14717 = vmatprep.subr.bf16.mxu1 %v16333_v15  ;;  %v16381_v14 = vld [vmem:[%s17685_s5 + $0x3e0] sm:$0xff]  }
  0x89   : > { %v16382_v15 = vld [vmem:[%s17685_s5 + $0x320] sm:$0xff]  }
  0x8a   : > { %14696 = vmatpush3.bf16.msra.mxu0 %v16334_v16  ;;  %v16383_v16 = vld [vmem:[%s17685_s5 + $0x3a0] sm:$0xff]  }
  0x8b   : > { %14725 = vmatprep.subr.bf16.mxu0 %v16336_v19  ;;  %14718 = vmatpush3.bf16.msra.mxu1 %v16335_v17  ;;  %v16384_v17 = vld [vmem:[%s17685_s5 + $0x358] sm:$0xff]  }
  0x8c   : > { %14747 = vmatprep.subr.bf16.mxu1 %v16337_v20  ;;  %v16386_v19 = vld [vmem:[%s17685_s5 + $0x318] sm:$0xff]  }
  0x8d   : > { %10621 = vmatmul.mubr.bf16.vlgmr.msra.gmra.mxu0 %v2600_v18  ;;  %v16385_v18 = vld [vmem:[%s17685_s5 + $0x3d8] sm:$0xff]  }
  0x8e   : > { %14726 = vmatpush3.bf16.msra.mxu0 %v16338_v21  ;;  %10661 = vmatmul.mubr.bf16.vlgmr.msra.gmra.mxu1 %v2616_v23  ;;  %v16387_v20 = vld [vmem:[%s17685_s5 + $0x398] sm:$0xff]   ;;  %v16388_v21 = vld [vmem:[%s17685_s5 + $0x350] sm:$0xff]  }
  0x8f   : > { %14727 = vmatprep.subr.bf16.mxu0 %v16340_v24  ;;  %14748 = vmatpush3.bf16.msra.mxu1 %v16339_v22  ;;  %v16389_v22 = vld [vmem:[%s17685_s5 + $0x3d0] sm:$0xff]  }
  0x90   : > { %14749 = vmatprep.subr.bf16.mxu1 %v16341_v25  ;;  %10700 = vmatprep.mubr.bf16.mxu0 %v2656_v62  ;;  %v16390_v23 = vld [vmem:[%s17685_s5 + $0x310] sm:$0xff]   ;;  %v16392_v25 = vld [vmem:[%s17685_s5 + $0x348] sm:$0xff]  }
  0x91   : > { %10740 = vmatprep.mubr.bf16.mxu1 %v2666_v3  ;;  %v16391_v24 = vld [vmem:[%s17685_s5 + $0x390] sm:$0xff]   ;;  %v16427_v62 = vld [vmem:[%s17685_s5 + $0x408] sm:$0xff]  }
  0x92   : > { %14728 = vmatpush3.bf16.msra.mxu0 %v16342_v26  ;;  %v16393_v26 = vld [vmem:[%s17685_s5 + $0x3c8] sm:$0xff]   ;;  %v225_v3 = vld [vmem:[%s19207_s0 + $0x10] sm:$0xff] }
  0x93   : > { %14729 = vmatprep.subr.bf16.mxu0 %v16344_v28  ;;  %14750 = vmatpush3.bf16.msra.mxu1 %v16343_v27  ;;  %v16394_v27 = vld [vmem:[%s17685_s5 + $0x308] sm:$0xff]  }
  0x94   : > { %14751 = vmatprep.subr.bf16.mxu1 %v16345_v29  ;;  %v16395_v28 = vld [vmem:[%s17685_s5 + $0x388] sm:$0xff]   ;;  %v16396_v29 = vld [vmem:[%s17685_s5 + $0x340] sm:$0xff]  }
  0x96   : > { %14730 = vmatpush3.bf16.msra.mxu0 %v16346_v30  ;;  %v16397_v30 = vld [vmem:[%s17685_s5 + $0x3c0] sm:$0xff]  }
  0x97   : > { %14731 = vmatprep.subr.bf16.mxu0 %v16348_v32  ;;  %14752 = vmatpush3.bf16.msra.mxu1 %v16347_v31  ;;  %v16398_v31 = vld [vmem:[%s17685_s5 + $0x300] sm:$0xff]  }
  0x98   : > { %14753 = vmatprep.subr.bf16.mxu1 %v16349_v33  ;;  %v16399_v32 = vld [vmem:[%s17685_s5 + $0x380] sm:$0xff]   ;;  %v2649_v33 = vrot.slane %v17817_v60, %v17727_v35  ;;  %v16425_v60 = vld [vmem:[%s17685_s5 + $0x448] sm:$0xff]  }
  0x9a   : > { %14732 = vmatpush3.bf16.msra.mxu0 %v16350_v34  ;;  %v16401_v34 = vld [vmem:[%s17685_s5 + $0x478] sm:$0xff]  }
  0x9b   : > { %14733 = vmatprep.subr.bf16.mxu0 %v16352_v37  ;;  %14754 = vmatpush3.bf16.msra.mxu1 %v16351_v36  ;;  %v16402_v36 = vld [vmem:[%s17685_s5 + $0x4f8] sm:$0xff]  }
  0x9c   : > { %14755 = vmatprep.subr.bf16.mxu1 %v16353_v38  ;;  %v16403_v37 = vld [vmem:[%s17685_s5 + $0x438] sm:$0xff]  }
  0x9d   : > { %v16404_v38 = vld [vmem:[%s17685_s5 + $0x4b8] sm:$0xff]  }
  0x9e   : > { %14734 = vmatpush3.bf16.msra.mxu0 %v16354_v39  ;;  %v2665_v39 = vcombine.high %v2649_v33, %v2649_v33 }
  0x9f   : > { %14735 = vmatprep.subr.bf16.mxu0 %v16356_v41  ;;  %14756 = vmatpush3.bf16.msra.mxu1 %v16355_v40  ;;  %v16405_v40 = vld [vmem:[%s17685_s5 + $0x470] sm:$0xff]  }
  0xa0   : > { %14757 = vmatprep.subr.bf16.mxu1 %v16357_v42  ;;  %v16406_v41 = vld [vmem:[%s17685_s5 + $0x4f0] sm:$0xff]  }
  0xa1   : > { %v16407_v42 = vld [vmem:[%s17685_s5 + $0x430] sm:$0xff]  }
  0xa2   : > { %14736 = vmatpush3.bf16.msra.mxu0 %v16358_v43  ;;  %v16408_v43 = vld [vmem:[%s17685_s5 + $0x4b0] sm:$0xff]  }
  0xa3   : > { %14737 = vmatprep.subr.bf16.mxu0 %v16360_v45  ;;  %14758 = vmatpush3.bf16.msra.mxu1 %v16359_v44  ;;  %v16409_v44 = vld [vmem:[%s17685_s5 + $0x468] sm:$0xff]  }
  0xa4   : > { %14759 = vmatprep.subr.bf16.mxu1 %v16361_v46  ;;  %v16410_v45 = vld [vmem:[%s17685_s5 + $0x4e8] sm:$0xff]  }
  0xa5   : > { %v16411_v46 = vld [vmem:[%s17685_s5 + $0x428] sm:$0xff]  }
  0xa6   : > { %14738 = vmatpush3.bf16.msra.mxu0 %v16362_v47  ;;  %v16412_v47 = vld [vmem:[%s17685_s5 + $0x4a8] sm:$0xff]  }
  0xa7   : > { %14739 = vmatprep.subr.bf16.mxu0 %v16364_v49  ;;  %14760 = vmatpush3.bf16.msra.mxu1 %v16363_v48  ;;  %v16413_v48 = vld [vmem:[%s17685_s5 + $0x460] sm:$0xff]  }
  0xa8   : > { %14761 = vmatprep.subr.bf16.mxu1 %v16365_v50  ;;  %v16414_v49 = vld [vmem:[%s17685_s5 + $0x4e0] sm:$0xff]  }
  0xa9   : > { %v16415_v50 = vld [vmem:[%s17685_s5 + $0x420] sm:$0xff]  }
  0xaa   : > { %14740 = vmatpush3.bf16.msra.mxu0 %v16366_v51  ;;  %v16416_v51 = vld [vmem:[%s17685_s5 + $0x4a0] sm:$0xff]  }
  0xab   : > { %14769 = vmatprep.subr.bf16.mxu0 %v16368_v56  ;;  %14762 = vmatpush3.bf16.msra.mxu1 %v16367_v53  ;;  %v16418_v53 = vld [vmem:[%s17685_s5 + $0x4d8] sm:$0xff]   ;;  %v16421_v56 = vld [vmem:[%s17685_s5 + $0x450] sm:$0xff]  }
  0xac   : > { %14791 = vmatprep.subr.bf16.mxu1 %v16369_v59  ;;  %v16424_v59 = vld [vmem:[%s17685_s5 + $0x490] sm:$0xff]  }
  0xad   : > { %10701 = vmatmul.mubr.bf16.vlgmr.msra.gmra.mxu0 %v2642_v58  ;;  %v16423_v58 = vld [vmem:[%s17685_s5 + $0x410] sm:$0xff]  }
  0xae   : > { %14770 = vmatpush3.bf16.msra.mxu0 %v16370_v61  ;;  %10741 = vmatmul.mubr.bf16.vlgmr.msra.gmra.mxu1 %v2664_v1  ;;  %v16426_v61 = vld [vmem:[%s17685_s5 + $0x4c8] sm:$0xff]   ;;  %v16430_v1 = vld [vmem:[%s17685_s5 + $0x4c0] sm:$0xff]  }
  0xaf   : > { %14771 = vmatprep.subr.bf16.mxu0 %v16372_v2  ;;  %14792 = vmatpush3.bf16.msra.mxu1 %v16371_v63  ;;  %v16428_v63 = vld [vmem:[%s17685_s5 + $0x488] sm:$0xff]   ;;  %v16431_v2 = vld [vmem:[%s17685_s5 + $0x400] sm:$0xff]  }
  0xb0   : > { %10780 = vmatprep.mubr.bf16.mxu0 %v2663_v5  ;;  %14793 = vmatprep.subr.bf16.mxu1 %v16373_v4  ;;  %v16432_v4 = vld [vmem:[%s17685_s5 + $0x480] sm:$0xff]   ;;  %v2675_v5 = vrot.slane %v225_v3, %v17727_v35 }
  0xb1   : > { %10820 = vmatprep.mubr.bf16.mxu1 %v2667_v8 }
  0xb2   : > { %14772 = vmatpush3.bf16.msra.mxu0 %v16374_v6  ;;  %v2668_v6 = vcombine.high %v225_v3, %v225_v3  ;;  %v2683_v8 = vcombine.high %v2675_v5, %v2675_v5  ;;  %v16482_v3 = vld [vmem:[%s17685_s5 + $0x658] sm:$0xff]  }
  0xb3   : > { %14773 = vmatprep.subr.bf16.mxu0 %v16376_v9  ;;  %14794 = vmatpush3.bf16.msra.mxu1 %v16375_v7  ;;  %v16433_v7 = vld [vmem:[%s17685_s5 + $0x578] sm:$0xff]   ;;  %v2691_v9 = vrot.slane %v2675_v5, %v17727_v35 }
  0xb4   : > { %14795 = vmatprep.subr.bf16.mxu1 %v16377_v10  ;;  %v16434_v10 = vld [vmem:[%s17685_s5 + $0x5f8] sm:$0xff]  }
  0xb5   : > { %v16484_v5 = vld [vmem:[%s17685_s5 + $0x618] sm:$0xff]  }
  0xb6   : > { %14774 = vmatpush3.bf16.msra.mxu0 %v16378_v11  ;;  %v17895_v11 = vrot.slane %v2668_v6, %v17727_v35  ;;  %v16485_v6 = vld [vmem:[%s17685_s5 + $0x698] sm:$0xff]  }
  0xb7   : > { %14775 = vmatprep.subr.bf16.mxu0 %v16380_v13  ;;  %14796 = vmatpush3.bf16.msra.mxu1 %v16379_v12  ;;  %v16435_v12 = vld [vmem:[%s17685_s5 + $0x538] sm:$0xff]   ;;  %v2705_v13 = vrot.slane %v2683_v8, %v17727_v35  ;;  %v16487_v8 = vld [vmem:[%s17685_s5 + $0x6d0] sm:$0xff]  }
  0xb8   : > { %14797 = vmatprep.subr.bf16.mxu1 %v16381_v14  ;;  %v16436_v14 = vld [vmem:[%s17685_s5 + $0x5b8] sm:$0xff]  }
  0xba   : > { %14776 = vmatpush3.bf16.msra.mxu0 %v16382_v15  ;;  %v2684_v15 = vcombine.high %v17895_v11, %v17895_v11 }
  0xbb   : > { %14777 = vmatprep.subr.bf16.mxu0 %v16384_v17  ;;  %14798 = vmatpush3.bf16.msra.mxu1 %v16383_v16  ;;  %v2713_v16 = vcombine.high %v2691_v9, %v2691_v9  ;;  %v16437_v17 = vld [vmem:[%s17685_s5 + $0x570] sm:$0xff]  }
  0xbc   : > { %14799 = vmatprep.subr.bf16.mxu1 %v16385_v18  ;;  %v2715_v18 = vcombine.high %v2705_v13, %v2705_v13 }
  0xbe   : > { %14778 = vmatpush3.bf16.msra.mxu0 %v16386_v19  ;;  %v16438_v19 = vld [vmem:[%s17685_s5 + $0x5f0] sm:$0xff]  }
  0xbf   : > { %14779 = vmatprep.subr.bf16.mxu0 %v16388_v21  ;;  %14800 = vmatpush3.bf16.msra.mxu1 %v16387_v20  ;;  %v2712_v20 = vrot.slane %v2684_v15, %v17727_v35  ;;  %v16439_v21 = vld [vmem:[%s17685_s5 + $0x530] sm:$0xff]   ;;  %v16494_v15 = vld [vmem:[%s17685_s5 + $0x640] sm:$0xff]  }
  0xc0   : > { %14801 = vmatprep.subr.bf16.mxu1 %v16389_v22  ;;  %v16440_v22 = vld [vmem:[%s17685_s5 + $0x5b0] sm:$0xff]  }
  0xc2   : > { %14780 = vmatpush3.bf16.msra.mxu0 %v16390_v23  ;;  %v2716_v23 = vcombine.high %v2712_v20, %v2712_v20 }
  0xc3   : > { %14781 = vmatprep.subr.bf16.mxu0 %v16392_v25  ;;  %14802 = vmatpush3.bf16.msra.mxu1 %v16391_v24  ;;  %v16441_v24 = vld [vmem:[%s17685_s5 + $0x568] sm:$0xff]  }
  0xc4   : > { %14803 = vmatprep.subr.bf16.mxu1 %v16393_v26  ;;  %v16442_v25 = vld [vmem:[%s17685_s5 + $0x5e8] sm:$0xff]  }
  0xc5   : > { %v16443_v26 = vld [vmem:[%s17685_s5 + $0x528] sm:$0xff]  }
  0xc6   : > { %14782 = vmatpush3.bf16.msra.mxu0 %v16394_v27  ;;  %v16444_v27 = vld [vmem:[%s17685_s5 + $0x5a8] sm:$0xff]  }
  0xc7   : > { %14783 = vmatprep.subr.bf16.mxu0 %v16396_v29  ;;  %14804 = vmatpush3.bf16.msra.mxu1 %v16395_v28  ;;  %v16445_v28 = vld [vmem:[%s17685_s5 + $0x560] sm:$0xff]  }
  0xc8   : > { %14805 = vmatprep.subr.bf16.mxu1 %v16397_v30  ;;  %v16446_v29 = vld [vmem:[%s17685_s5 + $0x5e0] sm:$0xff]  }
  0xc9   : > { %v16447_v30 = vld [vmem:[%s17685_s5 + $0x520] sm:$0xff]  }
  0xca   : > { %14784 = vmatpush3.bf16.msra.mxu0 %v16398_v31  ;;  %v16448_v31 = vld [vmem:[%s17685_s5 + $0x5a0] sm:$0xff]  }
  0xcb   : > { %14813 = vmatprep.subr.bf16.mxu0 %v16401_v34  ;;  %14806 = vmatpush3.bf16.msra.mxu1 %v16399_v32  ;;  %v16449_v32 = vld [vmem:[%s17685_s5 + $0x558] sm:$0xff]  }
  0xcc   : > { %14835 = vmatprep.subr.bf16.mxu1 %v16402_v36  ;;  %v16451_v34 = vld [vmem:[%s17685_s5 + $0x518] sm:$0xff]  }
  0xcd   : > { %10781 = vmatmul.mubr.bf16.vlgmr.msra.gmra.mxu0 %v2649_v33  ;;  %v16450_v33 = vld [vmem:[%s17685_s5 + $0x5d8] sm:$0xff]  }
  0xce   : > { %14814 = vmatpush3.bf16.msra.mxu0 %v16403_v37  ;;  %10821 = vmatmul.mubr.bf16.vlgmr.msra.gmra.mxu1 %v2665_v39  ;;  %v16452_v36 = vld [vmem:[%s17685_s5 + $0x598] sm:$0xff]   ;;  %v16453_v37 = vld [vmem:[%s17685_s5 + $0x550] sm:$0xff]  }
  0xcf   : > { %14815 = vmatprep.subr.bf16.mxu0 %v16405_v40  ;;  %14836 = vmatpush3.bf16.msra.mxu1 %v16404_v38  ;;  %v16454_v38 = vld [vmem:[%s17685_s5 + $0x5d0] sm:$0xff]  }
  0xd0   : > { %14837 = vmatprep.subr.bf16.mxu1 %v16406_v41  ;;  %10860 = vmatprep.mubr.bf16.mxu0 %v2705_v13  ;;  %v16455_v39 = vld [vmem:[%s17685_s5 + $0x510] sm:$0xff]   ;;  %v16457_v41 = vld [vmem:[%s17685_s5 + $0x548] sm:$0xff]  }
  0xd1   : > { %10900 = vmatprep.mubr.bf16.mxu1 %v2715_v18  ;;  %v16456_v40 = vld [vmem:[%s17685_s5 + $0x590] sm:$0xff]   ;;  %v16492_v13 = vld [vmem:[%s17685_s5 + $0x608] sm:$0xff]   ;;  %v226_v18 = vld [vmem:[%s19207_s0 + $0x18] sm:$0xff] }
  0xd2   : > { %14816 = vmatpush3.bf16.msra.mxu0 %v16407_v42  ;;  %v16458_v42 = vld [vmem:[%s17685_s5 + $0x5c8] sm:$0xff]  }
  0xd3   : > { %14817 = vmatprep.subr.bf16.mxu0 %v16409_v44  ;;  %14838 = vmatpush3.bf16.msra.mxu1 %v16408_v43  ;;  %v16459_v43 = vld [vmem:[%s17685_s5 + $0x508] sm:$0xff]  }
  0xd4   : > { %14839 = vmatprep.subr.bf16.mxu1 %v16410_v45  ;;  %v16460_v44 = vld [vmem:[%s17685_s5 + $0x588] sm:$0xff]   ;;  %v16461_v45 = vld [vmem:[%s17685_s5 + $0x540] sm:$0xff]  }
  0xd6   : > { %14818 = vmatpush3.bf16.msra.mxu0 %v16411_v46  ;;  %v16462_v46 = vld [vmem:[%s17685_s5 + $0x5c0] sm:$0xff]  }
  0xd7   : > { %14819 = vmatprep.subr.bf16.mxu0 %v16413_v48  ;;  %14840 = vmatpush3.bf16.msra.mxu1 %v16412_v47  ;;  %v16463_v47 = vld [vmem:[%s17685_s5 + $0x500] sm:$0xff]  }
  0xd8   : > { %14841 = vmatprep.subr.bf16.mxu1 %v16414_v49  ;;  %v16464_v48 = vld [vmem:[%s17685_s5 + $0x580] sm:$0xff]   ;;  %v2698_v49 = vrot.slane %v17895_v11, %v17727_v35  ;;  %v16490_v11 = vld [vmem:[%s17685_s5 + $0x648] sm:$0xff]  }
  0xda   : > { %14820 = vmatpush3.bf16.msra.mxu0 %v16415_v50  ;;  %v16466_v50 = vld [vmem:[%s17685_s5 + $0x678] sm:$0xff]  }
  0xdb   : > { %14821 = vmatprep.subr.bf16.mxu0 %v16417_v52  ;;  %14842 = vmatpush3.bf16.msra.mxu1 %v16416_v51  ;;  %v16467_v51 = vld [vmem:[%s17685_s5 + $0x6f8] sm:$0xff]  }
  0xdc   : > { %14843 = vmatprep.subr.bf16.mxu1 %v16418_v53  ;;  %v16468_v52 = vld [vmem:[%s17685_s5 + $0x638] sm:$0xff]  }
  0xdd   : > { %v16469_v53 = vld [vmem:[%s17685_s5 + $0x6b8] sm:$0xff]  }
  0xde   : > { %14822 = vmatpush3.bf16.msra.mxu0 %v16419_v54  ;;  %v2714_v54 = vcombine.high %v2698_v49, %v2698_v49 }
  0xdf   : > { %14823 = vmatprep.subr.bf16.mxu0 %v16421_v56  ;;  %14844 = vmatpush3.bf16.msra.mxu1 %v16420_v55  ;;  %v16470_v55 = vld [vmem:[%s17685_s5 + $0x670] sm:$0xff]  }
  0xe0   : > { %14845 = vmatprep.subr.bf16.mxu1 %v16422_v57  ;;  %v16471_v56 = vld [vmem:[%s17685_s5 + $0x6f0] sm:$0xff]  }
  0xe1   : > { %v16472_v57 = vld [vmem:[%s17685_s5 + $0x630] sm:$0xff]  }
  0xe2   : > { %14824 = vmatpush3.bf16.msra.mxu0 %v16423_v58  ;;  %v16473_v58 = vld [vmem:[%s17685_s5 + $0x6b0] sm:$0xff]  }
  0xe3   : > { %14825 = vmatprep.subr.bf16.mxu0 %v16425_v60  ;;  %14846 = vmatpush3.bf16.msra.mxu1 %v16424_v59  ;;  %v16474_v59 = vld [vmem:[%s17685_s5 + $0x668] sm:$0xff]  }
  0xe4   : > { %14847 = vmatprep.subr.bf16.mxu1 %v16426_v61  ;;  %v16475_v60 = vld [vmem:[%s17685_s5 + $0x6e8] sm:$0xff]  }
  0xe5   : > { %v16476_v61 = vld [vmem:[%s17685_s5 + $0x628] sm:$0xff]  }
  0xe6   : > { %14826 = vmatpush3.bf16.msra.mxu0 %v16427_v62  ;;  %v16477_v62 = vld [vmem:[%s17685_s5 + $0x6a8] sm:$0xff]  }
  0xe7   : > { %14827 = vmatprep.subr.bf16.mxu0 %v16429_v0  ;;  %14848 = vmatpush3.bf16.msra.mxu1 %v16428_v63  ;;  %v16478_v63 = vld [vmem:[%s17685_s5 + $0x660] sm:$0xff]  }
  0xe8   : > { %14849 = vmatprep.subr.bf16.mxu1 %v16430_v1  ;;  %v16479_v0 = vld [vmem:[%s17685_s5 + $0x6e0] sm:$0xff]  }
  0xe9   : > { %v16480_v1 = vld [vmem:[%s17685_s5 + $0x620] sm:$0xff]  }
  0xea   : > { %14828 = vmatpush3.bf16.msra.mxu0 %v16431_v2  ;;  %v16481_v2 = vld [vmem:[%s17685_s5 + $0x6a0] sm:$0xff]  }
  0xeb   : > { %14857 = vmatprep.subr.bf16.mxu0 %v16433_v7  ;;  %14850 = vmatpush3.bf16.msra.mxu1 %v16432_v4  ;;  %v16483_v4 = vld [vmem:[%s17685_s5 + $0x6d8] sm:$0xff]   ;;  %v16486_v7 = vld [vmem:[%s17685_s5 + $0x650] sm:$0xff]  }
  0xec   : > { %14879 = vmatprep.subr.bf16.mxu1 %v16434_v10  ;;  %v16489_v10 = vld [vmem:[%s17685_s5 + $0x690] sm:$0xff]  }
  0xed   : > { %10861 = vmatmul.mubr.bf16.vlgmr.msra.gmra.mxu0 %v2691_v9  ;;  %v16488_v9 = vld [vmem:[%s17685_s5 + $0x610] sm:$0xff]  }
  0xee   : > { %14858 = vmatpush3.bf16.msra.mxu0 %v16435_v12  ;;  %10901 = vmatmul.mubr.bf16.vlgmr.msra.gmra.mxu1 %v2713_v16  ;;  %v16491_v12 = vld [vmem:[%s17685_s5 + $0x6c8] sm:$0xff]   ;;  %v16495_v16 = vld [vmem:[%s17685_s5 + $0x6c0] sm:$0xff]  }
  0xef   : > { %14859 = vmatprep.subr.bf16.mxu0 %v16437_v17  ;;  %14880 = vmatpush3.bf16.msra.mxu1 %v16436_v14  ;;  %v16493_v14 = vld [vmem:[%s17685_s5 + $0x688] sm:$0xff]   ;;  %v16496_v17 = vld [vmem:[%s17685_s5 + $0x600] sm:$0xff]  }
  0xf0   : > { %10940 = vmatprep.mubr.bf16.mxu0 %v2712_v20  ;;  %14881 = vmatprep.subr.bf16.mxu1 %v16438_v19  ;;  %v2724_v19 = vrot.slane %v226_v18, %v17727_v35  ;;  %v16498_v20 = vld [vmem:[%s17685_s5 + $0x778] sm:$0xff]  }
  0xf1   : > { %10980 = vmatprep.mubr.bf16.mxu1 %v2716_v23 }
  0xf2   : > { %14860 = vmatpush3.bf16.msra.mxu0 %v16439_v21  ;;  %v2717_v21 = vcombine.high %v226_v18, %v226_v18  ;;  %v2732_v23 = vcombine.high %v2724_v19, %v2724_v19 }
  0xf3   : > { %14861 = vmatprep.subr.bf16.mxu0 %v16441_v24  ;;  %14882 = vmatpush3.bf16.msra.mxu1 %v16440_v22  ;;  %v16497_v22 = vld [vmem:[%s17685_s5 + $0x680] sm:$0xff]   ;;  %v2740_v24 = vrot.slane %v2724_v19, %v17727_v35  ;;  %v16535_v19 = vld [vmem:[%s17685_s5 + $0x870] sm:$0xff]  }
  0xf4   : > { %14883 = vmatprep.subr.bf16.mxu1 %v16442_v25  ;;  %v16499_v25 = vld [vmem:[%s17685_s5 + $0x7f8] sm:$0xff]  }
  0xf6   : > { %14862 = vmatpush3.bf16.msra.mxu0 %v16443_v26  ;;  %v17973_v26 = vrot.slane %v2717_v21, %v17727_v35  ;;  %v16536_v21 = vld [vmem:[%s17685_s5 + $0x8f0] sm:$0xff]  }
  0xf7   : > { %14863 = vmatprep.subr.bf16.mxu0 %v16445_v28  ;;  %14884 = vmatpush3.bf16.msra.mxu1 %v16444_v27  ;;  %v16500_v27 = vld [vmem:[%s17685_s5 + $0x738] sm:$0xff]   ;;  %v2754_v28 = vrot.slane %v2732_v23, %v17727_v35 }
  0xf8   : > { %14885 = vmatprep.subr.bf16.mxu1 %v16446_v29  ;;  %v16501_v29 = vld [vmem:[%s17685_s5 + $0x7b8] sm:$0xff]  }
  0xfa   : > { %14864 = vmatpush3.bf16.msra.mxu0 %v16447_v30  ;;  %v2733_v30 = vcombine.high %v17973_v26, %v17973_v26 }
  0xfb   : > { %14865 = vmatprep.subr.bf16.mxu0 %v16449_v32  ;;  %14886 = vmatpush3.bf16.msra.mxu1 %v16448_v31  ;;  %v2762_v31 = vcombine.high %v2740_v24, %v2740_v24  ;;  %v16502_v32 = vld [vmem:[%s17685_s5 + $0x770] sm:$0xff]  }
  0xfc   : > { %14887 = vmatprep.subr.bf16.mxu1 %v16450_v33  ;;  %v2764_v33 = vcombine.high %v2754_v28, %v2754_v28 }
  0xfe   : > { %14866 = vmatpush3.bf16.msra.mxu0 %v16451_v34 }
  0xff   : > { %14867 = vmatprep.subr.bf16.mxu0 %v16453_v37  ;;  %14888 = vmatpush3.bf16.msra.mxu1 %v16452_v36  ;;  %v13482_v36 = vld [vmem:[%s192_s27] ss:$0 sm:$0xff]  ;;  %v16503_v37 = vld [vmem:[%s17685_s5 + $0x7f0] sm:$0xff]  }
 0x100   : > { %14889 = vmatprep.subr.bf16.mxu1 %v16454_v38  ;;  %v2761_v38 = vrot.slane %v2733_v30, %v17727_v35  ;;  %v16540_v30 = vld [vmem:[%s17685_s5 + $0x8e8] sm:$0xff]  }
 0x102   : > { %14868 = vmatpush3.bf16.msra.mxu0 %v16455_v39  ;;  %v16504_v39 = vld [vmem:[%s17685_s5 + $0x730] sm:$0xff]  }
 0x103   : > { %14869 = vmatprep.subr.bf16.mxu0 %v16457_v41  ;;  %14890 = vmatpush3.bf16.msra.mxu1 %v16456_v40 }
 0x104   : > { %14891 = vmatprep.subr.bf16.mxu1 %v16458_v42  ;;  %v16505_v42 = vld [vmem:[%s17685_s5 + $0x7b0] sm:$0xff]  }
 0x106   : > { %14870 = vmatpush3.bf16.msra.mxu0 %v16459_v43  ;;  %v2765_v43 = vcombine.high %v2761_v38, %v2761_v38 }
 0x107   : > { %14871 = vmatprep.subr.bf16.mxu0 %v16461_v45  ;;  %14892 = vmatpush3.bf16.msra.mxu1 %v16460_v44  ;;  %v16506_v45 = vld [vmem:[%s17685_s5 + $0x768] sm:$0xff]  }
 0x108   : > { %14893 = vmatprep.subr.bf16.mxu1 %v16462_v46 }
 0x10a   : > { %14872 = vmatpush3.bf16.msra.mxu0 %v16463_v47 }
 0x10b   : > { %14901 = vmatprep.subr.bf16.mxu0 %v16466_v50  ;;  %14894 = vmatpush3.bf16.msra.mxu1 %v16464_v48  ;;  %v16507_v48 = vld [vmem:[%s17685_s5 + $0x7e8] sm:$0xff]  }
 0x10c   : > { %14923 = vmatprep.subr.bf16.mxu1 %v16467_v51  ;;  %v16508_v51 = vld [vmem:[%s17685_s5 + $0x728] sm:$0xff]  }
 0x10d   : > { %10941 = vmatmul.mubr.bf16.vlgmr.msra.gmra.mxu0 %v2698_v49 }
 0x10e   : > { %14902 = vmatpush3.bf16.msra.mxu0 %v16468_v52  ;;  %10981 = vmatmul.mubr.bf16.vlgmr.msra.gmra.mxu1 %v2714_v54  ;;  %v16509_v54 = vld [vmem:[%s17685_s5 + $0x7a8] sm:$0xff]  }
 0x10f   : > { %14903 = vmatprep.subr.bf16.mxu0 %v16470_v55  ;;  %14924 = vmatpush3.bf16.msra.mxu1 %v16469_v53 }
 0x110   : > { %14925 = vmatprep.subr.bf16.mxu1 %v16471_v56  ;;  %11020 = vmatprep.mubr.bf16.mxu0 %v2754_v28  ;;  %v16510_v56 = vld [vmem:[%s17685_s5 + $0x760] sm:$0xff]  }
 0x111   : > { %11060 = vmatprep.mubr.bf16.mxu1 %v2764_v33  ;;  %v16541_v33 = vld [vmem:[%s17685_s5 + $0x828] sm:$0xff]  }
 0x112   : > { %14904 = vmatpush3.bf16.msra.mxu0 %v16472_v57 }
 0x113   : > { %14905 = vmatprep.subr.bf16.mxu0 %v16474_v59  ;;  %14926 = vmatpush3.bf16.msra.mxu1 %v16473_v58  ;;  %v16511_v58 = vld [vmem:[%s17685_s5 + $0x7e0] sm:$0xff]  }
 0x114   : > { %14927 = vmatprep.subr.bf16.mxu1 %v16475_v60  ;;  %v16512_v59 = vld [vmem:[%s17685_s5 + $0x720] sm:$0xff]  }
 0x115   : > { %v16513_v60 = vld [vmem:[%s17685_s5 + $0x7a0] sm:$0xff]  }
 0x116   : > { %14906 = vmatpush3.bf16.msra.mxu0 %v16476_v61  ;;  %v16514_v61 = vld [vmem:[%s17685_s5 + $0x758] sm:$0xff]  }
 0x117   : > { %14907 = vmatprep.subr.bf16.mxu0 %v16478_v63  ;;  %14928 = vmatpush3.bf16.msra.mxu1 %v16477_v62  ;;  %v16515_v62 = vld [vmem:[%s17685_s5 + $0x7d8] sm:$0xff]  }
 0x118   : > { %14929 = vmatprep.subr.bf16.mxu1 %v16479_v0  ;;  %v16516_v63 = vld [vmem:[%s17685_s5 + $0x718] sm:$0xff]  }
 0x119   : > { %v16517_v0 = vld [vmem:[%s17685_s5 + $0x798] sm:$0xff]  }
 0x11a   : > { %14908 = vmatpush3.bf16.msra.mxu0 %v16480_v1  ;;  %v16518_v1 = vld [vmem:[%s17685_s5 + $0x750] sm:$0xff]  }
 0x11b   : > { %14909 = vmatprep.subr.bf16.mxu0 %v16482_v3  ;;  %14930 = vmatpush3.bf16.msra.mxu1 %v16481_v2  ;;  %v16519_v2 = vld [vmem:[%s17685_s5 + $0x7d0] sm:$0xff]  }
 0x11c   : > { %14931 = vmatprep.subr.bf16.mxu1 %v16483_v4  ;;  %v16520_v3 = vld [vmem:[%s17685_s5 + $0x710] sm:$0xff]  }
 0x11d   : > { %v16521_v4 = vld [vmem:[%s17685_s5 + $0x790] sm:$0xff]  }
 0x11e   : > { %14910 = vmatpush3.bf16.msra.mxu0 %v16484_v5  ;;  %v16522_v5 = vld [vmem:[%s17685_s5 + $0x748] sm:$0xff]  }
 0x11f   : > { %14911 = vmatprep.subr.bf16.mxu0 %v16486_v7  ;;  %14932 = vmatpush3.bf16.msra.mxu1 %v16485_v6  ;;  %v16523_v6 = vld [vmem:[%s17685_s5 + $0x7c8] sm:$0xff]  }
 0x120   : > { %14933 = vmatprep.subr.bf16.mxu1 %v16487_v8  ;;  %v16524_v7 = vld [vmem:[%s17685_s5 + $0x708] sm:$0xff]  }
 0x121   : > { %v16525_v8 = vld [vmem:[%s17685_s5 + $0x788] sm:$0xff]  }
 0x122   : > { %14912 = vmatpush3.bf16.msra.mxu0 %v16488_v9  ;;  %v16526_v9 = vld [vmem:[%s17685_s5 + $0x740] sm:$0xff]  }
 0x123   : > { %14913 = vmatprep.subr.bf16.mxu0 %v16490_v11  ;;  %14934 = vmatpush3.bf16.msra.mxu1 %v16489_v10  ;;  %v16527_v10 = vld [vmem:[%s17685_s5 + $0x7c0] sm:$0xff]  }
 0x124   : > { %14935 = vmatprep.subr.bf16.mxu1 %v16491_v12  ;;  %v16528_v11 = vld [vmem:[%s17685_s5 + $0x700] sm:$0xff]  }
 0x125   : > { %v16529_v12 = vld [vmem:[%s17685_s5 + $0x780] sm:$0xff]  }
 0x126   : > { %14914 = vmatpush3.bf16.msra.mxu0 %v16492_v13  ;;  %v2747_v13 = vrot.slane %v17973_v26, %v17727_v35 }
 0x127   : > { %14915 = vmatprep.subr.bf16.mxu0 %v16494_v15  ;;  %14936 = vmatpush3.bf16.msra.mxu1 %v16493_v14  ;;  %v16531_v14 = vld [vmem:[%s17685_s5 + $0x878] sm:$0xff]  }
 0x128   : > { %14937 = vmatprep.subr.bf16.mxu1 %v16495_v16  ;;  %v16532_v15 = vld [vmem:[%s17685_s5 + $0x8f8] sm:$0xff]   ;;  %v2763_v18 = vcombine.high %v2747_v13, %v2747_v13 }
 0x129   : > { %v16533_v16 = vld [vmem:[%s17685_s5 + $0x838] sm:$0xff]  }
 0x12a   : > { %14916 = vmatpush3.bf16.msra.mxu0 %v16496_v17  ;;  %v16534_v17 = vld [vmem:[%s17685_s5 + $0x8b8] sm:$0xff]  }
 0x12b   : > { %14945 = vmatprep.subr.bf16.mxu0 %v16498_v20  ;;  %14938 = vmatpush3.bf16.msra.mxu1 %v16497_v22  ;;  %v16537_v22 = vld [vmem:[%s17685_s5 + $0x830] sm:$0xff]  }
 0x12c   : > { %14967 = vmatprep.subr.bf16.mxu1 %v16499_v25  ;;  %v16538_v25 = vld [vmem:[%s17685_s5 + $0x8b0] sm:$0xff]  }
 0x12d   : > { %v14653_v34 = vpop.f32.mrf.mxu0  ;;  %11021 = vmatmul.mubr.bf16.vlgmr.msra.gmra.mxu0 %v2740_v24 }
 0x12e   : > { %v14675_v40 = vpop.f32.mrf.mxu1  ;;  %14946 = vmatpush3.bf16.msra.mxu0 %v16500_v27  ;;  %11061 = vmatmul.mubr.bf16.vlgmr.msra.gmra.mxu1 %v2762_v31  ;;  %v16539_v27 = vld [vmem:[%s17685_s5 + $0x868] sm:$0xff]  }
 0x12f   : > { %v14654_v41 = vpop.f32.mrf.mxu0  ;;  %14947 = vmatprep.subr.bf16.mxu0 %v16502_v32  ;;  %14968 = vmatpush3.bf16.msra.mxu1 %v16501_v29 }
 0x130   : > { %v14655_v44 = vadd.f32 %v14654_v41, %v14653_v34  ;;  %v14676_v46 = vpop.f32.mrf.mxu1  ;;  %11100 = vmatprep.mubr.bf16.mxu0 %v2761_v38  ;;  %14969 = vmatprep.subr.bf16.mxu1 %v16503_v37  ;;  %v16542_v37 = vld [vmem:[%s17685_s5 + $0x8a8] sm:$0xff]   ;;  %v16544_v41 = vld [vmem:[%s17685_s5 + $0x8e0] sm:$0xff]  }
 0x131   : > { %v14656_v47 = vpop.f32.mrf.mxu0  ;;  %v14677_v50 = vadd.f32 %v14676_v46, %v14675_v40  ;;  %11140 = vmatprep.mubr.bf16.mxu1 %v2765_v43  ;;  %v16546_v43 = vld [vmem:[%s17685_s5 + $0x8a0] sm:$0xff]   ;;  %v16549_v46 = vld [vmem:[%s17685_s5 + $0x818] sm:$0xff]  }
 0x132   : > { %v10543_v49 = vadd.f32 %v14655_v44, %v13482_v36  ;;  %v14678_v52 = vpop.f32.mrf.mxu1  ;;  %14948 = vmatpush3.bf16.msra.mxu0 %v16504_v39  ;;  %v16543_v39 = vld [vmem:[%s17685_s5 + $0x860] sm:$0xff]   ;;  %v16547_v44 = vld [vmem:[%s17685_s5 + $0x858] sm:$0xff]  }
 0x133   : > { %v14657_v53 = vpop.f32.mrf.mxu0  ;;  %14949 = vmatprep.subr.bf16.mxu0 %v16506_v45  ;;  %14970 = vmatpush3.bf16.msra.mxu1 %v16505_v42  ;;  %v16545_v42 = vld [vmem:[%s17685_s5 + $0x820] sm:$0xff]   ;;  %v16548_v45 = vld [vmem:[%s17685_s5 + $0x8d8] sm:$0xff]   ;;  %v16555_v52 = vld [vmem:[%s17685_s5 + $0x848] sm:$0xff]  }
 0x134   : > { %v17991_v55 = vadd.f32 %v14677_v50, %v10543_v49  ;;  %v14679_v57 = vpop.f32.mrf.mxu1  ;;  %14971 = vmatprep.subr.bf16.mxu1 %v16507_v48  ;;  %v16550_v47 = vld [vmem:[%s17685_s5 + $0x898] sm:$0xff]   ;;  %v16551_v48 = vld [vmem:[%s17685_s5 + $0x850] sm:$0xff]   ;;  %v16556_v53 = vld [vmem:[%s17685_s5 + $0x8c8] sm:$0xff]  }
 0x135   : > { %v16552_v49 = vld [vmem:[%s17685_s5 + $0x8d0] sm:$0xff]   ;;  %v16560_v57 = vld [vmem:[%s17685_s5 + $0x8c0] sm:$0xff]  }
 0x136   : > { %14950 = vmatpush3.bf16.msra.mxu0 %v16508_v51  ;;  %v16553_v50 = vld [vmem:[%s17685_s5 + $0x810] sm:$0xff]  }
 0x137   : > { %14951 = vmatprep.subr.bf16.mxu0 %v16510_v56  ;;  %14972 = vmatpush3.bf16.msra.mxu1 %v16509_v54  ;;  %v16554_v51 = vld [vmem:[%s17685_s5 + $0x890] sm:$0xff]   ;;  %v16557_v54 = vld [vmem:[%s17685_s5 + $0x808] sm:$0xff]   ;;  %v16559_v56 = vld [vmem:[%s17685_s5 + $0x840] sm:$0xff]  }
 0x138   : > { %14973 = vmatprep.subr.bf16.mxu1 %v16511_v58  ;;  %v16561_v58 = vld [vmem:[%s17685_s5 + $0x800] sm:$0xff]  }
 0x13a   : > { %14952 = vmatpush3.bf16.msra.mxu0 %v16512_v59  ;;  %v227_v59 = vld [vmem:[%s19207_s0 + $0x20] sm:$0xff] }
 0x13b   : > { %14953 = vmatprep.subr.bf16.mxu0 %v16514_v61  ;;  %14974 = vmatpush3.bf16.msra.mxu1 %v16513_v60  ;;  %v16562_v60 = vld [vmem:[%s17685_s5 + $0x880] sm:$0xff]   ;;  %v2773_v61 = vrot.slane %v227_v59, %v17727_v35 }
 0x13c   : > { %14975 = vmatprep.subr.bf16.mxu1 %v16515_v62  ;;  %v2766_v62 = vcombine.high %v227_v59, %v227_v59  ;;  %v16600_v59 = vld [vmem:[%s17685_s5 + $0xa70] sm:$0xff]  }
 0x13e   : > { %14954 = vmatpush3.bf16.msra.mxu0 %v16516_v63  ;;  %v16563_v63 = vld [vmem:[%s17685_s5 + $0x978] sm:$0xff]  }
 0x13f   : > { %14955 = vmatprep.subr.bf16.mxu0 %v16518_v1  ;;  %14976 = vmatpush3.bf16.msra.mxu1 %v16517_v0  ;;  %v2781_v0 = vcombine.high %v2773_v61, %v2773_v61  ;;  %v2789_v1 = vrot.slane %v2773_v61, %v17727_v35  ;;  %v16601_v61 = vld [vmem:[%s17685_s5 + $0xaf0] sm:$0xff]  }
 0x140   : > { %14977 = vmatprep.subr.bf16.mxu1 %v16519_v2  ;;  %v16564_v2 = vld [vmem:[%s17685_s5 + $0x9f8] sm:$0xff]  }
 0x142   : > { %14956 = vmatpush3.bf16.msra.mxu0 %v16520_v3  ;;  %v18058_v3 = vrot.slane %v2766_v62, %v17727_v35  ;;  %v16602_v62 = vld [vmem:[%s17685_s5 + $0xa30] sm:$0xff]  }
 0x143   : > { %14957 = vmatprep.subr.bf16.mxu0 %v16522_v5  ;;  %14978 = vmatpush3.bf16.msra.mxu1 %v16521_v4  ;;  %v16565_v4 = vld [vmem:[%s17685_s5 + $0x938] sm:$0xff]   ;;  %v2803_v5 = vrot.slane %v2781_v0, %v17727_v35 }
 0x144   : > { %14979 = vmatprep.subr.bf16.mxu1 %v16523_v6  ;;  %v16566_v6 = vld [vmem:[%s17685_s5 + $0x9b8] sm:$0xff]  }
 0x146   : > { %14958 = vmatpush3.bf16.msra.mxu0 %v16524_v7  ;;  %v2782_v7 = vcombine.high %v18058_v3, %v18058_v3 }
 0x147   : > { %14959 = vmatprep.subr.bf16.mxu0 %v16526_v9  ;;  %14980 = vmatpush3.bf16.msra.mxu1 %v16525_v8  ;;  %v2811_v8 = vcombine.high %v2789_v1, %v2789_v1  ;;  %v16567_v9 = vld [vmem:[%s17685_s5 + $0x970] sm:$0xff]  }
 0x148   : > { %14981 = vmatprep.subr.bf16.mxu1 %v16527_v10  ;;  %v2813_v10 = vcombine.high %v2803_v5, %v2803_v5 }
 0x14a   : > { %14960 = vmatpush3.bf16.msra.mxu0 %v16528_v11 }
 0x14b   : > { %14989 = vmatprep.subr.bf16.mxu0 %v16531_v14  ;;  %14982 = vmatpush3.bf16.msra.mxu1 %v16529_v12  ;;  %v16568_v12 = vld [vmem:[%s17685_s5 + $0x9f0] sm:$0xff]  }
 0x14c   : > { %15011 = vmatprep.subr.bf16.mxu1 %v16532_v15  ;;  %v16569_v14 = vld [vmem:[%s17685_s5 + $0x930] sm:$0xff]  }
 0x14d   : > { %v14697_v20 = vpop.f32.mrf.mxu0  ;;  %11101 = vmatmul.mubr.bf16.vlgmr.msra.gmra.mxu0 %v2747_v13  ;;  %v2810_v13 = vrot.slane %v2782_v7, %v17727_v35 }
 0x14e   : > { %v14719_v23 = vpop.f32.mrf.mxu1  ;;  %14990 = vmatpush3.bf16.msra.mxu0 %v16533_v16  ;;  %11141 = vmatmul.mubr.bf16.vlgmr.msra.gmra.mxu1 %v2763_v18 }
 0x14f   : > { %v14698_v24 = vpop.f32.mrf.mxu0  ;;  %14991 = vmatprep.subr.bf16.mxu0 %v16535_v19  ;;  %15012 = vmatpush3.bf16.msra.mxu1 %v16534_v17  ;;  %v16570_v17 = vld [vmem:[%s17685_s5 + $0x9b0] sm:$0xff]   ;;  %v2814_v18 = vcombine.high %v2810_v13, %v2810_v13 }
 0x150   : > { %v14699_v26 = vadd.f32 %v14698_v24, %v14697_v20  ;;  %v14720_v28 = vpop.f32.mrf.mxu1  ;;  %15013 = vmatprep.subr.bf16.mxu1 %v16536_v21  ;;  %11180 = vmatprep.mubr.bf16.mxu0 %v2803_v5  ;;  %v16571_v20 = vld [vmem:[%s17685_s5 + $0x968] sm:$0xff]  }
 0x151   : > { %v14700_v29 = vpop.f32.mrf.mxu0  ;;  %v14721_v32 = vadd.f32 %v14720_v28, %v14719_v23  ;;  %11220 = vmatprep.mubr.bf16.mxu1 %v2813_v10  ;;  %v16572_v23 = vld [vmem:[%s17685_s5 + $0x9e8] sm:$0xff]  }
 0x152   : > { %v10623_v31 = vadd.f32 %v14699_v26, %v17991_v55  ;;  %v14722_v34 = vpop.f32.mrf.mxu1  ;;  %14992 = vmatpush3.bf16.msra.mxu0 %v16537_v22  ;;  %v16558_v55 = vld [vmem:[%s17685_s5 + $0x888] sm:$0xff]  }
 0x153   : > { %v14701_v36 = vpop.f32.mrf.mxu0  ;;  %14993 = vmatprep.subr.bf16.mxu0 %v16539_v27  ;;  %15014 = vmatpush3.bf16.msra.mxu1 %v16538_v25  ;;  %v16573_v26 = vld [vmem:[%s17685_s5 + $0x928] sm:$0xff]   ;;  %v16577_v34 = vld [vmem:[%s17685_s5 + $0x920] sm:$0xff]  }
 0x154   : > { %v18028_v38 = vadd.f32 %v14721_v32, %v10623_v31  ;;  %v14723_v40 = vpop.f32.mrf.mxu1  ;;  %15015 = vmatprep.subr.bf16.mxu1 %v16540_v30  ;;  %v16574_v29 = vld [vmem:[%s17685_s5 + $0x9a8] sm:$0xff]   ;;  %v16575_v31 = vld [vmem:[%s17685_s5 + $0x960] sm:$0xff]  }
 0x155   : > { %v16578_v36 = vld [vmem:[%s17685_s5 + $0x9a0] sm:$0xff]   ;;  %v16582_v40 = vld [vmem:[%s17685_s5 + $0x998] sm:$0xff]  }
 0x156   : > { %14994 = vmatpush3.bf16.msra.mxu0 %v16541_v33  ;;  %v16576_v33 = vld [vmem:[%s17685_s5 + $0x9e0] sm:$0xff]  }
 0x157   : > { %14995 = vmatprep.subr.bf16.mxu0 %v16543_v39  ;;  %15016 = vmatpush3.bf16.msra.mxu1 %v16542_v37  ;;  %v16579_v37 = vld [vmem:[%s17685_s5 + $0x958] sm:$0xff]  }
 0x158   : > { %15017 = vmatprep.subr.bf16.mxu1 %v16544_v41  ;;  %v16581_v39 = vld [vmem:[%s17685_s5 + $0x918] sm:$0xff]   ;;  %v16583_v41 = vld [vmem:[%s17685_s5 + $0x950] sm:$0xff]  }
 0x15a   : > { %14996 = vmatpush3.bf16.msra.mxu0 %v16545_v42  ;;  %v16584_v42 = vld [vmem:[%s17685_s5 + $0x9d0] sm:$0xff]  }
 0x15b   : > { %14997 = vmatprep.subr.bf16.mxu0 %v16547_v44  ;;  %15018 = vmatpush3.bf16.msra.mxu1 %v16546_v43  ;;  %v16585_v43 = vld [vmem:[%s17685_s5 + $0x910] sm:$0xff]  }
 0x15c   : > { %15019 = vmatprep.subr.bf16.mxu1 %v16548_v45  ;;  %v16586_v44 = vld [vmem:[%s17685_s5 + $0x990] sm:$0xff]   ;;  %v16587_v45 = vld [vmem:[%s17685_s5 + $0x948] sm:$0xff]  }
 0x15e   : > { %14998 = vmatpush3.bf16.msra.mxu0 %v16549_v46  ;;  %v16588_v46 = vld [vmem:[%s17685_s5 + $0x9c8] sm:$0xff]  }
 0x15f   : > { %14999 = vmatprep.subr.bf16.mxu0 %v16551_v48  ;;  %15020 = vmatpush3.bf16.msra.mxu1 %v16550_v47  ;;  %v16589_v47 = vld [vmem:[%s17685_s5 + $0x908] sm:$0xff]  }
 0x160   : > { %15021 = vmatprep.subr.bf16.mxu1 %v16552_v49  ;;  %v16590_v48 = vld [vmem:[%s17685_s5 + $0x988] sm:$0xff]   ;;  %v16591_v49 = vld [vmem:[%s17685_s5 + $0x940] sm:$0xff]  }
 0x162   : > { %15000 = vmatpush3.bf16.msra.mxu0 %v16553_v50  ;;  %v16592_v50 = vld [vmem:[%s17685_s5 + $0x9c0] sm:$0xff]  }
 0x163   : > { %15001 = vmatprep.subr.bf16.mxu0 %v16555_v52  ;;  %15022 = vmatpush3.bf16.msra.mxu1 %v16554_v51  ;;  %v16593_v51 = vld [vmem:[%s17685_s5 + $0x900] sm:$0xff]  }
 0x164   : > { %15023 = vmatprep.subr.bf16.mxu1 %v16556_v53  ;;  %v16594_v52 = vld [vmem:[%s17685_s5 + $0x980] sm:$0xff]   ;;  %v2796_v53 = vrot.slane %v18058_v3, %v17727_v35  ;;  %v16604_v3 = vld [vmem:[%s17685_s5 + $0xa68] sm:$0xff]  }
 0x166   : > { %15002 = vmatpush3.bf16.msra.mxu0 %v16557_v54  ;;  %v16596_v54 = vld [vmem:[%s17685_s5 + $0xa78] sm:$0xff]  }
 0x167   : > { %15003 = vmatprep.subr.bf16.mxu0 %v16559_v56  ;;  %15024 = vmatpush3.bf16.msra.mxu1 %v16558_v55  ;;  %v16597_v55 = vld [vmem:[%s17685_s5 + $0xaf8] sm:$0xff]  }
 0x168   : > { %15025 = vmatprep.subr.bf16.mxu1 %v16560_v57  ;;  %v16598_v56 = vld [vmem:[%s17685_s5 + $0xa38] sm:$0xff]  }
 0x169   : > { %v16599_v57 = vld [vmem:[%s17685_s5 + $0xab8] sm:$0xff]  }
 0x16a   : > { %15004 = vmatpush3.bf16.msra.mxu0 %v16561_v58  ;;  %v2812_v58 = vcombine.high %v2796_v53, %v2796_v53 }
 0x16b   : > { %15033 = vmatprep.subr.bf16.mxu0 %v16563_v63  ;;  %15026 = vmatpush3.bf16.msra.mxu1 %v16562_v60 }
 0x16c   : > { %15055 = vmatprep.subr.bf16.mxu1 %v16564_v2 }
 0x16d   : > { %v14741_v11 = vpop.f32.mrf.mxu0  ;;  %11181 = vmatmul.mubr.bf16.vlgmr.msra.gmra.mxu0 %v2789_v1  ;;  %v16603_v1 = vld [vmem:[%s17685_s5 + $0xab0] sm:$0xff]  }
 0x16e   : > { %v14763_v15 = vpop.f32.mrf.mxu1  ;;  %15034 = vmatpush3.bf16.msra.mxu0 %v16565_v4  ;;  %11221 = vmatmul.mubr.bf16.vlgmr.msra.gmra.mxu1 %v2811_v8 }
 0x16f   : > { %v14742_v16 = vpop.f32.mrf.mxu0  ;;  %15035 = vmatprep.subr.bf16.mxu0 %v16567_v9  ;;  %15056 = vmatpush3.bf16.msra.mxu1 %v16566_v6  ;;  %v16605_v6 = vld [vmem:[%s17685_s5 + $0xae8] sm:$0xff]  }
 0x170   : > { %v14743_v19 = vadd.f32 %v14742_v16, %v14741_v11  ;;  %v14764_v21 = vpop.f32.mrf.mxu1  ;;  %11260 = vmatprep.mubr.bf16.mxu0 %v2810_v13  ;;  %15057 = vmatprep.subr.bf16.mxu1 %v16568_v12  ;;  %v16606_v9 = vld [vmem:[%s17685_s5 + $0xa28] sm:$0xff]   ;;  %v16609_v16 = vld [vmem:[%s17685_s5 + $0xae0] sm:$0xff]  }
 0x171   : > { %v14744_v22 = vpop.f32.mrf.mxu0  ;;  %v14765_v25 = vadd.f32 %v14764_v21, %v14763_v15  ;;  %11300 = vmatprep.mubr.bf16.mxu1 %v2814_v18  ;;  %v16607_v12 = vld [vmem:[%s17685_s5 + $0xaa8] sm:$0xff]   ;;  %v16611_v18 = vld [vmem:[%s17685_s5 + $0xaa0] sm:$0xff]   ;;  %v16614_v21 = vld [vmem:[%s17685_s5 + $0xa18] sm:$0xff]  }
 0x172   : > { %v10703_v24 = vadd.f32 %v14743_v19, %v18028_v38  ;;  %v14766_v27 = vpop.f32.mrf.mxu1  ;;  %15036 = vmatpush3.bf16.msra.mxu0 %v16569_v14  ;;  %v16580_v38 = vld [vmem:[%s17685_s5 + $0x9d8] sm:$0xff]   ;;  %v16608_v14 = vld [vmem:[%s17685_s5 + $0xa60] sm:$0xff]  }
 0x173   : > { %v14745_v28 = vpop.f32.mrf.mxu0  ;;  %15037 = vmatprep.subr.bf16.mxu0 %v16571_v20  ;;  %15058 = vmatpush3.bf16.msra.mxu1 %v16570_v17  ;;  %v16610_v17 = vld [vmem:[%s17685_s5 + $0xa20] sm:$0xff]   ;;  %v16612_v19 = vld [vmem:[%s17685_s5 + $0xa58] sm:$0xff]   ;;  %v16620_v27 = vld [vmem:[%s17685_s5 + $0xa48] sm:$0xff]  }
 0x174   : > { %v18075_v30 = vadd.f32 %v14765_v25, %v10703_v24  ;;  %v14767_v32 = vpop.f32.mrf.mxu1  ;;  %15059 = vmatprep.subr.bf16.mxu1 %v16572_v23  ;;  %v16613_v20 = vld [vmem:[%s17685_s5 + $0xad8] sm:$0xff]   ;;  %v16616_v23 = vld [vmem:[%s17685_s5 + $0xa50] sm:$0xff]   ;;  %v16621_v28 = vld [vmem:[%s17685_s5 + $0xac8] sm:$0xff]  }
 0x175   : > { %v16615_v22 = vld [vmem:[%s17685_s5 + $0xa98] sm:$0xff]   ;;  %v16617_v24 = vld [vmem:[%s17685_s5 + $0xad0] sm:$0xff]   ;;  %v16625_v32 = vld [vmem:[%s17685_s5 + $0xac0] sm:$0xff]  }
 0x176   : > { %15038 = vmatpush3.bf16.msra.mxu0 %v16573_v26  ;;  %v16618_v25 = vld [vmem:[%s17685_s5 + $0xa10] sm:$0xff]  }
 0x177   : > { %15039 = vmatprep.subr.bf16.mxu0 %v16575_v31  ;;  %15060 = vmatpush3.bf16.msra.mxu1 %v16574_v29  ;;  %v16619_v26 = vld [vmem:[%s17685_s5 + $0xa90] sm:$0xff]   ;;  %v16622_v29 = vld [vmem:[%s17685_s5 + $0xa08] sm:$0xff]   ;;  %v16624_v31 = vld [vmem:[%s17685_s5 + $0xa40] sm:$0xff]  }
 0x178   : > { %15061 = vmatprep.subr.bf16.mxu1 %v16576_v33  ;;  %v16626_v33 = vld [vmem:[%s17685_s5 + $0xa00] sm:$0xff]  }
 0x17a   : > { %15040 = vmatpush3.bf16.msra.mxu0 %v16577_v34  ;;  %v228_v34 = vld [vmem:[%s19207_s0 + $0x28] sm:$0xff] }
 0x17b   : > { %15041 = vmatprep.subr.bf16.mxu0 %v16579_v37  ;;  %15062 = vmatpush3.bf16.msra.mxu1 %v16578_v36  ;;  %v2822_v36 = vrot.slane %v228_v34, %v17727_v35  ;;  %v16628_v37 = vld [vmem:[%s17685_s5 + $0xb78] sm:$0xff]  }
 0x17c   : > { %15063 = vmatprep.subr.bf16.mxu1 %v16580_v38  ;;  %v2815_v38 = vcombine.high %v228_v34, %v228_v34 }
 0x17e   : > { %15042 = vmatpush3.bf16.msra.mxu0 %v16581_v39  ;;  %v16627_v39 = vld [vmem:[%s17685_s5 + $0xa80] sm:$0xff]  }
 0x17f   : > { %15043 = vmatprep.subr.bf16.mxu0 %v16583_v41  ;;  %15064 = vmatpush3.bf16.msra.mxu1 %v16582_v40  ;;  %v2830_v40 = vcombine.high %v2822_v36, %v2822_v36  ;;  %v2838_v41 = vrot.slane %v2822_v36, %v17727_v35  ;;  %v16665_v36 = vld [vmem:[%s17685_s5 + $0xc70] sm:$0xff]  }
 0x180   : > { %15065 = vmatprep.subr.bf16.mxu1 %v16584_v42  ;;  %v16629_v42 = vld [vmem:[%s17685_s5 + $0xbf8] sm:$0xff]  }
 0x182   : > { %15044 = vmatpush3.bf16.msra.mxu0 %v16585_v43  ;;  %v18142_v43 = vrot.slane %v2815_v38, %v17727_v35 }
 0x183   : > { %15045 = vmatprep.subr.bf16.mxu0 %v16587_v45  ;;  %15066 = vmatpush3.bf16.msra.mxu1 %v16586_v44  ;;  %v16630_v44 = vld [vmem:[%s17685_s5 + $0xb38] sm:$0xff]   ;;  %v2852_v45 = vrot.slane %v2830_v40, %v17727_v35  ;;  %v16667_v40 = vld [vmem:[%s17685_s5 + $0xc30] sm:$0xff]  }
 0x184   : > { %15067 = vmatprep.subr.bf16.mxu1 %v16588_v46  ;;  %v16631_v46 = vld [vmem:[%s17685_s5 + $0xbb8] sm:$0xff]  }
 0x186   : > { %15046 = vmatpush3.bf16.msra.mxu0 %v16589_v47  ;;  %v2831_v47 = vcombine.high %v18142_v43, %v18142_v43 }
 0x187   : > { %15047 = vmatprep.subr.bf16.mxu0 %v16591_v49  ;;  %15068 = vmatpush3.bf16.msra.mxu1 %v16590_v48  ;;  %v2860_v49 = vcombine.high %v2838_v41, %v2838_v41 }
 0x188   : > { %15069 = vmatprep.subr.bf16.mxu1 %v16592_v50  ;;  %v16632_v50 = vld [vmem:[%s17685_s5 + $0xb70] sm:$0xff]  }
 0x18a   : > { %15048 = vmatpush3.bf16.msra.mxu0 %v16593_v51  ;;  %v2862_v51 = vcombine.high %v2852_v45, %v2852_v45 }
 0x18b   : > { %15077 = vmatprep.subr.bf16.mxu0 %v16596_v54  ;;  %15070 = vmatpush3.bf16.msra.mxu1 %v16594_v52  ;;  %v16633_v52 = vld [vmem:[%s17685_s5 + $0xbf0] sm:$0xff]  }
 0x18c   : > { %15099 = vmatprep.subr.bf16.mxu1 %v16597_v55 }
 0x18d   : > { %v14785_v60 = vpop.f32.mrf.mxu0  ;;  %11261 = vmatmul.mubr.bf16.vlgmr.msra.gmra.mxu0 %v2796_v53  ;;  %v2859_v53 = vrot.slane %v2831_v47, %v17727_v35 }
 0x18e   : > { %v14807_v63 = vpop.f32.mrf.mxu1  ;;  %15078 = vmatpush3.bf16.msra.mxu0 %v16598_v56  ;;  %11301 = vmatmul.mubr.bf16.vlgmr.msra.gmra.mxu1 %v2812_v58  ;;  %v16634_v56 = vld [vmem:[%s17685_s5 + $0xb30] sm:$0xff]  }
 0x18f   : > { %v14786_v0 = vpop.f32.mrf.mxu0  ;;  %15079 = vmatprep.subr.bf16.mxu0 %v16600_v59  ;;  %15100 = vmatpush3.bf16.msra.mxu1 %v16599_v57  ;;  %v16635_v58 = vld [vmem:[%s17685_s5 + $0xbb0] sm:$0xff]   ;;  %v2863_v59 = vcombine.high %v2859_v53, %v2859_v53 }
 0x190   : > { %v14787_v2 = vadd.f32 %v14786_v0, %v14785_v60  ;;  %v14808_v4 = vpop.f32.mrf.mxu1  ;;  %15101 = vmatprep.subr.bf16.mxu1 %v16601_v61  ;;  %11340 = vmatprep.mubr.bf16.mxu0 %v2852_v45  ;;  %v16669_v45 = vld [vmem:[%s17685_s5 + $0xc68] sm:$0xff]  }
 0x191   : > { %v14788_v5 = vpop.f32.mrf.mxu0  ;;  %v14809_v8 = vadd.f32 %v14808_v4, %v14807_v63  ;;  %11380 = vmatprep.mubr.bf16.mxu1 %v2862_v51  ;;  %v16638_v4 = vld [vmem:[%s17685_s5 + $0xb28] sm:$0xff]  }
 0x192   : > { %v10783_v7 = vadd.f32 %v14787_v2, %v18075_v30  ;;  %v14810_v10 = vpop.f32.mrf.mxu1  ;;  %15080 = vmatpush3.bf16.msra.mxu0 %v16602_v62  ;;  %v16623_v30 = vld [vmem:[%s17685_s5 + $0xa88] sm:$0xff]  }
 0x193   : > { %v14789_v11 = vpop.f32.mrf.mxu0  ;;  %15081 = vmatprep.subr.bf16.mxu0 %v16604_v3  ;;  %15102 = vmatpush3.bf16.msra.mxu1 %v16603_v1  ;;  %v16636_v62 = vld [vmem:[%s17685_s5 + $0xb68] sm:$0xff]   ;;  %v16642_v10 = vld [vmem:[%s17685_s5 + $0xb20] sm:$0xff]  }
 0x194   : > { %v18112_v13 = vadd.f32 %v14809_v8, %v10783_v7  ;;  %v14811_v15 = vpop.f32.mrf.mxu1  ;;  %15103 = vmatprep.subr.bf16.mxu1 %v16605_v6  ;;  %v16637_v1 = vld [vmem:[%s17685_s5 + $0xbe8] sm:$0xff]   ;;  %v16640_v8 = vld [vmem:[%s17685_s5 + $0xb60] sm:$0xff]  }
 0x195   : > { %v16639_v6 = vld [vmem:[%s17685_s5 + $0xba8] sm:$0xff]   ;;  %v16643_v11 = vld [vmem:[%s17685_s5 + $0xba0] sm:$0xff]   ;;  %v16647_v15 = vld [vmem:[%s17685_s5 + $0xb98] sm:$0xff]  }
 0x196   : > { %15082 = vmatpush3.bf16.msra.mxu0 %v16606_v9  ;;  %v16641_v9 = vld [vmem:[%s17685_s5 + $0xbe0] sm:$0xff]   ;;  %v16671_v51 = vld [vmem:[%s17685_s5 + $0xc28] sm:$0xff]  }
 0x197   : > { %15083 = vmatprep.subr.bf16.mxu0 %v16608_v14  ;;  %15104 = vmatpush3.bf16.msra.mxu1 %v16607_v12  ;;  %v16644_v12 = vld [vmem:[%s17685_s5 + $0xb58] sm:$0xff]  }
 0x198   : > { %15105 = vmatprep.subr.bf16.mxu1 %v16609_v16  ;;  %v16646_v14 = vld [vmem:[%s17685_s5 + $0xb18] sm:$0xff]   ;;  %v16648_v16 = vld [vmem:[%s17685_s5 + $0xb50] sm:$0xff]  }
 0x19a   : > { %15084 = vmatpush3.bf16.msra.mxu0 %v16610_v17  ;;  %v16649_v17 = vld [vmem:[%s17685_s5 + $0xbd0] sm:$0xff]  }
 0x19b   : > { %15085 = vmatprep.subr.bf16.mxu0 %v16612_v19  ;;  %15106 = vmatpush3.bf16.msra.mxu1 %v16611_v18  ;;  %v16650_v18 = vld [vmem:[%s17685_s5 + $0xb10] sm:$0xff]  }
 0x19c   : > { %15107 = vmatprep.subr.bf16.mxu1 %v16613_v20  ;;  %v16651_v19 = vld [vmem:[%s17685_s5 + $0xb90] sm:$0xff]   ;;  %v16652_v20 = vld [vmem:[%s17685_s5 + $0xb48] sm:$0xff]  }
 0x19e   : > { %15086 = vmatpush3.bf16.msra.mxu0 %v16614_v21  ;;  %v16653_v21 = vld [vmem:[%s17685_s5 + $0xbc8] sm:$0xff]  }
 0x19f   : > { %15087 = vmatprep.subr.bf16.mxu0 %v16616_v23  ;;  %15108 = vmatpush3.bf16.msra.mxu1 %v16615_v22  ;;  %v16654_v22 = vld [vmem:[%s17685_s5 + $0xb08] sm:$0xff]  }
 0x1a0   : > { %15109 = vmatprep.subr.bf16.mxu1 %v16617_v24  ;;  %v16655_v23 = vld [vmem:[%s17685_s5 + $0xb88] sm:$0xff]   ;;  %v16656_v24 = vld [vmem:[%s17685_s5 + $0xb40] sm:$0xff]  }
 0x1a2   : > { %15088 = vmatpush3.bf16.msra.mxu0 %v16618_v25  ;;  %v16657_v25 = vld [vmem:[%s17685_s5 + $0xbc0] sm:$0xff]  }
 0x1a3   : > { %15089 = vmatprep.subr.bf16.mxu0 %v16620_v27  ;;  %15110 = vmatpush3.bf16.msra.mxu1 %v16619_v26  ;;  %v16658_v26 = vld [vmem:[%s17685_s5 + $0xb00] sm:$0xff]  }
 0x1a4   : > { %15111 = vmatprep.subr.bf16.mxu1 %v16621_v28  ;;  %v16659_v27 = vld [vmem:[%s17685_s5 + $0xb80] sm:$0xff]   ;;  %v2845_v28 = vrot.slane %v18142_v43, %v17727_v35 }
 0x1a6   : > { %15090 = vmatpush3.bf16.msra.mxu0 %v16622_v29  ;;  %v16661_v29 = vld [vmem:[%s17685_s5 + $0xc78] sm:$0xff]   ;;  %v2861_v34 = vcombine.high %v2845_v28, %v2845_v28 }
 0x1a7   : > { %15091 = vmatprep.subr.bf16.mxu0 %v16624_v31  ;;  %15112 = vmatpush3.bf16.msra.mxu1 %v16623_v30  ;;  %v16662_v30 = vld [vmem:[%s17685_s5 + $0xcf8] sm:$0xff]  }
 0x1a8   : > { %15113 = vmatprep.subr.bf16.mxu1 %v16625_v32  ;;  %v16663_v31 = vld [vmem:[%s17685_s5 + $0xc38] sm:$0xff]  }
 0x1a9   : > { %v16664_v32 = vld [vmem:[%s17685_s5 + $0xcb8] sm:$0xff]  }
 0x1aa   : > { %15092 = vmatpush3.bf16.msra.mxu0 %v16626_v33 }
 0x1ab   : > { %15121 = vmatprep.subr.bf16.mxu0 %v16628_v37  ;;  %15114 = vmatpush3.bf16.msra.mxu1 %v16627_v39  ;;  %v16666_v37 = vld [vmem:[%s17685_s5 + $0xcf0] sm:$0xff]  }
 0x1ac   : > { %15143 = vmatprep.subr.bf16.mxu1 %v16629_v42  ;;  %v16668_v42 = vld [vmem:[%s17685_s5 + $0xcb0] sm:$0xff]  }
 0x1ad   : > { %v14829_v48 = vpop.f32.mrf.mxu0  ;;  %11341 = vmatmul.mubr.bf16.vlgmr.msra.gmra.mxu0 %v2838_v41 }
 0x1ae   : > { %v14851_v54 = vpop.f32.mrf.mxu1  ;;  %15122 = vmatpush3.bf16.msra.mxu0 %v16630_v44  ;;  %11381 = vmatmul.mubr.bf16.vlgmr.msra.gmra.mxu1 %v2860_v49 }
 0x1af   : > { %v14830_v55 = vpop.f32.mrf.mxu0  ;;  %15123 = vmatprep.subr.bf16.mxu0 %v16632_v50  ;;  %15144 = vmatpush3.bf16.msra.mxu1 %v16631_v46 }
 0x1b0   : > { %v14831_v57 = vadd.f32 %v14830_v55, %v14829_v48  ;;  %v14852_v60 = vpop.f32.mrf.mxu1  ;;  %11420 = vmatprep.mubr.bf16.mxu0 %v2859_v53  ;;  %15145 = vmatprep.subr.bf16.mxu1 %v16633_v52  ;;  %v16670_v48 = vld [vmem:[%s17685_s5 + $0xce8] sm:$0xff]   ;;  %v16673_v55 = vld [vmem:[%s17685_s5 + $0xc60] sm:$0xff]  }
 0x1b1   : > { %v14832_v61 = vpop.f32.mrf.mxu0  ;;  %v14853_v0 = vadd.f32 %v14852_v60, %v14851_v54  ;;  %11460 = vmatprep.mubr.bf16.mxu1 %v2863_v59  ;;  %v16672_v53 = vld [vmem:[%s17685_s5 + $0xca8] sm:$0xff]   ;;  %v16677_v59 = vld [vmem:[%s17685_s5 + $0xc58] sm:$0xff]  }
 0x1b2   : > { %v10863_v63 = vadd.f32 %v14831_v57, %v18112_v13  ;;  %v14854_v2 = vpop.f32.mrf.mxu1  ;;  %15124 = vmatpush3.bf16.msra.mxu0 %v16634_v56  ;;  %v16645_v13 = vld [vmem:[%s17685_s5 + $0xbd8] sm:$0xff]   ;;  %v16674_v56 = vld [vmem:[%s17685_s5 + $0xce0] sm:$0xff]  }
 0x1b3   : > { %v14833_v3 = vpop.f32.mrf.mxu0  ;;  %15125 = vmatprep.subr.bf16.mxu0 %v16636_v62  ;;  %15146 = vmatpush3.bf16.msra.mxu1 %v16635_v58  ;;  %v16675_v57 = vld [vmem:[%s17685_s5 + $0xc20] sm:$0xff]   ;;  %v16678_v60 = vld [vmem:[%s17685_s5 + $0xcd8] sm:$0xff]   ;;  %v16684_v2 = vld [vmem:[%s17685_s5 + $0xc90] sm:$0xff]  }
 0x1b4   : > { %v18158_v5 = vadd.f32 %v14853_v0, %v10863_v63  ;;  %v14855_v7 = vpop.f32.mrf.mxu1  ;;  %15147 = vmatprep.subr.bf16.mxu1 %v16637_v1  ;;  %v16676_v58 = vld [vmem:[%s17685_s5 + $0xca0] sm:$0xff]   ;;  %v16679_v61 = vld [vmem:[%s17685_s5 + $0xc18] sm:$0xff]   ;;  %v16681_v63 = vld [vmem:[%s17685_s5 + $0xc50] sm:$0xff]  }
 0x1b5   : > { %v16680_v62 = vld [vmem:[%s17685_s5 + $0xc98] sm:$0xff]   ;;  %v16682_v0 = vld [vmem:[%s17685_s5 + $0xcd0] sm:$0xff]   ;;  %v16685_v3 = vld [vmem:[%s17685_s5 + $0xc48] sm:$0xff]  }
 0x1b6   : > { %15126 = vmatpush3.bf16.msra.mxu0 %v16638_v4  ;;  %v16683_v1 = vld [vmem:[%s17685_s5 + $0xc10] sm:$0xff]   ;;  %v16686_v4 = vld [vmem:[%s17685_s5 + $0xcc8] sm:$0xff]   ;;  %v16689_v7 = vld [vmem:[%s17685_s5 + $0xc40] sm:$0xff]  }
 0x1b7   : > { %15127 = vmatprep.subr.bf16.mxu0 %v16640_v8  ;;  %15148 = vmatpush3.bf16.msra.mxu1 %v16639_v6  ;;  %v16688_v6 = vld [vmem:[%s17685_s5 + $0xc88] sm:$0xff]   ;;  %v16690_v8 = vld [vmem:[%s17685_s5 + $0xcc0] sm:$0xff]  }
 0x1b8   : > { %15149 = vmatprep.subr.bf16.mxu1 %v16641_v9  ;;  %v16691_v9 = vld [vmem:[%s17685_s5 + $0xc00] sm:$0xff]  }
 0x1ba   : > { %15128 = vmatpush3.bf16.msra.mxu0 %v16642_v10  ;;  %v229_v10 = vld [vmem:[%s19207_s0 + $0x30] sm:$0xff] }
 0x1bb   : > { %15129 = vmatprep.subr.bf16.mxu0 %v16644_v12  ;;  %15150 = vmatpush3.bf16.msra.mxu1 %v16643_v11  ;;  %v16692_v11 = vld [vmem:[%s17685_s5 + $0xc80] sm:$0xff]   ;;  %v2871_v12 = vrot.slane %v229_v10, %v17727_v35 }
 0x1bc   : > { %15151 = vmatprep.subr.bf16.mxu1 %v16645_v13  ;;  %v2864_v13 = vcombine.high %v229_v10, %v229_v10  ;;  %v16730_v10 = vld [vmem:[%s17685_s5 + $0xe70] sm:$0xff]  }
 0x1be   : > { %15130 = vmatpush3.bf16.msra.mxu0 %v16646_v14  ;;  %v16693_v14 = vld [vmem:[%s17685_s5 + $0xd78] sm:$0xff]  }
 0x1bf   : > { %15131 = vmatprep.subr.bf16.mxu0 %v16648_v16  ;;  %15152 = vmatpush3.bf16.msra.mxu1 %v16647_v15  ;;  %v2879_v15 = vcombine.high %v2871_v12, %v2871_v12  ;;  %v2887_v16 = vrot.slane %v2871_v12, %v17727_v35  ;;  %v16731_v12 = vld [vmem:[%s17685_s5 + $0xef0] sm:$0xff]  }
 0x1c0   : > { %15153 = vmatprep.subr.bf16.mxu1 %v16649_v17  ;;  %v16694_v17 = vld [vmem:[%s17685_s5 + $0xdf8] sm:$0xff]  }
 0x1c2   : > { %15132 = vmatpush3.bf16.msra.mxu0 %v16650_v18  ;;  %v18226_v18 = vrot.slane %v2864_v13, %v17727_v35  ;;  %v16732_v13 = vld [vmem:[%s17685_s5 + $0xe30] sm:$0xff]  }
 0x1c3   : > { %15133 = vmatprep.subr.bf16.mxu0 %v16652_v20  ;;  %15154 = vmatpush3.bf16.msra.mxu1 %v16651_v19  ;;  %v16695_v19 = vld [vmem:[%s17685_s5 + $0xd38] sm:$0xff]   ;;  %v2901_v20 = vrot.slane %v2879_v15, %v17727_v35 }
 0x1c4   : > { %15155 = vmatprep.subr.bf16.mxu1 %v16653_v21  ;;  %v16696_v21 = vld [vmem:[%s17685_s5 + $0xdb8] sm:$0xff]  }
 0x1c6   : > { %15134 = vmatpush3.bf16.msra.mxu0 %v16654_v22  ;;  %v2880_v22 = vcombine.high %v18226_v18, %v18226_v18 }
 0x1c7   : > { %15135 = vmatprep.subr.bf16.mxu0 %v16656_v24  ;;  %15156 = vmatpush3.bf16.msra.mxu1 %v16655_v23  ;;  %v2909_v23 = vcombine.high %v2887_v16, %v2887_v16  ;;  %v16697_v24 = vld [vmem:[%s17685_s5 + $0xd70] sm:$0xff]  }
 0x1c8   : > { %15157 = vmatprep.subr.bf16.mxu1 %v16657_v25  ;;  %v2911_v25 = vcombine.high %v2901_v20, %v2901_v20 }
 0x1ca   : > { %15136 = vmatpush3.bf16.msra.mxu0 %v16658_v26 }
 0x1cb   : > { %15165 = vmatprep.subr.bf16.mxu0 %v16661_v29  ;;  %15158 = vmatpush3.bf16.msra.mxu1 %v16659_v27  ;;  %v16698_v27 = vld [vmem:[%s17685_s5 + $0xdf0] sm:$0xff]  }
 0x1cc   : > { %15187 = vmatprep.subr.bf16.mxu1 %v16662_v30  ;;  %v16699_v29 = vld [vmem:[%s17685_s5 + $0xd30] sm:$0xff]  }
 0x1cd   : > { %v14873_v33 = vpop.f32.mrf.mxu0  ;;  %11421 = vmatmul.mubr.bf16.vlgmr.msra.gmra.mxu0 %v2845_v28  ;;  %v2908_v28 = vrot.slane %v2880_v22, %v17727_v35 }
 0x1ce   : > { %v14895_v38 = vpop.f32.mrf.mxu1  ;;  %15166 = vmatpush3.bf16.msra.mxu0 %v16663_v31  ;;  %11461 = vmatmul.mubr.bf16.vlgmr.msra.gmra.mxu1 %v2861_v34 }
 0x1cf   : > { %v14874_v39 = vpop.f32.mrf.mxu0  ;;  %15167 = vmatprep.subr.bf16.mxu0 %v16665_v36  ;;  %15188 = vmatpush3.bf16.msra.mxu1 %v16664_v32  ;;  %v16700_v32 = vld [vmem:[%s17685_s5 + $0xdb0] sm:$0xff]   ;;  %v16701_v36 = vld [vmem:[%s17685_s5 + $0xd68] sm:$0xff]  }
 0x1d0   : > { %v14875_v41 = vadd.f32 %v14874_v39, %v14873_v33  ;;  %v14896_v43 = vpop.f32.mrf.mxu1  ;;  %15189 = vmatprep.subr.bf16.mxu1 %v16666_v37  ;;  %11500 = vmatprep.mubr.bf16.mxu0 %v2901_v20  ;;  %v2912_v33 = vcombine.high %v2908_v28, %v2908_v28  ;;  %v16702_v39 = vld [vmem:[%s17685_s5 + $0xde8] sm:$0xff]  }
 0x1d1   : > { %v14876_v44 = vpop.f32.mrf.mxu0  ;;  %v14897_v47 = vadd.f32 %v14896_v43, %v14895_v38  ;;  %11540 = vmatprep.mubr.bf16.mxu1 %v2911_v25 }
 0x1d2   : > { %v10943_v46 = vadd.f32 %v14875_v41, %v18158_v5  ;;  %v14898_v49 = vpop.f32.mrf.mxu1  ;;  %15168 = vmatpush3.bf16.msra.mxu0 %v16667_v40  ;;  %v16687_v5 = vld [vmem:[%s17685_s5 + $0xc08] sm:$0xff]  }
 0x1d3   : > { %v14877_v50 = vpop.f32.mrf.mxu0  ;;  %15169 = vmatprep.subr.bf16.mxu0 %v16669_v45  ;;  %15190 = vmatpush3.bf16.msra.mxu1 %v16668_v42  ;;  %v16703_v42 = vld [vmem:[%s17685_s5 + $0xd28] sm:$0xff]   ;;  %v16706_v49 = vld [vmem:[%s17685_s5 + $0xde0] sm:$0xff]  }
 0x1d4   : > { %v18195_v52 = vadd.f32 %v14897_v47, %v10943_v46  ;;  %v14899_v54 = vpop.f32.mrf.mxu1  ;;  %15191 = vmatprep.subr.bf16.mxu1 %v16670_v48  ;;  %v16704_v45 = vld [vmem:[%s17685_s5 + $0xda8] sm:$0xff]   ;;  %v16705_v47 = vld [vmem:[%s17685_s5 + $0xd60] sm:$0xff]  }
 0x1d5   : > { %v16707_v50 = vld [vmem:[%s17685_s5 + $0xd20] sm:$0xff]   ;;  %v16711_v54 = vld [vmem:[%s17685_s5 + $0xd18] sm:$0xff]  }
 0x1d6   : > { %15170 = vmatpush3.bf16.msra.mxu0 %v16671_v51  ;;  %v16708_v51 = vld [vmem:[%s17685_s5 + $0xda0] sm:$0xff]  }
 0x1d7   : > { %15171 = vmatprep.subr.bf16.mxu0 %v16673_v55  ;;  %15192 = vmatpush3.bf16.msra.mxu1 %v16672_v53  ;;  %v16710_v53 = vld [vmem:[%s17685_s5 + $0xdd8] sm:$0xff]  }
 0x1d8   : > { %15193 = vmatprep.subr.bf16.mxu1 %v16674_v56  ;;  %v16712_v55 = vld [vmem:[%s17685_s5 + $0xd98] sm:$0xff]   ;;  %v16713_v56 = vld [vmem:[%s17685_s5 + $0xd50] sm:$0xff]  }
 0x1da   : > { %15172 = vmatpush3.bf16.msra.mxu0 %v16675_v57  ;;  %v16714_v57 = vld [vmem:[%s17685_s5 + $0xdd0] sm:$0xff]  }
 0x1db   : > { %15173 = vmatprep.subr.bf16.mxu0 %v16677_v59  ;;  %15194 = vmatpush3.bf16.msra.mxu1 %v16676_v58  ;;  %v16715_v58 = vld [vmem:[%s17685_s5 + $0xd10] sm:$0xff]  }
 0x1dc   : > { %15195 = vmatprep.subr.bf16.mxu1 %v16678_v60  ;;  %v16716_v59 = vld [vmem:[%s17685_s5 + $0xd90] sm:$0xff]   ;;  %v16717_v60 = vld [vmem:[%s17685_s5 + $0xd48] sm:$0xff]  }
 0x1de   : > { %15174 = vmatpush3.bf16.msra.mxu0 %v16679_v61  ;;  %v16718_v61 = vld [vmem:[%s17685_s5 + $0xdc8] sm:$0xff]  }
 0x1df   : > { %15175 = vmatprep.subr.bf16.mxu0 %v16681_v63  ;;  %15196 = vmatpush3.bf16.msra.mxu1 %v16680_v62  ;;  %v16719_v62 = vld [vmem:[%s17685_s5 + $0xd08] sm:$0xff]  }
 0x1e0   : > { %15197 = vmatprep.subr.bf16.mxu1 %v16682_v0  ;;  %v16720_v63 = vld [vmem:[%s17685_s5 + $0xd88] sm:$0xff]   ;;  %v16721_v0 = vld [vmem:[%s17685_s5 + $0xd40] sm:$0xff]  }
 0x1e2   : > { %15176 = vmatpush3.bf16.msra.mxu0 %v16683_v1  ;;  %v16722_v1 = vld [vmem:[%s17685_s5 + $0xdc0] sm:$0xff]  }
 0x1e3   : > { %15177 = vmatprep.subr.bf16.mxu0 %v16685_v3  ;;  %15198 = vmatpush3.bf16.msra.mxu1 %v16684_v2  ;;  %v16723_v2 = vld [vmem:[%s17685_s5 + $0xd00] sm:$0xff]  }
 0x1e4   : > { %15199 = vmatprep.subr.bf16.mxu1 %v16686_v4  ;;  %v16724_v3 = vld [vmem:[%s17685_s5 + $0xd80] sm:$0xff]   ;;  %v2894_v4 = vrot.slane %v18226_v18, %v17727_v35  ;;  %v16734_v18 = vld [vmem:[%s17685_s5 + $0xe68] sm:$0xff]  }
 0x1e6   : > { %15178 = vmatpush3.bf16.msra.mxu0 %v16687_v5  ;;  %v16726_v5 = vld [vmem:[%s17685_s5 + $0xe78] sm:$0xff]  }
 0x1e7   : > { %15179 = vmatprep.subr.bf16.mxu0 %v16689_v7  ;;  %15200 = vmatpush3.bf16.msra.mxu1 %v16688_v6  ;;  %v16727_v6 = vld [vmem:[%s17685_s5 + $0xef8] sm:$0xff]  }
 0x1e8   : > { %15201 = vmatprep.subr.bf16.mxu1 %v16690_v8  ;;  %v16728_v7 = vld [vmem:[%s17685_s5 + $0xe38] sm:$0xff]  }
 0x1e9   : > { %v16729_v8 = vld [vmem:[%s17685_s5 + $0xeb8] sm:$0xff]  }
 0x1ea   : > { %15180 = vmatpush3.bf16.msra.mxu0 %v16691_v9  ;;  %v2910_v9 = vcombine.high %v2894_v4, %v2894_v4 }
 0x1eb   : > { %15209 = vmatprep.subr.bf16.mxu0 %v16693_v14  ;;  %15202 = vmatpush3.bf16.msra.mxu1 %v16692_v11 }
 0x1ec   : > { %15231 = vmatprep.subr.bf16.mxu1 %v16694_v17 }
 0x1ed   : > { %v14917_v26 = vpop.f32.mrf.mxu0  ;;  %11501 = vmatmul.mubr.bf16.vlgmr.msra.gmra.mxu0 %v2887_v16  ;;  %v16733_v16 = vld [vmem:[%s17685_s5 + $0xeb0] sm:$0xff]  }
 0x1ee   : > { %v14939_v30 = vpop.f32.mrf.mxu1  ;;  %15210 = vmatpush3.bf16.msra.mxu0 %v16695_v19  ;;  %11541 = vmatmul.mubr.bf16.vlgmr.msra.gmra.mxu1 %v2909_v23 }
 0x1ef   : > { %v14918_v31 = vpop.f32.mrf.mxu0  ;;  %15211 = vmatprep.subr.bf16.mxu0 %v16697_v24  ;;  %15232 = vmatpush3.bf16.msra.mxu1 %v16696_v21  ;;  %v16735_v21 = vld [vmem:[%s17685_s5 + $0xee8] sm:$0xff]  }
 0x1f0   : > { %v14919_v34 = vadd.f32 %v14918_v31, %v14917_v26  ;;  %v14940_v37 = vpop.f32.mrf.mxu1  ;;  %11580 = vmatprep.mubr.bf16.mxu0 %v2908_v28  ;;  %15233 = vmatprep.subr.bf16.mxu1 %v16698_v27  ;;  %v16736_v24 = vld [vmem:[%s17685_s5 + $0xe28] sm:$0xff]   ;;  %v16739_v31 = vld [vmem:[%s17685_s5 + $0xee0] sm:$0xff]  }
 0x1f1   : > { %v14920_v38 = vpop.f32.mrf.mxu0  ;;  %v14941_v41 = vadd.f32 %v14940_v37, %v14939_v30  ;;  %11620 = vmatprep.mubr.bf16.mxu1 %v2912_v33  ;;  %v16737_v27 = vld [vmem:[%s17685_s5 + $0xea8] sm:$0xff]   ;;  %v16741_v33 = vld [vmem:[%s17685_s5 + $0xea0] sm:$0xff]   ;;  %v16744_v37 = vld [vmem:[%s17685_s5 + $0xe18] sm:$0xff]  }
 0x1f2   : > { %v11023_v40 = vadd.f32 %v14919_v34, %v18195_v52  ;;  %v14942_v43 = vpop.f32.mrf.mxu1  ;;  %15212 = vmatpush3.bf16.msra.mxu0 %v16699_v29  ;;  %v16709_v52 = vld [vmem:[%s17685_s5 + $0xd58] sm:$0xff]   ;;  %v16738_v29 = vld [vmem:[%s17685_s5 + $0xe60] sm:$0xff]  }
 0x1f3   : > { %v14921_v44 = vpop.f32.mrf.mxu0  ;;  %15213 = vmatprep.subr.bf16.mxu0 %v16701_v36  ;;  %15234 = vmatpush3.bf16.msra.mxu1 %v16700_v32  ;;  %v16740_v32 = vld [vmem:[%s17685_s5 + $0xe20] sm:$0xff]   ;;  %v16742_v34 = vld [vmem:[%s17685_s5 + $0xe58] sm:$0xff]   ;;  %v16750_v43 = vld [vmem:[%s17685_s5 + $0xe48] sm:$0xff]  }
 0x1f4   : > { %v18243_v46 = vadd.f32 %v14941_v41, %v11023_v40  ;;  %v14943_v48 = vpop.f32.mrf.mxu1  ;;  %15235 = vmatprep.subr.bf16.mxu1 %v16702_v39  ;;  %v16743_v36 = vld [vmem:[%s17685_s5 + $0xed8] sm:$0xff]   ;;  %v16746_v39 = vld [vmem:[%s17685_s5 + $0xe50] sm:$0xff]   ;;  %v16751_v44 = vld [vmem:[%s17685_s5 + $0xec8] sm:$0xff]  }
 0x1f5   : > { %v16745_v38 = vld [vmem:[%s17685_s5 + $0xe98] sm:$0xff]   ;;  %v16747_v40 = vld [vmem:[%s17685_s5 + $0xed0] sm:$0xff]   ;;  %v16755_v48 = vld [vmem:[%s17685_s5 + $0xec0] sm:$0xff]  }
 0x1f6   : > { %15214 = vmatpush3.bf16.msra.mxu0 %v16703_v42  ;;  %v16748_v41 = vld [vmem:[%s17685_s5 + $0xe10] sm:$0xff]  }
 0x1f7   : > { %15215 = vmatprep.subr.bf16.mxu0 %v16705_v47  ;;  %15236 = vmatpush3.bf16.msra.mxu1 %v16704_v45  ;;  %v16749_v42 = vld [vmem:[%s17685_s5 + $0xe90] sm:$0xff]   ;;  %v16752_v45 = vld [vmem:[%s17685_s5 + $0xe08] sm:$0xff]   ;;  %v16754_v47 = vld [vmem:[%s17685_s5 + $0xe40] sm:$0xff]  }
 0x1f8   : > { %15237 = vmatprep.subr.bf16.mxu1 %v16706_v49  ;;  %v16756_v49 = vld [vmem:[%s17685_s5 + $0xe00] sm:$0xff]  }
 0x1fa   : > { %15216 = vmatpush3.bf16.msra.mxu0 %v16707_v50  ;;  %v230_v50 = vld [vmem:[%s19207_s0 + $0x38] sm:$0xff] }
 0x1fb   : > { %15217 = vmatprep.subr.bf16.mxu0 %v16709_v52  ;;  %15238 = vmatpush3.bf16.msra.mxu1 %v16708_v51  ;;  %v16757_v51 = vld [vmem:[%s17685_s5 + $0xe80] sm:$0xff]   ;;  %v2920_v52 = vrot.slane %v230_v50, %v17727_v35 }
 0x1fc   : > { %15239 = vmatprep.subr.bf16.mxu1 %v16710_v53  ;;  %v2913_v53 = vcombine.high %v230_v50, %v230_v50  ;;  %v16795_v50 = vld [vmem:[%s17685_s5 + $0x1070] sm:$0xff]  }
 0x1fe   : > { %15218 = vmatpush3.bf16.msra.mxu0 %v16711_v54  ;;  %v16758_v54 = vld [vmem:[%s17685_s5 + $0xf78] sm:$0xff]  }
 0x1ff   : > { %15219 = vmatprep.subr.bf16.mxu0 %v16713_v56  ;;  %15240 = vmatpush3.bf16.msra.mxu1 %v16712_v55  ;;  %v2928_v55 = vcombine.high %v2920_v52, %v2920_v52  ;;  %v2936_v56 = vrot.slane %v2920_v52, %v17727_v35  ;;  %v16796_v52 = vld [vmem:[%s17685_s5 + $0x10f0] sm:$0xff]  }
 0x200   : > { %15241 = vmatprep.subr.bf16.mxu1 %v16714_v57  ;;  %v16759_v57 = vld [vmem:[%s17685_s5 + $0xff8] sm:$0xff]  }
 0x202   : > { %15220 = vmatpush3.bf16.msra.mxu0 %v16715_v58  ;;  %v18310_v58 = vrot.slane %v2913_v53, %v17727_v35  ;;  %v16797_v53 = vld [vmem:[%s17685_s5 + $0x1030] sm:$0xff]  }
 0x203   : > { %15221 = vmatprep.subr.bf16.mxu0 %v16717_v60  ;;  %15242 = vmatpush3.bf16.msra.mxu1 %v16716_v59  ;;  %v16760_v59 = vld [vmem:[%s17685_s5 + $0xf38] sm:$0xff]   ;;  %v2950_v60 = vrot.slane %v2928_v55, %v17727_v35 }
 0x204   : > { %15243 = vmatprep.subr.bf16.mxu1 %v16718_v61  ;;  %v16761_v61 = vld [vmem:[%s17685_s5 + $0xfb8] sm:$0xff]  }
 0x206   : > { %15222 = vmatpush3.bf16.msra.mxu0 %v16719_v62  ;;  %v2929_v62 = vcombine.high %v18310_v58, %v18310_v58 }
 0x207   : > { %15223 = vmatprep.subr.bf16.mxu0 %v16721_v0  ;;  %15244 = vmatpush3.bf16.msra.mxu1 %v16720_v63  ;;  %v2958_v63 = vcombine.high %v2936_v56, %v2936_v56  ;;  %v16762_v0 = vld [vmem:[%s17685_s5 + $0xf70] sm:$0xff]  }
 0x208   : > { %15245 = vmatprep.subr.bf16.mxu1 %v16722_v1  ;;  %v2960_v1 = vcombine.high %v2950_v60, %v2950_v60 }
 0x20a   : > { %15224 = vmatpush3.bf16.msra.mxu0 %v16723_v2 }
 0x20b   : > { %15253 = vmatprep.subr.bf16.mxu0 %v16726_v5  ;;  %15246 = vmatpush3.bf16.msra.mxu1 %v16724_v3  ;;  %v16763_v3 = vld [vmem:[%s17685_s5 + $0xff0] sm:$0xff]  }
 0x20c   : > { %15275 = vmatprep.subr.bf16.mxu1 %v16727_v6  ;;  %v16764_v5 = vld [vmem:[%s17685_s5 + $0xf30] sm:$0xff]  }
 0x20d   : > { %v14961_v11 = vpop.f32.mrf.mxu0  ;;  %11581 = vmatmul.mubr.bf16.vlgmr.msra.gmra.mxu0 %v2894_v4  ;;  %v2957_v4 = vrot.slane %v2929_v62, %v17727_v35 }
 0x20e   : > { %v14983_v14 = vpop.f32.mrf.mxu1  ;;  %15254 = vmatpush3.bf16.msra.mxu0 %v16728_v7  ;;  %11621 = vmatmul.mubr.bf16.vlgmr.msra.gmra.mxu1 %v2910_v9 }
 0x20f   : > { %v14962_v15 = vpop.f32.mrf.mxu0  ;;  %15255 = vmatprep.subr.bf16.mxu0 %v16730_v10  ;;  %15276 = vmatpush3.bf16.msra.mxu1 %v16729_v8  ;;  %v16765_v8 = vld [vmem:[%s17685_s5 + $0xfb0] sm:$0xff]   ;;  %v2961_v9 = vcombine.high %v2957_v4, %v2957_v4 }
 0x210   : > { %v14963_v17 = vadd.f32 %v14962_v15, %v14961_v11  ;;  %v14984_v19 = vpop.f32.mrf.mxu1  ;;  %15277 = vmatprep.subr.bf16.mxu1 %v16731_v12  ;;  %11660 = vmatprep.mubr.bf16.mxu0 %v2950_v60  ;;  %v16766_v11 = vld [vmem:[%s17685_s5 + $0xf68] sm:$0xff]  }
 0x211   : > { %v14964_v20 = vpop.f32.mrf.mxu0  ;;  %v14985_v23 = vadd.f32 %v14984_v19, %v14983_v14  ;;  %11700 = vmatprep.mubr.bf16.mxu1 %v2960_v1  ;;  %v16767_v14 = vld [vmem:[%s17685_s5 + $0xfe8] sm:$0xff]  }
 0x212   : > { %v11103_v22 = vadd.f32 %v14963_v17, %v18243_v46  ;;  %v14986_v25 = vpop.f32.mrf.mxu1  ;;  %15256 = vmatpush3.bf16.msra.mxu0 %v16732_v13  ;;  %v16753_v46 = vld [vmem:[%s17685_s5 + $0xe88] sm:$0xff]  }
 0x213   : > { %v14965_v26 = vpop.f32.mrf.mxu0  ;;  %15257 = vmatprep.subr.bf16.mxu0 %v16734_v18  ;;  %15278 = vmatpush3.bf16.msra.mxu1 %v16733_v16  ;;  %v16768_v17 = vld [vmem:[%s17685_s5 + $0xf28] sm:$0xff]   ;;  %v16772_v25 = vld [vmem:[%s17685_s5 + $0xf20] sm:$0xff]  }
 0x214   : > { %v18280_v28 = vadd.f32 %v14985_v23, %v11103_v22  ;;  %v14987_v30 = vpop.f32.mrf.mxu1  ;;  %15279 = vmatprep.subr.bf16.mxu1 %v16735_v21  ;;  %v16769_v20 = vld [vmem:[%s17685_s5 + $0xfa8] sm:$0xff]   ;;  %v16770_v22 = vld [vmem:[%s17685_s5 + $0xf60] sm:$0xff]  }
 0x215   : > { %v16773_v26 = vld [vmem:[%s17685_s5 + $0xfa0] sm:$0xff]   ;;  %v16777_v30 = vld [vmem:[%s17685_s5 + $0xf98] sm:$0xff]  }
 0x216   : > { %15258 = vmatpush3.bf16.msra.mxu0 %v16736_v24  ;;  %v16771_v24 = vld [vmem:[%s17685_s5 + $0xfe0] sm:$0xff]  }
 0x217   : > { %15259 = vmatprep.subr.bf16.mxu0 %v16738_v29  ;;  %15280 = vmatpush3.bf16.msra.mxu1 %v16737_v27  ;;  %v16774_v27 = vld [vmem:[%s17685_s5 + $0xf58] sm:$0xff]  }
 0x218   : > { %15281 = vmatprep.subr.bf16.mxu1 %v16739_v31  ;;  %v16776_v29 = vld [vmem:[%s17685_s5 + $0xf18] sm:$0xff]   ;;  %v16778_v31 = vld [vmem:[%s17685_s5 + $0xf50] sm:$0xff]  }
 0x21a   : > { %15260 = vmatpush3.bf16.msra.mxu0 %v16740_v32  ;;  %v16779_v32 = vld [vmem:[%s17685_s5 + $0xfd0] sm:$0xff]  }
 0x21b   : > { %15261 = vmatprep.subr.bf16.mxu0 %v16742_v34  ;;  %15282 = vmatpush3.bf16.msra.mxu1 %v16741_v33  ;;  %v16780_v33 = vld [vmem:[%s17685_s5 + $0xf10] sm:$0xff]  }
 0x21c   : > { %15283 = vmatprep.subr.bf16.mxu1 %v16743_v36  ;;  %v16781_v34 = vld [vmem:[%s17685_s5 + $0xf90] sm:$0xff]   ;;  %v16782_v36 = vld [vmem:[%s17685_s5 + $0xf48] sm:$0xff]  }
 0x21e   : > { %15262 = vmatpush3.bf16.msra.mxu0 %v16744_v37  ;;  %v16783_v37 = vld [vmem:[%s17685_s5 + $0xfc8] sm:$0xff]  }
 0x21f   : > { %15263 = vmatprep.subr.bf16.mxu0 %v16746_v39  ;;  %15284 = vmatpush3.bf16.msra.mxu1 %v16745_v38  ;;  %v16784_v38 = vld [vmem:[%s17685_s5 + $0xf08] sm:$0xff]  }
 0x220   : > { %15285 = vmatprep.subr.bf16.mxu1 %v16747_v40  ;;  %v16785_v39 = vld [vmem:[%s17685_s5 + $0xf88] sm:$0xff]   ;;  %v16786_v40 = vld [vmem:[%s17685_s5 + $0xf40] sm:$0xff]  }
 0x222   : > { %15264 = vmatpush3.bf16.msra.mxu0 %v16748_v41  ;;  %v16787_v41 = vld [vmem:[%s17685_s5 + $0xfc0] sm:$0xff]  }
 0x223   : > { %15265 = vmatprep.subr.bf16.mxu0 %v16750_v43  ;;  %15286 = vmatpush3.bf16.msra.mxu1 %v16749_v42  ;;  %v16788_v42 = vld [vmem:[%s17685_s5 + $0xf00] sm:$0xff]  }
 0x224   : > { %15287 = vmatprep.subr.bf16.mxu1 %v16751_v44  ;;  %v16789_v43 = vld [vmem:[%s17685_s5 + $0xf80] sm:$0xff]   ;;  %v2943_v44 = vrot.slane %v18310_v58, %v17727_v35  ;;  %v16799_v58 = vld [vmem:[%s17685_s5 + $0x1068] sm:$0xff]  }
 0x226   : > { %15266 = vmatpush3.bf16.msra.mxu0 %v16752_v45  ;;  %v16791_v45 = vld [vmem:[%s17685_s5 + $0x1078] sm:$0xff]  }
 0x227   : > { %15267 = vmatprep.subr.bf16.mxu0 %v16754_v47  ;;  %15288 = vmatpush3.bf16.msra.mxu1 %v16753_v46  ;;  %v16792_v46 = vld [vmem:[%s17685_s5 + $0x10f8] sm:$0xff]  }
 0x228   : > { %15289 = vmatprep.subr.bf16.mxu1 %v16755_v48  ;;  %v16793_v47 = vld [vmem:[%s17685_s5 + $0x1038] sm:$0xff]  }
 0x229   : > { %v16794_v48 = vld [vmem:[%s17685_s5 + $0x10b8] sm:$0xff]  }
 0x22a   : > { %15268 = vmatpush3.bf16.msra.mxu0 %v16756_v49  ;;  %v2959_v49 = vcombine.high %v2943_v44, %v2943_v44 }
 0x22b   : > { %15297 = vmatprep.subr.bf16.mxu0 %v16758_v54  ;;  %15290 = vmatpush3.bf16.msra.mxu1 %v16757_v51 }
 0x22c   : > { %15319 = vmatprep.subr.bf16.mxu1 %v16759_v57 }
 0x22d   : > { %v15005_v2 = vpop.f32.mrf.mxu0  ;;  %11661 = vmatmul.mubr.bf16.vlgmr.msra.gmra.mxu0 %v2936_v56  ;;  %v16798_v56 = vld [vmem:[%s17685_s5 + $0x10b0] sm:$0xff]  }
 0x22e   : > { %v15027_v6 = vpop.f32.mrf.mxu1  ;;  %15298 = vmatpush3.bf16.msra.mxu0 %v16760_v59  ;;  %11701 = vmatmul.mubr.bf16.vlgmr.msra.gmra.mxu1 %v2958_v63 }
 0x22f   : > { %v15006_v7 = vpop.f32.mrf.mxu0  ;;  %15299 = vmatprep.subr.bf16.mxu0 %v16762_v0  ;;  %15320 = vmatpush3.bf16.msra.mxu1 %v16761_v61  ;;  %v16800_v61 = vld [vmem:[%s17685_s5 + $0x10e8] sm:$0xff]  }
 0x230   : > { %v15007_v10 = vadd.f32 %v15006_v7, %v15005_v2  ;;  %v15028_v12 = vpop.f32.mrf.mxu1  ;;  %11740 = vmatprep.mubr.bf16.mxu0 %v2957_v4  ;;  %15321 = vmatprep.subr.bf16.mxu1 %v16763_v3  ;;  %v16801_v0 = vld [vmem:[%s17685_s5 + $0x1028] sm:$0xff]   ;;  %v16804_v7 = vld [vmem:[%s17685_s5 + $0x10e0] sm:$0xff]  }
 0x231   : > { %v15008_v13 = vpop.f32.mrf.mxu0  ;;  %v15029_v16 = vadd.f32 %v15028_v12, %v15027_v6  ;;  %11780 = vmatprep.mubr.bf16.mxu1 %v2961_v9  ;;  %v16802_v3 = vld [vmem:[%s17685_s5 + $0x10a8] sm:$0xff]   ;;  %v16806_v9 = vld [vmem:[%s17685_s5 + $0x10a0] sm:$0xff]   ;;  %v16809_v12 = vld [vmem:[%s17685_s5 + $0x1018] sm:$0xff]  }
 0x232   : > { %v11183_v15 = vadd.f32 %v15007_v10, %v18280_v28  ;;  %v15030_v18 = vpop.f32.mrf.mxu1  ;;  %15300 = vmatpush3.bf16.msra.mxu0 %v16764_v5  ;;  %v16775_v28 = vld [vmem:[%s17685_s5 + $0xfd8] sm:$0xff]   ;;  %v16803_v5 = vld [vmem:[%s17685_s5 + $0x1060] sm:$0xff]  }
 0x233   : > { %v15009_v19 = vpop.f32.mrf.mxu0  ;;  %15301 = vmatprep.subr.bf16.mxu0 %v16766_v11  ;;  %15322 = vmatpush3.bf16.msra.mxu1 %v16765_v8  ;;  %v16805_v8 = vld [vmem:[%s17685_s5 + $0x1020] sm:$0xff]   ;;  %v16807_v10 = vld [vmem:[%s17685_s5 + $0x1058] sm:$0xff]   ;;  %v16815_v18 = vld [vmem:[%s17685_s5 + $0x1048] sm:$0xff]  }
 0x234   : > { %v18327_v21 = vadd.f32 %v15029_v16, %v11183_v15  ;;  %v15031_v23 = vpop.f32.mrf.mxu1  ;;  %15323 = vmatprep.subr.bf16.mxu1 %v16767_v14  ;;  %v16808_v11 = vld [vmem:[%s17685_s5 + $0x10d8] sm:$0xff]   ;;  %v16811_v14 = vld [vmem:[%s17685_s5 + $0x1050] sm:$0xff]   ;;  %v16816_v19 = vld [vmem:[%s17685_s5 + $0x10c8] sm:$0xff]  }
 0x235   : > { %v16810_v13 = vld [vmem:[%s17685_s5 + $0x1098] sm:$0xff]   ;;  %v16812_v15 = vld [vmem:[%s17685_s5 + $0x10d0] sm:$0xff]   ;;  %v16820_v23 = vld [vmem:[%s17685_s5 + $0x10c0] sm:$0xff]  }
 0x236   : > { %15302 = vmatpush3.bf16.msra.mxu0 %v16768_v17  ;;  %v16813_v16 = vld [vmem:[%s17685_s5 + $0x1010] sm:$0xff]  }
 0x237   : > { %15303 = vmatprep.subr.bf16.mxu0 %v16770_v22  ;;  %15324 = vmatpush3.bf16.msra.mxu1 %v16769_v20  ;;  %v16814_v17 = vld [vmem:[%s17685_s5 + $0x1090] sm:$0xff]   ;;  %v16817_v20 = vld [vmem:[%s17685_s5 + $0x1008] sm:$0xff]   ;;  %v16819_v22 = vld [vmem:[%s17685_s5 + $0x1040] sm:$0xff]  }
 0x238   : > { %15325 = vmatprep.subr.bf16.mxu1 %v16771_v24  ;;  %v16821_v24 = vld [vmem:[%s17685_s5 + $0x1000] sm:$0xff]  }
 0x23a   : > { %15304 = vmatpush3.bf16.msra.mxu0 %v16772_v25  ;;  %v231_v25 = vld [vmem:[%s19207_s0 + $0x40] sm:$0xff] }
 0x23b   : > { %15305 = vmatprep.subr.bf16.mxu0 %v16774_v27  ;;  %15326 = vmatpush3.bf16.msra.mxu1 %v16773_v26  ;;  %v2969_v26 = vrot.slane %v231_v25, %v17727_v35  ;;  %v16823_v27 = vld [vmem:[%s17685_s5 + $0x1178] sm:$0xff]  }
 0x23c   : > { %15327 = vmatprep.subr.bf16.mxu1 %v16775_v28  ;;  %v2962_v28 = vcombine.high %v231_v25, %v231_v25  ;;  %v16860_v25 = vld [vmem:[%s17685_s5 + $0x1270] sm:$0xff]  }
 0x23e   : > { %15306 = vmatpush3.bf16.msra.mxu0 %v16776_v29  ;;  %v16822_v29 = vld [vmem:[%s17685_s5 + $0x1080] sm:$0xff]  }
 0x23f   : > { %15307 = vmatprep.subr.bf16.mxu0 %v16778_v31  ;;  %15328 = vmatpush3.bf16.msra.mxu1 %v16777_v30  ;;  %v2977_v30 = vcombine.high %v2969_v26, %v2969_v26  ;;  %v2985_v31 = vrot.slane %v2969_v26, %v17727_v35 }
 0x240   : > { %15329 = vmatprep.subr.bf16.mxu1 %v16779_v32  ;;  %v16824_v32 = vld [vmem:[%s17685_s5 + $0x11f8] sm:$0xff]  }
 0x242   : > { %15308 = vmatpush3.bf16.msra.mxu0 %v16780_v33  ;;  %v18394_v33 = vrot.slane %v2962_v28, %v17727_v35  ;;  %v16862_v28 = vld [vmem:[%s17685_s5 + $0x1230] sm:$0xff]  }
 0x243   : > { %15309 = vmatprep.subr.bf16.mxu0 %v16782_v36  ;;  %15330 = vmatpush3.bf16.msra.mxu1 %v16781_v34  ;;  %v16825_v34 = vld [vmem:[%s17685_s5 + $0x1138] sm:$0xff]   ;;  %v2999_v36 = vrot.slane %v2977_v30, %v17727_v35 }
 0x244   : > { %15331 = vmatprep.subr.bf16.mxu1 %v16783_v37  ;;  %v16826_v37 = vld [vmem:[%s17685_s5 + $0x11b8] sm:$0xff]  }
 0x246   : > { %15310 = vmatpush3.bf16.msra.mxu0 %v16784_v38  ;;  %v2978_v38 = vcombine.high %v18394_v33, %v18394_v33 }
 0x247   : > { %15311 = vmatprep.subr.bf16.mxu0 %v16786_v40  ;;  %15332 = vmatpush3.bf16.msra.mxu1 %v16785_v39  ;;  %v3007_v39 = vcombine.high %v2985_v31, %v2985_v31  ;;  %v16827_v40 = vld [vmem:[%s17685_s5 + $0x1170] sm:$0xff]  }
 0x248   : > { %15333 = vmatprep.subr.bf16.mxu1 %v16787_v41  ;;  %v3009_v41 = vcombine.high %v2999_v36, %v2999_v36 }
 0x24a   : > { %15312 = vmatpush3.bf16.msra.mxu0 %v16788_v42 }
 0x24b   : > { %15341 = vmatprep.subr.bf16.mxu0 %v16791_v45  ;;  %15334 = vmatpush3.bf16.msra.mxu1 %v16789_v43  ;;  %v16828_v43 = vld [vmem:[%s17685_s5 + $0x11f0] sm:$0xff]  }
 0x24c   : > { %15363 = vmatprep.subr.bf16.mxu1 %v16792_v46  ;;  %v16829_v45 = vld [vmem:[%s17685_s5 + $0x1130] sm:$0xff]  }
 0x24d   : > { %v15049_v51 = vpop.f32.mrf.mxu0  ;;  %11741 = vmatmul.mubr.bf16.vlgmr.msra.gmra.mxu0 %v2943_v44  ;;  %v3006_v44 = vrot.slane %v2978_v38, %v17727_v35 }
 0x24e   : > { %v15071_v54 = vpop.f32.mrf.mxu1  ;;  %15342 = vmatpush3.bf16.msra.mxu0 %v16793_v47  ;;  %11781 = vmatmul.mubr.bf16.vlgmr.msra.gmra.mxu1 %v2959_v49 }
 0x24f   : > { %v15050_v55 = vpop.f32.mrf.mxu0  ;;  %15343 = vmatprep.subr.bf16.mxu0 %v16795_v50  ;;  %15364 = vmatpush3.bf16.msra.mxu1 %v16794_v48  ;;  %v16830_v48 = vld [vmem:[%s17685_s5 + $0x11b0] sm:$0xff]   ;;  %v3010_v49 = vcombine.high %v3006_v44, %v3006_v44 }
 0x250   : > { %v15051_v57 = vadd.f32 %v15050_v55, %v15049_v51  ;;  %v15072_v59 = vpop.f32.mrf.mxu1  ;;  %15365 = vmatprep.subr.bf16.mxu1 %v16796_v52  ;;  %11820 = vmatprep.mubr.bf16.mxu0 %v2999_v36  ;;  %v16831_v51 = vld [vmem:[%s17685_s5 + $0x1168] sm:$0xff]  }
 0x251   : > { %v15052_v60 = vpop.f32.mrf.mxu0  ;;  %v15073_v63 = vadd.f32 %v15072_v59, %v15071_v54  ;;  %11860 = vmatprep.mubr.bf16.mxu1 %v3009_v41  ;;  %v16832_v54 = vld [vmem:[%s17685_s5 + $0x11e8] sm:$0xff]  }
 0x252   : > { %v11263_v62 = vadd.f32 %v15051_v57, %v18327_v21  ;;  %v15074_v1 = vpop.f32.mrf.mxu1  ;;  %15344 = vmatpush3.bf16.msra.mxu0 %v16797_v53  ;;  %v16818_v21 = vld [vmem:[%s17685_s5 + $0x1088] sm:$0xff]  }
 0x253   : > { %v15053_v2 = vpop.f32.mrf.mxu0  ;;  %15345 = vmatprep.subr.bf16.mxu0 %v16799_v58  ;;  %15366 = vmatpush3.bf16.msra.mxu1 %v16798_v56  ;;  %v16833_v57 = vld [vmem:[%s17685_s5 + $0x1128] sm:$0xff]   ;;  %v16837_v1 = vld [vmem:[%s17685_s5 + $0x1120] sm:$0xff]  }
 0x254   : > { %v18364_v4 = vadd.f32 %v15073_v63, %v11263_v62  ;;  %v15075_v6 = vpop.f32.mrf.mxu1  ;;  %15367 = vmatprep.subr.bf16.mxu1 %v16800_v61  ;;  %v16834_v60 = vld [vmem:[%s17685_s5 + $0x11a8] sm:$0xff]   ;;  %v16835_v62 = vld [vmem:[%s17685_s5 + $0x1160] sm:$0xff]  }
 0x255   : > { %v16838_v2 = vld [vmem:[%s17685_s5 + $0x11a0] sm:$0xff]   ;;  %v16842_v6 = vld [vmem:[%s17685_s5 + $0x1198] sm:$0xff]  }
 0x256   : > { %15346 = vmatpush3.bf16.msra.mxu0 %v16801_v0  ;;  %v16836_v0 = vld [vmem:[%s17685_s5 + $0x11e0] sm:$0xff]  }
 0x257   : > { %15347 = vmatprep.subr.bf16.mxu0 %v16803_v5  ;;  %15368 = vmatpush3.bf16.msra.mxu1 %v16802_v3  ;;  %v16839_v3 = vld [vmem:[%s17685_s5 + $0x1158] sm:$0xff]  }
 0x258   : > { %15369 = vmatprep.subr.bf16.mxu1 %v16804_v7  ;;  %v16841_v5 = vld [vmem:[%s17685_s5 + $0x1118] sm:$0xff]   ;;  %v16843_v7 = vld [vmem:[%s17685_s5 + $0x1150] sm:$0xff]  }
 0x25a   : > { %15348 = vmatpush3.bf16.msra.mxu0 %v16805_v8  ;;  %v16844_v8 = vld [vmem:[%s17685_s5 + $0x11d0] sm:$0xff]  }
 0x25b   : > { %15349 = vmatprep.subr.bf16.mxu0 %v16807_v10  ;;  %15370 = vmatpush3.bf16.msra.mxu1 %v16806_v9  ;;  %v16845_v9 = vld [vmem:[%s17685_s5 + $0x1110] sm:$0xff]  }
 0x25c   : > { %15371 = vmatprep.subr.bf16.mxu1 %v16808_v11  ;;  %v16846_v10 = vld [vmem:[%s17685_s5 + $0x1190] sm:$0xff]   ;;  %v16847_v11 = vld [vmem:[%s17685_s5 + $0x1148] sm:$0xff]  }
 0x25e   : > { %15350 = vmatpush3.bf16.msra.mxu0 %v16809_v12  ;;  %v16848_v12 = vld [vmem:[%s17685_s5 + $0x11c8] sm:$0xff]  }
 0x25f   : > { %15351 = vmatprep.subr.bf16.mxu0 %v16811_v14  ;;  %15372 = vmatpush3.bf16.msra.mxu1 %v16810_v13  ;;  %v16849_v13 = vld [vmem:[%s17685_s5 + $0x1108] sm:$0xff]  }
 0x260   : > { %15373 = vmatprep.subr.bf16.mxu1 %v16812_v15  ;;  %v16850_v14 = vld [vmem:[%s17685_s5 + $0x1188] sm:$0xff]   ;;  %v16851_v15 = vld [vmem:[%s17685_s5 + $0x1140] sm:$0xff]  }
 0x262   : > { %15352 = vmatpush3.bf16.msra.mxu0 %v16813_v16  ;;  %v16852_v16 = vld [vmem:[%s17685_s5 + $0x11c0] sm:$0xff]  }
 0x263   : > { %15353 = vmatprep.subr.bf16.mxu0 %v16815_v18  ;;  %15374 = vmatpush3.bf16.msra.mxu1 %v16814_v17  ;;  %v16853_v17 = vld [vmem:[%s17685_s5 + $0x1100] sm:$0xff]  }
 0x264   : > { %15375 = vmatprep.subr.bf16.mxu1 %v16816_v19  ;;  %v16854_v18 = vld [vmem:[%s17685_s5 + $0x1180] sm:$0xff]   ;;  %v2992_v19 = vrot.slane %v18394_v33, %v17727_v35  ;;  %v16864_v33 = vld [vmem:[%s17685_s5 + $0x1268] sm:$0xff]  }
 0x266   : > { %15354 = vmatpush3.bf16.msra.mxu0 %v16817_v20  ;;  %v16856_v20 = vld [vmem:[%s17685_s5 + $0x1278] sm:$0xff]  }
 0x267   : > { %15355 = vmatprep.subr.bf16.mxu0 %v16819_v22  ;;  %15376 = vmatpush3.bf16.msra.mxu1 %v16818_v21  ;;  %v16857_v21 = vld [vmem:[%s17685_s5 + $0x12f8] sm:$0xff]  }
 0x268   : > { %15377 = vmatprep.subr.bf16.mxu1 %v16820_v23  ;;  %v16858_v22 = vld [vmem:[%s17685_s5 + $0x1238] sm:$0xff]  }
 0x269   : > { %v16859_v23 = vld [vmem:[%s17685_s5 + $0x12b8] sm:$0xff]  }
 0x26a   : > { %15356 = vmatpush3.bf16.msra.mxu0 %v16821_v24  ;;  %v3008_v24 = vcombine.high %v2992_v19, %v2992_v19 }
 0x26b   : > { %15385 = vmatprep.subr.bf16.mxu0 %v16823_v27  ;;  %15378 = vmatpush3.bf16.msra.mxu1 %v16822_v29  ;;  %v16861_v27 = vld [vmem:[%s17685_s5 + $0x12f0] sm:$0xff]  }
 0x26c   : > { %15407 = vmatprep.subr.bf16.mxu1 %v16824_v32 }
 0x26d   : > { %v15093_v42 = vpop.f32.mrf.mxu0  ;;  %11821 = vmatmul.mubr.bf16.vlgmr.msra.gmra.mxu0 %v2985_v31  ;;  %v16863_v31 = vld [vmem:[%s17685_s5 + $0x12b0] sm:$0xff]  }
 0x26e   : > { %v15115_v46 = vpop.f32.mrf.mxu1  ;;  %15386 = vmatpush3.bf16.msra.mxu0 %v16825_v34  ;;  %11861 = vmatmul.mubr.bf16.vlgmr.msra.gmra.mxu1 %v3007_v39 }
 0x26f   : > { %v15094_v47 = vpop.f32.mrf.mxu0  ;;  %15387 = vmatprep.subr.bf16.mxu0 %v16827_v40  ;;  %15408 = vmatpush3.bf16.msra.mxu1 %v16826_v37  ;;  %v16865_v37 = vld [vmem:[%s17685_s5 + $0x12e8] sm:$0xff]  }
 0x270   : > { %v15095_v50 = vadd.f32 %v15094_v47, %v15093_v42  ;;  %v15116_v52 = vpop.f32.mrf.mxu1  ;;  %11900 = vmatprep.mubr.bf16.mxu0 %v3006_v44  ;;  %15409 = vmatprep.subr.bf16.mxu1 %v16828_v43  ;;  %v16866_v40 = vld [vmem:[%s17685_s5 + $0x1228] sm:$0xff]   ;;  %v16869_v47 = vld [vmem:[%s17685_s5 + $0x12e0] sm:$0xff]  }
 0x271   : > { %v15096_v53 = vpop.f32.mrf.mxu0  ;;  %v15117_v56 = vadd.f32 %v15116_v52, %v15115_v46  ;;  %11940 = vmatprep.mubr.bf16.mxu1 %v3010_v49  ;;  %v16867_v43 = vld [vmem:[%s17685_s5 + $0x12a8] sm:$0xff]   ;;  %v16871_v49 = vld [vmem:[%s17685_s5 + $0x12a0] sm:$0xff]   ;;  %v16874_v52 = vld [vmem:[%s17685_s5 + $0x1218] sm:$0xff]  }
 0x272   : > { %v11343_v55 = vadd.f32 %v15095_v50, %v18364_v4  ;;  %v15118_v58 = vpop.f32.mrf.mxu1  ;;  %15388 = vmatpush3.bf16.msra.mxu0 %v16829_v45  ;;  %v16840_v4 = vld [vmem:[%s17685_s5 + $0x11d8] sm:$0xff]   ;;  %v16868_v45 = vld [vmem:[%s17685_s5 + $0x1260] sm:$0xff]  }
 0x273   : > { %v15097_v59 = vpop.f32.mrf.mxu0  ;;  %15389 = vmatprep.subr.bf16.mxu0 %v16831_v51  ;;  %15410 = vmatpush3.bf16.msra.mxu1 %v16830_v48  ;;  %v16870_v48 = vld [vmem:[%s17685_s5 + $0x1220] sm:$0xff]   ;;  %v16872_v50 = vld [vmem:[%s17685_s5 + $0x1258] sm:$0xff]   ;;  %v16880_v58 = vld [vmem:[%s17685_s5 + $0x1248] sm:$0xff]  }
 0x274   : > { %v18411_v61 = vadd.f32 %v15117_v56, %v11343_v55  ;;  %v15119_v63 = vpop.f32.mrf.mxu1  ;;  %15411 = vmatprep.subr.bf16.mxu1 %v16832_v54  ;;  %v16873_v51 = vld [vmem:[%s17685_s5 + $0x12d8] sm:$0xff]   ;;  %v16876_v54 = vld [vmem:[%s17685_s5 + $0x1250] sm:$0xff]   ;;  %v16881_v59 = vld [vmem:[%s17685_s5 + $0x12c8] sm:$0xff]  }
 0x275   : > { %v16875_v53 = vld [vmem:[%s17685_s5 + $0x1298] sm:$0xff]   ;;  %v16877_v55 = vld [vmem:[%s17685_s5 + $0x12d0] sm:$0xff]   ;;  %v16885_v63 = vld [vmem:[%s17685_s5 + $0x12c0] sm:$0xff]  }
 0x276   : > { %15390 = vmatpush3.bf16.msra.mxu0 %v16833_v57  ;;  %v16878_v56 = vld [vmem:[%s17685_s5 + $0x1210] sm:$0xff]  }
 0x277   : > { %15391 = vmatprep.subr.bf16.mxu0 %v16835_v62  ;;  %15412 = vmatpush3.bf16.msra.mxu1 %v16834_v60  ;;  %v16879_v57 = vld [vmem:[%s17685_s5 + $0x1290] sm:$0xff]   ;;  %v16882_v60 = vld [vmem:[%s17685_s5 + $0x1208] sm:$0xff]   ;;  %v16884_v62 = vld [vmem:[%s17685_s5 + $0x1240] sm:$0xff]  }
 0x278   : > { %15413 = vmatprep.subr.bf16.mxu1 %v16836_v0  ;;  %v16886_v0 = vld [vmem:[%s17685_s5 + $0x1200] sm:$0xff]  }
 0x27a   : > { %15392 = vmatpush3.bf16.msra.mxu0 %v16837_v1  ;;  %v232_v1 = vld [vmem:[%s19207_s0 + $0x48] sm:$0xff] }
 0x27b   : > { %15393 = vmatprep.subr.bf16.mxu0 %v16839_v3  ;;  %15414 = vmatpush3.bf16.msra.mxu1 %v16838_v2  ;;  %v16887_v2 = vld [vmem:[%s17685_s5 + $0x1280] sm:$0xff]   ;;  %v3018_v3 = vrot.slane %v232_v1, %v17727_v35 }
 0x27c   : > { %15415 = vmatprep.subr.bf16.mxu1 %v16840_v4  ;;  %v3011_v4 = vcombine.high %v232_v1, %v232_v1  ;;  %v16925_v1 = vld [vmem:[%s17685_s5 + $0x1470] sm:$0xff]  }
 0x27e   : > { %15394 = vmatpush3.bf16.msra.mxu0 %v16841_v5  ;;  %v16888_v5 = vld [vmem:[%s17685_s5 + $0x1378] sm:$0xff]  }
 0x27f   : > { %15395 = vmatprep.subr.bf16.mxu0 %v16843_v7  ;;  %15416 = vmatpush3.bf16.msra.mxu1 %v16842_v6  ;;  %v3026_v6 = vcombine.high %v3018_v3, %v3018_v3  ;;  %v3034_v7 = vrot.slane %v3018_v3, %v17727_v35  ;;  %v16926_v3 = vld [vmem:[%s17685_s5 + $0x14f0] sm:$0xff]  }
 0x280   : > { %15417 = vmatprep.subr.bf16.mxu1 %v16844_v8  ;;  %v16889_v8 = vld [vmem:[%s17685_s5 + $0x13f8] sm:$0xff]  }
 0x282   : > { %15396 = vmatpush3.bf16.msra.mxu0 %v16845_v9  ;;  %v18478_v9 = vrot.slane %v3011_v4, %v17727_v35  ;;  %v16927_v4 = vld [vmem:[%s17685_s5 + $0x1430] sm:$0xff]  }
 0x283   : > { %15397 = vmatprep.subr.bf16.mxu0 %v16847_v11  ;;  %15418 = vmatpush3.bf16.msra.mxu1 %v16846_v10  ;;  %v16890_v10 = vld [vmem:[%s17685_s5 + $0x1338] sm:$0xff]   ;;  %v3048_v11 = vrot.slane %v3026_v6, %v17727_v35 }
 0x284   : > { %15419 = vmatprep.subr.bf16.mxu1 %v16848_v12  ;;  %v16891_v12 = vld [vmem:[%s17685_s5 + $0x13b8] sm:$0xff]  }
 0x286   : > { %15398 = vmatpush3.bf16.msra.mxu0 %v16849_v13  ;;  %v3027_v13 = vcombine.high %v18478_v9, %v18478_v9 }
 0x287   : > { %15399 = vmatprep.subr.bf16.mxu0 %v16851_v15  ;;  %15420 = vmatpush3.bf16.msra.mxu1 %v16850_v14  ;;  %v3056_v14 = vcombine.high %v3034_v7, %v3034_v7  ;;  %v16892_v15 = vld [vmem:[%s17685_s5 + $0x1370] sm:$0xff]  }
 0x288   : > { %15421 = vmatprep.subr.bf16.mxu1 %v16852_v16  ;;  %v3058_v16 = vcombine.high %v3048_v11, %v3048_v11 }
 0x28a   : > { %15400 = vmatpush3.bf16.msra.mxu0 %v16853_v17 }
 0x28b   : > { %15429 = vmatprep.subr.bf16.mxu0 %v16856_v20  ;;  %15422 = vmatpush3.bf16.msra.mxu1 %v16854_v18  ;;  %v16893_v18 = vld [vmem:[%s17685_s5 + $0x13f0] sm:$0xff]  }
 0x28c   : > { %15451 = vmatprep.subr.bf16.mxu1 %v16857_v21  ;;  %v16894_v20 = vld [vmem:[%s17685_s5 + $0x1330] sm:$0xff]  }
 0x28d   : > { %v15137_v26 = vpop.f32.mrf.mxu0  ;;  %11901 = vmatmul.mubr.bf16.vlgmr.msra.gmra.mxu0 %v2992_v19  ;;  %v3055_v19 = vrot.slane %v3027_v13, %v17727_v35 }
 0x28e   : > { %v15159_v29 = vpop.f32.mrf.mxu1  ;;  %15430 = vmatpush3.bf16.msra.mxu0 %v16858_v22  ;;  %11941 = vmatmul.mubr.bf16.vlgmr.msra.gmra.mxu1 %v3008_v24 }
 0x28f   : > { %v15138_v30 = vpop.f32.mrf.mxu0  ;;  %15431 = vmatprep.subr.bf16.mxu0 %v16860_v25  ;;  %15452 = vmatpush3.bf16.msra.mxu1 %v16859_v23  ;;  %v16895_v23 = vld [vmem:[%s17685_s5 + $0x13b0] sm:$0xff]   ;;  %v3059_v24 = vcombine.high %v3055_v19, %v3055_v19 }
 0x290   : > { %v15139_v32 = vadd.f32 %v15138_v30, %v15137_v26  ;;  %v15160_v34 = vpop.f32.mrf.mxu1  ;;  %15453 = vmatprep.subr.bf16.mxu1 %v16861_v27  ;;  %11980 = vmatprep.mubr.bf16.mxu0 %v3048_v11  ;;  %v16896_v26 = vld [vmem:[%s17685_s5 + $0x1368] sm:$0xff]  }
 0x291   : > { %v15140_v36 = vpop.f32.mrf.mxu0  ;;  %v15161_v39 = vadd.f32 %v15160_v34, %v15159_v29  ;;  %12020 = vmatprep.mubr.bf16.mxu1 %v3058_v16  ;;  %v16897_v29 = vld [vmem:[%s17685_s5 + $0x13e8] sm:$0xff]  }
 0x292   : > { %v11423_v38 = vadd.f32 %v15139_v32, %v18411_v61  ;;  %v15162_v41 = vpop.f32.mrf.mxu1  ;;  %15432 = vmatpush3.bf16.msra.mxu0 %v16862_v28  ;;  %v16883_v61 = vld [vmem:[%s17685_s5 + $0x1288] sm:$0xff]  }
 0x293   : > { %v15141_v42 = vpop.f32.mrf.mxu0  ;;  %15433 = vmatprep.subr.bf16.mxu0 %v16864_v33  ;;  %15454 = vmatpush3.bf16.msra.mxu1 %v16863_v31  ;;  %v16898_v32 = vld [vmem:[%s17685_s5 + $0x1328] sm:$0xff]   ;;  %v16902_v41 = vld [vmem:[%s17685_s5 + $0x1320] sm:$0xff]  }
 0x294   : > { %v18448_v44 = vadd.f32 %v15161_v39, %v11423_v38  ;;  %v15163_v46 = vpop.f32.mrf.mxu1  ;;  %15455 = vmatprep.subr.bf16.mxu1 %v16865_v37  ;;  %v16899_v36 = vld [vmem:[%s17685_s5 + $0x13a8] sm:$0xff]   ;;  %v16900_v38 = vld [vmem:[%s17685_s5 + $0x1360] sm:$0xff]  }
 0x295   : > { %v16903_v42 = vld [vmem:[%s17685_s5 + $0x13a0] sm:$0xff]   ;;  %v16907_v46 = vld [vmem:[%s17685_s5 + $0x1398] sm:$0xff]  }
 0x296   : > { %15434 = vmatpush3.bf16.msra.mxu0 %v16866_v40  ;;  %v16901_v40 = vld [vmem:[%s17685_s5 + $0x13e0] sm:$0xff]  }
 0x297   : > { %15435 = vmatprep.subr.bf16.mxu0 %v16868_v45  ;;  %15456 = vmatpush3.bf16.msra.mxu1 %v16867_v43  ;;  %v16904_v43 = vld [vmem:[%s17685_s5 + $0x1358] sm:$0xff]  }
 0x298   : > { %15457 = vmatprep.subr.bf16.mxu1 %v16869_v47  ;;  %v16906_v45 = vld [vmem:[%s17685_s5 + $0x1318] sm:$0xff]   ;;  %v16908_v47 = vld [vmem:[%s17685_s5 + $0x1350] sm:$0xff]  }
 0x29a   : > { %15436 = vmatpush3.bf16.msra.mxu0 %v16870_v48  ;;  %v16909_v48 = vld [vmem:[%s17685_s5 + $0x13d0] sm:$0xff]  }
 0x29b   : > { %15437 = vmatprep.subr.bf16.mxu0 %v16872_v50  ;;  %15458 = vmatpush3.bf16.msra.mxu1 %v16871_v49  ;;  %v16910_v49 = vld [vmem:[%s17685_s5 + $0x1310] sm:$0xff]  }
 0x29c   : > { %15459 = vmatprep.subr.bf16.mxu1 %v16873_v51  ;;  %v16911_v50 = vld [vmem:[%s17685_s5 + $0x1390] sm:$0xff]   ;;  %v16912_v51 = vld [vmem:[%s17685_s5 + $0x1348] sm:$0xff]  }
 0x29e   : > { %15438 = vmatpush3.bf16.msra.mxu0 %v16874_v52  ;;  %v16913_v52 = vld [vmem:[%s17685_s5 + $0x13c8] sm:$0xff]  }
 0x29f   : > { %15439 = vmatprep.subr.bf16.mxu0 %v16876_v54  ;;  %15460 = vmatpush3.bf16.msra.mxu1 %v16875_v53  ;;  %v16914_v53 = vld [vmem:[%s17685_s5 + $0x1308] sm:$0xff]  }
 0x2a0   : > { %15461 = vmatprep.subr.bf16.mxu1 %v16877_v55  ;;  %v16915_v54 = vld [vmem:[%s17685_s5 + $0x1388] sm:$0xff]   ;;  %v16916_v55 = vld [vmem:[%s17685_s5 + $0x1340] sm:$0xff]  }
 0x2a2   : > { %15440 = vmatpush3.bf16.msra.mxu0 %v16878_v56  ;;  %v16917_v56 = vld [vmem:[%s17685_s5 + $0x13c0] sm:$0xff]  }
 0x2a3   : > { %15441 = vmatprep.subr.bf16.mxu0 %v16880_v58  ;;  %15462 = vmatpush3.bf16.msra.mxu1 %v16879_v57  ;;  %v16918_v57 = vld [vmem:[%s17685_s5 + $0x1300] sm:$0xff]  }
 0x2a4   : > { %15463 = vmatprep.subr.bf16.mxu1 %v16881_v59  ;;  %v16919_v58 = vld [vmem:[%s17685_s5 + $0x1380] sm:$0xff]   ;;  %v3041_v59 = vrot.slane %v18478_v9, %v17727_v35  ;;  %v16929_v9 = vld [vmem:[%s17685_s5 + $0x1468] sm:$0xff]  }
 0x2a6   : > { %15442 = vmatpush3.bf16.msra.mxu0 %v16882_v60  ;;  %v16921_v60 = vld [vmem:[%s17685_s5 + $0x1478] sm:$0xff]  }
 0x2a7   : > { %15443 = vmatprep.subr.bf16.mxu0 %v16884_v62  ;;  %15464 = vmatpush3.bf16.msra.mxu1 %v16883_v61  ;;  %v16922_v61 = vld [vmem:[%s17685_s5 + $0x14f8] sm:$0xff]  }
 0x2a8   : > { %15465 = vmatprep.subr.bf16.mxu1 %v16885_v63  ;;  %v16923_v62 = vld [vmem:[%s17685_s5 + $0x1438] sm:$0xff]  }
 0x2a9   : > { %v16924_v63 = vld [vmem:[%s17685_s5 + $0x14b8] sm:$0xff]  }
 0x2aa   : > { %15444 = vmatpush3.bf16.msra.mxu0 %v16886_v0  ;;  %v3057_v0 = vcombine.high %v3041_v59, %v3041_v59 }
 0x2ab   : > { %15473 = vmatprep.subr.bf16.mxu0 %v16888_v5  ;;  %15466 = vmatpush3.bf16.msra.mxu1 %v16887_v2 }
 0x2ac   : > { %15495 = vmatprep.subr.bf16.mxu1 %v16889_v8 }
 0x2ad   : > { %v15181_v17 = vpop.f32.mrf.mxu0  ;;  %11981 = vmatmul.mubr.bf16.vlgmr.msra.gmra.mxu0 %v3034_v7  ;;  %v16928_v7 = vld [vmem:[%s17685_s5 + $0x14b0] sm:$0xff]  }
 0x2ae   : > { %v15203_v21 = vpop.f32.mrf.mxu1  ;;  %15474 = vmatpush3.bf16.msra.mxu0 %v16890_v10  ;;  %12021 = vmatmul.mubr.bf16.vlgmr.msra.gmra.mxu1 %v3056_v14 }
 0x2af   : > { %v15182_v22 = vpop.f32.mrf.mxu0  ;;  %15475 = vmatprep.subr.bf16.mxu0 %v16892_v15  ;;  %15496 = vmatpush3.bf16.msra.mxu1 %v16891_v12  ;;  %v16930_v12 = vld [vmem:[%s17685_s5 + $0x14e8] sm:$0xff]  }
 0x2b0   : > { %v15183_v25 = vadd.f32 %v15182_v22, %v15181_v17  ;;  %v15204_v27 = vpop.f32.mrf.mxu1  ;;  %12060 = vmatprep.mubr.bf16.mxu0 %v3055_v19  ;;  %15497 = vmatprep.subr.bf16.mxu1 %v16893_v18  ;;  %v16931_v15 = vld [vmem:[%s17685_s5 + $0x1428] sm:$0xff]   ;;  %v16934_v22 = vld [vmem:[%s17685_s5 + $0x14e0] sm:$0xff]  }
 0x2b1   : > { %v15184_v28 = vpop.f32.mrf.mxu0  ;;  %v15205_v31 = vadd.f32 %v15204_v27, %v15203_v21  ;;  %12100 = vmatprep.mubr.bf16.mxu1 %v3059_v24  ;;  %v16932_v18 = vld [vmem:[%s17685_s5 + $0x14a8] sm:$0xff]   ;;  %v16936_v24 = vld [vmem:[%s17685_s5 + $0x14a0] sm:$0xff]   ;;  %v16939_v27 = vld [vmem:[%s17685_s5 + $0x1418] sm:$0xff]  }
 0x2b2   : > { %v11503_v30 = vadd.f32 %v15183_v25, %v18448_v44  ;;  %v15206_v33 = vpop.f32.mrf.mxu1  ;;  %15476 = vmatpush3.bf16.msra.mxu0 %v16894_v20  ;;  %v16905_v44 = vld [vmem:[%s17685_s5 + $0x13d8] sm:$0xff]   ;;  %v16933_v20 = vld [vmem:[%s17685_s5 + $0x1460] sm:$0xff]  }
 0x2b3   : > { %v15185_v34 = vpop.f32.mrf.mxu0  ;;  %15477 = vmatprep.subr.bf16.mxu0 %v16896_v26  ;;  %15498 = vmatpush3.bf16.msra.mxu1 %v16895_v23  ;;  %v16935_v23 = vld [vmem:[%s17685_s5 + $0x1420] sm:$0xff]   ;;  %v16937_v25 = vld [vmem:[%s17685_s5 + $0x1458] sm:$0xff]   ;;  %v16945_v33 = vld [vmem:[%s17685_s5 + $0x1448] sm:$0xff]  }
 0x2b4   : > { %v18495_v37 = vadd.f32 %v15205_v31, %v11503_v30  ;;  %v15207_v39 = vpop.f32.mrf.mxu1  ;;  %15499 = vmatprep.subr.bf16.mxu1 %v16897_v29  ;;  %v16938_v26 = vld [vmem:[%s17685_s5 + $0x14d8] sm:$0xff]   ;;  %v16941_v29 = vld [vmem:[%s17685_s5 + $0x1450] sm:$0xff]   ;;  %v16946_v34 = vld [vmem:[%s17685_s5 + $0x14c8] sm:$0xff]  }
 0x2b5   : > { %v16940_v28 = vld [vmem:[%s17685_s5 + $0x1498] sm:$0xff]   ;;  %v16942_v30 = vld [vmem:[%s17685_s5 + $0x14d0] sm:$0xff]   ;;  %v16950_v39 = vld [vmem:[%s17685_s5 + $0x14c0] sm:$0xff]  }
 0x2b6   : > { %15478 = vmatpush3.bf16.msra.mxu0 %v16898_v32  ;;  %v16943_v31 = vld [vmem:[%s17685_s5 + $0x1410] sm:$0xff]  }
 0x2b7   : > { %15479 = vmatprep.subr.bf16.mxu0 %v16900_v38  ;;  %15500 = vmatpush3.bf16.msra.mxu1 %v16899_v36  ;;  %v16944_v32 = vld [vmem:[%s17685_s5 + $0x1490] sm:$0xff]   ;;  %v16947_v36 = vld [vmem:[%s17685_s5 + $0x1408] sm:$0xff]   ;;  %v16949_v38 = vld [vmem:[%s17685_s5 + $0x1440] sm:$0xff]  }
 0x2b8   : > { %15501 = vmatprep.subr.bf16.mxu1 %v16901_v40  ;;  %v16951_v40 = vld [vmem:[%s17685_s5 + $0x1400] sm:$0xff]  }
 0x2ba   : > { %15480 = vmatpush3.bf16.msra.mxu0 %v16902_v41  ;;  %v233_v41 = vld [vmem:[%s19207_s0 + $0x50] sm:$0xff] }
 0x2bb   : > { %15481 = vmatprep.subr.bf16.mxu0 %v16904_v43  ;;  %15502 = vmatpush3.bf16.msra.mxu1 %v16903_v42  ;;  %v16952_v42 = vld [vmem:[%s17685_s5 + $0x1480] sm:$0xff]   ;;  %v3067_v43 = vrot.slane %v233_v41, %v17727_v35 }
 0x2bc   : > { %15503 = vmatprep.subr.bf16.mxu1 %v16905_v44  ;;  %v3060_v44 = vcombine.high %v233_v41, %v233_v41  ;;  %v16990_v41 = vld [vmem:[%s17685_s5 + $0x1670] sm:$0xff]  }
 0x2be   : > { %15482 = vmatpush3.bf16.msra.mxu0 %v16906_v45  ;;  %v16953_v45 = vld [vmem:[%s17685_s5 + $0x1578] sm:$0xff]  }
 0x2bf   : > { %15483 = vmatprep.subr.bf16.mxu0 %v16908_v47  ;;  %15504 = vmatpush3.bf16.msra.mxu1 %v16907_v46  ;;  %v3075_v46 = vcombine.high %v3067_v43, %v3067_v43  ;;  %v3083_v47 = vrot.slane %v3067_v43, %v17727_v35  ;;  %v16991_v43 = vld [vmem:[%s17685_s5 + $0x16f0] sm:$0xff]  }
 0x2c0   : > { %15505 = vmatprep.subr.bf16.mxu1 %v16909_v48  ;;  %v16954_v48 = vld [vmem:[%s17685_s5 + $0x15f8] sm:$0xff]  }
 0x2c2   : > { %15484 = vmatpush3.bf16.msra.mxu0 %v16910_v49  ;;  %v18562_v49 = vrot.slane %v3060_v44, %v17727_v35  ;;  %v16992_v44 = vld [vmem:[%s17685_s5 + $0x1630] sm:$0xff]  }
 0x2c3   : > { %15485 = vmatprep.subr.bf16.mxu0 %v16912_v51  ;;  %15506 = vmatpush3.bf16.msra.mxu1 %v16911_v50  ;;  %v16955_v50 = vld [vmem:[%s17685_s5 + $0x1538] sm:$0xff]   ;;  %v3097_v51 = vrot.slane %v3075_v46, %v17727_v35 }
 0x2c4   : > { %15507 = vmatprep.subr.bf16.mxu1 %v16913_v52  ;;  %v16956_v52 = vld [vmem:[%s17685_s5 + $0x15b8] sm:$0xff]  }
 0x2c6   : > { %15486 = vmatpush3.bf16.msra.mxu0 %v16914_v53  ;;  %v3076_v53 = vcombine.high %v18562_v49, %v18562_v49 }
 0x2c7   : > { %15487 = vmatprep.subr.bf16.mxu0 %v16916_v55  ;;  %15508 = vmatpush3.bf16.msra.mxu1 %v16915_v54  ;;  %v3105_v54 = vcombine.high %v3083_v47, %v3083_v47  ;;  %v16957_v55 = vld [vmem:[%s17685_s5 + $0x1570] sm:$0xff]  }
 0x2c8   : > { %15509 = vmatprep.subr.bf16.mxu1 %v16917_v56  ;;  %v3107_v56 = vcombine.high %v3097_v51, %v3097_v51 }
 0x2ca   : > { %15488 = vmatpush3.bf16.msra.mxu0 %v16918_v57 }
 0x2cb   : > { %15517 = vmatprep.subr.bf16.mxu0 %v16921_v60  ;;  %15510 = vmatpush3.bf16.msra.mxu1 %v16919_v58  ;;  %v16958_v58 = vld [vmem:[%s17685_s5 + $0x15f0] sm:$0xff]  }
 0x2cc   : > { %15539 = vmatprep.subr.bf16.mxu1 %v16922_v61  ;;  %v16959_v60 = vld [vmem:[%s17685_s5 + $0x1530] sm:$0xff]  }
 0x2cd   : > { %v15225_v2 = vpop.f32.mrf.mxu0  ;;  %12061 = vmatmul.mubr.bf16.vlgmr.msra.gmra.mxu0 %v3041_v59  ;;  %v3104_v59 = vrot.slane %v3076_v53, %v17727_v35 }
 0x2ce   : > { %v15247_v5 = vpop.f32.mrf.mxu1  ;;  %15518 = vmatpush3.bf16.msra.mxu0 %v16923_v62  ;;  %12101 = vmatmul.mubr.bf16.vlgmr.msra.gmra.mxu1 %v3057_v0 }
 0x2cf   : > { %v15226_v6 = vpop.f32.mrf.mxu0  ;;  %15519 = vmatprep.subr.bf16.mxu0 %v16925_v1  ;;  %15540 = vmatpush3.bf16.msra.mxu1 %v16924_v63  ;;  %v16960_v63 = vld [vmem:[%s17685_s5 + $0x15b0] sm:$0xff]   ;;  %v3108_v0 = vcombine.high %v3104_v59, %v3104_v59 }
 0x2d0   : > { %v15227_v8 = vadd.f32 %v15226_v6, %v15225_v2  ;;  %v15248_v10 = vpop.f32.mrf.mxu1  ;;  %15541 = vmatprep.subr.bf16.mxu1 %v16926_v3  ;;  %12140 = vmatprep.mubr.bf16.mxu0 %v3097_v51  ;;  %v16961_v2 = vld [vmem:[%s17685_s5 + $0x1568] sm:$0xff]  }
 0x2d1   : > { %v15228_v11 = vpop.f32.mrf.mxu0  ;;  %v15249_v14 = vadd.f32 %v15248_v10, %v15247_v5  ;;  %12180 = vmatprep.mubr.bf16.mxu1 %v3107_v56  ;;  %v16962_v5 = vld [vmem:[%s17685_s5 + $0x15e8] sm:$0xff]  }
 0x2d2   : > { %v11583_v13 = vadd.f32 %v15227_v8, %v18495_v37  ;;  %v15250_v16 = vpop.f32.mrf.mxu1  ;;  %15520 = vmatpush3.bf16.msra.mxu0 %v16927_v4  ;;  %v16948_v37 = vld [vmem:[%s17685_s5 + $0x1488] sm:$0xff]  }
 0x2d3   : > { %v15229_v17 = vpop.f32.mrf.mxu0  ;;  %15521 = vmatprep.subr.bf16.mxu0 %v16929_v9  ;;  %15542 = vmatpush3.bf16.msra.mxu1 %v16928_v7  ;;  %v16963_v8 = vld [vmem:[%s17685_s5 + $0x1528] sm:$0xff]   ;;  %v16967_v16 = vld [vmem:[%s17685_s5 + $0x1520] sm:$0xff]  }
 0x2d4   : > { %v18532_v19 = vadd.f32 %v15249_v14, %v11583_v13  ;;  %v15251_v21 = vpop.f32.mrf.mxu1  ;;  %15543 = vmatprep.subr.bf16.mxu1 %v16930_v12  ;;  %v16964_v11 = vld [vmem:[%s17685_s5 + $0x15a8] sm:$0xff]   ;;  %v16965_v13 = vld [vmem:[%s17685_s5 + $0x1560] sm:$0xff]  }
 0x2d5   : > { %v16968_v17 = vld [vmem:[%s17685_s5 + $0x15a0] sm:$0xff]   ;;  %v16972_v21 = vld [vmem:[%s17685_s5 + $0x1598] sm:$0xff]  }
 0x2d6   : > { %15522 = vmatpush3.bf16.msra.mxu0 %v16931_v15  ;;  %v16966_v15 = vld [vmem:[%s17685_s5 + $0x15e0] sm:$0xff]  }
 0x2d7   : > { %15523 = vmatprep.subr.bf16.mxu0 %v16933_v20  ;;  %15544 = vmatpush3.bf16.msra.mxu1 %v16932_v18  ;;  %v16969_v18 = vld [vmem:[%s17685_s5 + $0x1558] sm:$0xff]  }
 0x2d8   : > { %15545 = vmatprep.subr.bf16.mxu1 %v16934_v22  ;;  %v16971_v20 = vld [vmem:[%s17685_s5 + $0x1518] sm:$0xff]   ;;  %v16973_v22 = vld [vmem:[%s17685_s5 + $0x1550] sm:$0xff]  }
 0x2da   : > { %15524 = vmatpush3.bf16.msra.mxu0 %v16935_v23  ;;  %v16974_v23 = vld [vmem:[%s17685_s5 + $0x15d0] sm:$0xff]  }
 0x2db   : > { %15525 = vmatprep.subr.bf16.mxu0 %v16937_v25  ;;  %15546 = vmatpush3.bf16.msra.mxu1 %v16936_v24  ;;  %v16975_v24 = vld [vmem:[%s17685_s5 + $0x1510] sm:$0xff]  }
 0x2dc   : > { %15547 = vmatprep.subr.bf16.mxu1 %v16938_v26  ;;  %v16976_v25 = vld [vmem:[%s17685_s5 + $0x1590] sm:$0xff]   ;;  %v16977_v26 = vld [vmem:[%s17685_s5 + $0x1548] sm:$0xff]  }
 0x2de   : > { %15526 = vmatpush3.bf16.msra.mxu0 %v16939_v27  ;;  %v16978_v27 = vld [vmem:[%s17685_s5 + $0x15c8] sm:$0xff]  }
 0x2df   : > { %15527 = vmatprep.subr.bf16.mxu0 %v16941_v29  ;;  %15548 = vmatpush3.bf16.msra.mxu1 %v16940_v28  ;;  %v16979_v28 = vld [vmem:[%s17685_s5 + $0x1508] sm:$0xff]  }
 0x2e0   : > { %15549 = vmatprep.subr.bf16.mxu1 %v16942_v30  ;;  %v16980_v29 = vld [vmem:[%s17685_s5 + $0x1588] sm:$0xff]   ;;  %v16981_v30 = vld [vmem:[%s17685_s5 + $0x1540] sm:$0xff]  }
 0x2e2   : > { %15528 = vmatpush3.bf16.msra.mxu0 %v16943_v31  ;;  %v16982_v31 = vld [vmem:[%s17685_s5 + $0x15c0] sm:$0xff]  }
 0x2e3   : > { %15529 = vmatprep.subr.bf16.mxu0 %v16945_v33  ;;  %15550 = vmatpush3.bf16.msra.mxu1 %v16944_v32  ;;  %v16983_v32 = vld [vmem:[%s17685_s5 + $0x1500] sm:$0xff]  }
 0x2e4   : > { %15551 = vmatprep.subr.bf16.mxu1 %v16946_v34  ;;  %v16984_v33 = vld [vmem:[%s17685_s5 + $0x1580] sm:$0xff]   ;;  %v3090_v34 = vrot.slane %v18562_v49, %v17727_v35  ;;  %v16994_v49 = vld [vmem:[%s17685_s5 + $0x1668] sm:$0xff]  }
 0x2e6   : > { %15530 = vmatpush3.bf16.msra.mxu0 %v16947_v36  ;;  %v16986_v36 = vld [vmem:[%s17685_s5 + $0x1678] sm:$0xff]  }
 0x2e7   : > { %15531 = vmatprep.subr.bf16.mxu0 %v16949_v38  ;;  %15552 = vmatpush3.bf16.msra.mxu1 %v16948_v37  ;;  %v16987_v37 = vld [vmem:[%s17685_s5 + $0x16f8] sm:$0xff]  }
 0x2e8   : > { %15553 = vmatprep.subr.bf16.mxu1 %v16950_v39  ;;  %v16988_v38 = vld [vmem:[%s17685_s5 + $0x1638] sm:$0xff]  }
 0x2e9   : > { %v16989_v39 = vld [vmem:[%s17685_s5 + $0x16b8] sm:$0xff]  }
 0x2ea   : > { %15532 = vmatpush3.bf16.msra.mxu0 %v16951_v40  ;;  %v3106_v40 = vcombine.high %v3090_v34, %v3090_v34 }
 0x2eb   : > { %15561 = vmatprep.subr.bf16.mxu0 %v16953_v45  ;;  %15554 = vmatpush3.bf16.msra.mxu1 %v16952_v42 }
 0x2ec   : > { %15583 = vmatprep.subr.bf16.mxu1 %v16954_v48 }
 0x2ed   : > { %v15269_v57 = vpop.f32.mrf.mxu0  ;;  %12141 = vmatmul.mubr.bf16.vlgmr.msra.gmra.mxu0 %v3083_v47  ;;  %v16993_v47 = vld [vmem:[%s17685_s5 + $0x16b0] sm:$0xff]  }
 0x2ee   : > { %v15291_v61 = vpop.f32.mrf.mxu1  ;;  %15562 = vmatpush3.bf16.msra.mxu0 %v16955_v50  ;;  %12181 = vmatmul.mubr.bf16.vlgmr.msra.gmra.mxu1 %v3105_v54 }
 0x2ef   : > { %v15270_v62 = vpop.f32.mrf.mxu0  ;;  %15563 = vmatprep.subr.bf16.mxu0 %v16957_v55  ;;  %15584 = vmatpush3.bf16.msra.mxu1 %v16956_v52  ;;  %v16995_v52 = vld [vmem:[%s17685_s5 + $0x16e8] sm:$0xff]  }
 0x2f0   : > { %v15271_v1 = vadd.f32 %v15270_v62, %v15269_v57  ;;  %v15292_v3 = vpop.f32.mrf.mxu1  ;;  %12220 = vmatprep.mubr.bf16.mxu0 %v3104_v59  ;;  %15585 = vmatprep.subr.bf16.mxu1 %v16958_v58  ;;  %v16996_v55 = vld [vmem:[%s17685_s5 + $0x1628] sm:$0xff]   ;;  %v16999_v62 = vld [vmem:[%s17685_s5 + $0x16e0] sm:$0xff]  }
 0x2f1   : > { %v15272_v4 = vpop.f32.mrf.mxu0  ;;  %v15293_v7 = vadd.f32 %v15292_v3, %v15291_v61  ;;  %12260 = vmatprep.mubr.bf16.mxu1 %v3108_v0  ;;  %v16997_v58 = vld [vmem:[%s17685_s5 + $0x16a8] sm:$0xff]   ;;  %v17001_v0 = vld [vmem:[%s17685_s5 + $0x16a0] sm:$0xff]   ;;  %v17004_v3 = vld [vmem:[%s17685_s5 + $0x1618] sm:$0xff]  }
 0x2f2   : > { %v11663_v6 = vadd.f32 %v15271_v1, %v18532_v19  ;;  %v15294_v9 = vpop.f32.mrf.mxu1  ;;  %15564 = vmatpush3.bf16.msra.mxu0 %v16959_v60  ;;  %v16970_v19 = vld [vmem:[%s17685_s5 + $0x15d8] sm:$0xff]   ;;  %v16998_v60 = vld [vmem:[%s17685_s5 + $0x1660] sm:$0xff]  }
 0x2f3   : > { %v15273_v10 = vpop.f32.mrf.mxu0  ;;  %15565 = vmatprep.subr.bf16.mxu0 %v16961_v2  ;;  %15586 = vmatpush3.bf16.msra.mxu1 %v16960_v63  ;;  %v17000_v63 = vld [vmem:[%s17685_s5 + $0x1620] sm:$0xff]   ;;  %v17002_v1 = vld [vmem:[%s17685_s5 + $0x1658] sm:$0xff]   ;;  %v17010_v9 = vld [vmem:[%s17685_s5 + $0x1648] sm:$0xff]  }
 0x2f4   : > { %v18579_v12 = vadd.f32 %v15293_v7, %v11663_v6  ;;  %v15295_v14 = vpop.f32.mrf.mxu1  ;;  %15587 = vmatprep.subr.bf16.mxu1 %v16962_v5  ;;  %v17003_v2 = vld [vmem:[%s17685_s5 + $0x16d8] sm:$0xff]   ;;  %v17006_v5 = vld [vmem:[%s17685_s5 + $0x1650] sm:$0xff]   ;;  %v17011_v10 = vld [vmem:[%s17685_s5 + $0x16c8] sm:$0xff]  }
 0x2f5   : > { %v17005_v4 = vld [vmem:[%s17685_s5 + $0x1698] sm:$0xff]   ;;  %v17007_v6 = vld [vmem:[%s17685_s5 + $0x16d0] sm:$0xff]   ;;  %v17015_v14 = vld [vmem:[%s17685_s5 + $0x16c0] sm:$0xff]  }
 0x2f6   : > { %15566 = vmatpush3.bf16.msra.mxu0 %v16963_v8  ;;  %v17008_v7 = vld [vmem:[%s17685_s5 + $0x1610] sm:$0xff]  }
 0x2f7   : > { %15567 = vmatprep.subr.bf16.mxu0 %v16965_v13  ;;  %15588 = vmatpush3.bf16.msra.mxu1 %v16964_v11  ;;  %v17009_v8 = vld [vmem:[%s17685_s5 + $0x1690] sm:$0xff]   ;;  %v17012_v11 = vld [vmem:[%s17685_s5 + $0x1608] sm:$0xff]   ;;  %v17014_v13 = vld [vmem:[%s17685_s5 + $0x1640] sm:$0xff]  }
 0x2f8   : > { %15589 = vmatprep.subr.bf16.mxu1 %v16966_v15  ;;  %v17016_v15 = vld [vmem:[%s17685_s5 + $0x1600] sm:$0xff]  }
 0x2fa   : > { %15568 = vmatpush3.bf16.msra.mxu0 %v16967_v16  ;;  %v234_v16 = vld [vmem:[%s19207_s0 + $0x58] sm:$0xff] }
 0x2fb   : > { %15569 = vmatprep.subr.bf16.mxu0 %v16969_v18  ;;  %15590 = vmatpush3.bf16.msra.mxu1 %v16968_v17  ;;  %v3116_v17 = vrot.slane %v234_v16, %v17727_v35  ;;  %v17018_v18 = vld [vmem:[%s17685_s5 + $0x1778] sm:$0xff]  }
 0x2fc   : > { %15591 = vmatprep.subr.bf16.mxu1 %v16970_v19  ;;  %v3109_v19 = vcombine.high %v234_v16, %v234_v16  ;;  %v17055_v16 = vld [vmem:[%s17685_s5 + $0x1870] sm:$0xff]  }
 0x2fe   : > { %15570 = vmatpush3.bf16.msra.mxu0 %v16971_v20  ;;  %v17017_v20 = vld [vmem:[%s17685_s5 + $0x1680] sm:$0xff]  }
 0x2ff   : > { %15571 = vmatprep.subr.bf16.mxu0 %v16973_v22  ;;  %15592 = vmatpush3.bf16.msra.mxu1 %v16972_v21  ;;  %v3124_v21 = vcombine.high %v3116_v17, %v3116_v17  ;;  %v3132_v22 = vrot.slane %v3116_v17, %v17727_v35 }
 0x300   : > { %15593 = vmatprep.subr.bf16.mxu1 %v16974_v23  ;;  %v17019_v23 = vld [vmem:[%s17685_s5 + $0x17f8] sm:$0xff]  }
 0x302   : > { %15572 = vmatpush3.bf16.msra.mxu0 %v16975_v24  ;;  %v18646_v24 = vrot.slane %v3109_v19, %v17727_v35  ;;  %v17057_v19 = vld [vmem:[%s17685_s5 + $0x1830] sm:$0xff]  }
 0x303   : > { %15573 = vmatprep.subr.bf16.mxu0 %v16977_v26  ;;  %15594 = vmatpush3.bf16.msra.mxu1 %v16976_v25  ;;  %v17020_v25 = vld [vmem:[%s17685_s5 + $0x1738] sm:$0xff]   ;;  %v3146_v26 = vrot.slane %v3124_v21, %v17727_v35 }
 0x304   : > { %15595 = vmatprep.subr.bf16.mxu1 %v16978_v27  ;;  %v17021_v27 = vld [vmem:[%s17685_s5 + $0x17b8] sm:$0xff]  }
 0x306   : > { %15574 = vmatpush3.bf16.msra.mxu0 %v16979_v28  ;;  %v3125_v28 = vcombine.high %v18646_v24, %v18646_v24 }
 0x307   : > { %15575 = vmatprep.subr.bf16.mxu0 %v16981_v30  ;;  %15596 = vmatpush3.bf16.msra.mxu1 %v16980_v29  ;;  %v3154_v29 = vcombine.high %v3132_v22, %v3132_v22  ;;  %v17022_v30 = vld [vmem:[%s17685_s5 + $0x1770] sm:$0xff]  }
 0x308   : > { %15597 = vmatprep.subr.bf16.mxu1 %v16982_v31  ;;  %v3156_v31 = vcombine.high %v3146_v26, %v3146_v26 }
 0x30a   : > { %15576 = vmatpush3.bf16.msra.mxu0 %v16983_v32 }
 0x30b   : > { %15605 = vmatprep.subr.bf16.mxu0 %v16986_v36  ;;  %15598 = vmatpush3.bf16.msra.mxu1 %v16984_v33  ;;  %v17023_v33 = vld [vmem:[%s17685_s5 + $0x17f0] sm:$0xff]  }
 0x30c   : > { %15627 = vmatprep.subr.bf16.mxu1 %v16987_v37  ;;  %v17024_v36 = vld [vmem:[%s17685_s5 + $0x1730] sm:$0xff]  }
 0x30d   : > { %v15313_v42 = vpop.f32.mrf.mxu0  ;;  %12221 = vmatmul.mubr.bf16.vlgmr.msra.gmra.mxu0 %v3090_v34  ;;  %v3153_v34 = vrot.slane %v3125_v28, %v17727_v35 }
 0x30e   : > { %v15335_v45 = vpop.f32.mrf.mxu1  ;;  %15606 = vmatpush3.bf16.msra.mxu0 %v16988_v38  ;;  %12261 = vmatmul.mubr.bf16.vlgmr.msra.gmra.mxu1 %v3106_v40 }
 0x30f   : > { %v15314_v46 = vpop.f32.mrf.mxu0  ;;  %15607 = vmatprep.subr.bf16.mxu0 %v16990_v41  ;;  %15628 = vmatpush3.bf16.msra.mxu1 %v16989_v39  ;;  %v17025_v39 = vld [vmem:[%s17685_s5 + $0x17b0] sm:$0xff]   ;;  %v3157_v40 = vcombine.high %v3153_v34, %v3153_v34 }
 0x310   : > { %v15315_v48 = vadd.f32 %v15314_v46, %v15313_v42  ;;  %v15336_v50 = vpop.f32.mrf.mxu1  ;;  %15629 = vmatprep.subr.bf16.mxu1 %v16991_v43  ;;  %12300 = vmatprep.mubr.bf16.mxu0 %v3146_v26  ;;  %v17026_v42 = vld [vmem:[%s17685_s5 + $0x1768] sm:$0xff]  }
 0x311   : > { %v15316_v51 = vpop.f32.mrf.mxu0  ;;  %v15337_v54 = vadd.f32 %v15336_v50, %v15335_v45  ;;  %12340 = vmatprep.mubr.bf16.mxu1 %v3156_v31  ;;  %v17027_v45 = vld [vmem:[%s17685_s5 + $0x17e8] sm:$0xff]  }
 0x312   : > { %v11743_v53 = vadd.f32 %v15315_v48, %v18579_v12  ;;  %v15338_v56 = vpop.f32.mrf.mxu1  ;;  %15608 = vmatpush3.bf16.msra.mxu0 %v16992_v44  ;;  %v17013_v12 = vld [vmem:[%s17685_s5 + $0x1688] sm:$0xff]  }
 0x313   : > { %v15317_v57 = vpop.f32.mrf.mxu0  ;;  %15609 = vmatprep.subr.bf16.mxu0 %v16994_v49  ;;  %15630 = vmatpush3.bf16.msra.mxu1 %v16993_v47  ;;  %v17028_v48 = vld [vmem:[%s17685_s5 + $0x1728] sm:$0xff]   ;;  %v17032_v56 = vld [vmem:[%s17685_s5 + $0x1720] sm:$0xff]  }
 0x314   : > { %v18616_v59 = vadd.f32 %v15337_v54, %v11743_v53  ;;  %v15339_v61 = vpop.f32.mrf.mxu1  ;;  %15631 = vmatprep.subr.bf16.mxu1 %v16995_v52  ;;  %v17029_v51 = vld [vmem:[%s17685_s5 + $0x17a8] sm:$0xff]   ;;  %v17030_v53 = vld [vmem:[%s17685_s5 + $0x1760] sm:$0xff]  }
 0x315   : > { %v17033_v57 = vld [vmem:[%s17685_s5 + $0x17a0] sm:$0xff]   ;;  %v17037_v61 = vld [vmem:[%s17685_s5 + $0x1798] sm:$0xff]  }
 0x316   : > { %15610 = vmatpush3.bf16.msra.mxu0 %v16996_v55  ;;  %v17031_v55 = vld [vmem:[%s17685_s5 + $0x17e0] sm:$0xff]  }
 0x317   : > { %15611 = vmatprep.subr.bf16.mxu0 %v16998_v60  ;;  %15632 = vmatpush3.bf16.msra.mxu1 %v16997_v58  ;;  %v17034_v58 = vld [vmem:[%s17685_s5 + $0x1758] sm:$0xff]  }
 0x318   : > { %15633 = vmatprep.subr.bf16.mxu1 %v16999_v62  ;;  %v17036_v60 = vld [vmem:[%s17685_s5 + $0x1718] sm:$0xff]   ;;  %v17038_v62 = vld [vmem:[%s17685_s5 + $0x1750] sm:$0xff]  }
 0x31a   : > { %15612 = vmatpush3.bf16.msra.mxu0 %v17000_v63  ;;  %v17039_v63 = vld [vmem:[%s17685_s5 + $0x17d0] sm:$0xff]  }
 0x31b   : > { %15613 = vmatprep.subr.bf16.mxu0 %v17002_v1  ;;  %15634 = vmatpush3.bf16.msra.mxu1 %v17001_v0  ;;  %v17040_v0 = vld [vmem:[%s17685_s5 + $0x1710] sm:$0xff]  }
 0x31c   : > { %15635 = vmatprep.subr.bf16.mxu1 %v17003_v2  ;;  %v17041_v1 = vld [vmem:[%s17685_s5 + $0x1790] sm:$0xff]   ;;  %v17042_v2 = vld [vmem:[%s17685_s5 + $0x1748] sm:$0xff]  }
 0x31e   : > { %15614 = vmatpush3.bf16.msra.mxu0 %v17004_v3  ;;  %v17043_v3 = vld [vmem:[%s17685_s5 + $0x17c8] sm:$0xff]  }
 0x31f   : > { %15615 = vmatprep.subr.bf16.mxu0 %v17006_v5  ;;  %15636 = vmatpush3.bf16.msra.mxu1 %v17005_v4  ;;  %v17044_v4 = vld [vmem:[%s17685_s5 + $0x1708] sm:$0xff]  }
 0x320   : > { %15637 = vmatprep.subr.bf16.mxu1 %v17007_v6  ;;  %v17045_v5 = vld [vmem:[%s17685_s5 + $0x1788] sm:$0xff]   ;;  %v17046_v6 = vld [vmem:[%s17685_s5 + $0x1740] sm:$0xff]  }
 0x322   : > { %15616 = vmatpush3.bf16.msra.mxu0 %v17008_v7  ;;  %v17047_v7 = vld [vmem:[%s17685_s5 + $0x17c0] sm:$0xff]  }
 0x323   : > { %15617 = vmatprep.subr.bf16.mxu0 %v17010_v9  ;;  %15638 = vmatpush3.bf16.msra.mxu1 %v17009_v8  ;;  %v17048_v8 = vld [vmem:[%s17685_s5 + $0x1700] sm:$0xff]  }
 0x324   : > { %15639 = vmatprep.subr.bf16.mxu1 %v17011_v10  ;;  %v17049_v9 = vld [vmem:[%s17685_s5 + $0x1780] sm:$0xff]   ;;  %v3139_v10 = vrot.slane %v18646_v24, %v17727_v35  ;;  %v17059_v24 = vld [vmem:[%s17685_s5 + $0x1868] sm:$0xff]  }
 0x326   : > { %15618 = vmatpush3.bf16.msra.mxu0 %v17012_v11  ;;  %v17051_v11 = vld [vmem:[%s17685_s5 + $0x1878] sm:$0xff]  }
 0x327   : > { %15619 = vmatprep.subr.bf16.mxu0 %v17014_v13  ;;  %15640 = vmatpush3.bf16.msra.mxu1 %v17013_v12  ;;  %v17052_v12 = vld [vmem:[%s17685_s5 + $0x18f8] sm:$0xff]  }
 0x328   : > { %15641 = vmatprep.subr.bf16.mxu1 %v17015_v14  ;;  %v17053_v13 = vld [vmem:[%s17685_s5 + $0x1838] sm:$0xff]  }
 0x329   : > { %v17054_v14 = vld [vmem:[%s17685_s5 + $0x18b8] sm:$0xff]  }
 0x32a   : > { %15620 = vmatpush3.bf16.msra.mxu0 %v17016_v15  ;;  %v3155_v15 = vcombine.high %v3139_v10, %v3139_v10 }
 0x32b   : > { %15649 = vmatprep.subr.bf16.mxu0 %v17018_v18  ;;  %15642 = vmatpush3.bf16.msra.mxu1 %v17017_v20  ;;  %v17056_v18 = vld [vmem:[%s17685_s5 + $0x18f0] sm:$0xff]  }
 0x32c   : > { %15671 = vmatprep.subr.bf16.mxu1 %v17019_v23 }
 0x32d   : > { %v15357_v32 = vpop.f32.mrf.mxu0  ;;  %12301 = vmatmul.mubr.bf16.vlgmr.msra.gmra.mxu0 %v3132_v22  ;;  %v17058_v22 = vld [vmem:[%s17685_s5 + $0x18b0] sm:$0xff]  }
 0x32e   : > { %v15379_v37 = vpop.f32.mrf.mxu1  ;;  %15650 = vmatpush3.bf16.msra.mxu0 %v17020_v25  ;;  %12341 = vmatmul.mubr.bf16.vlgmr.msra.gmra.mxu1 %v3154_v29 }
 0x32f   : > { %v15358_v38 = vpop.f32.mrf.mxu0  ;;  %15651 = vmatprep.subr.bf16.mxu0 %v17022_v30  ;;  %15672 = vmatpush3.bf16.msra.mxu1 %v17021_v27  ;;  %v17060_v27 = vld [vmem:[%s17685_s5 + $0x18e8] sm:$0xff]  }
 0x330   : > { %v15359_v41 = vadd.f32 %v15358_v38, %v15357_v32  ;;  %v15380_v43 = vpop.f32.mrf.mxu1  ;;  %12380 = vmatprep.mubr.bf16.mxu0 %v3153_v34  ;;  %15673 = vmatprep.subr.bf16.mxu1 %v17023_v33  ;;  %v17061_v30 = vld [vmem:[%s17685_s5 + $0x1828] sm:$0xff]   ;;  %v17064_v38 = vld [vmem:[%s17685_s5 + $0x18e0] sm:$0xff]  }
 0x331   : > { %v15360_v44 = vpop.f32.mrf.mxu0  ;;  %v15381_v47 = vadd.f32 %v15380_v43, %v15379_v37  ;;  %12420 = vmatprep.mubr.bf16.mxu1 %v3157_v40  ;;  %v17062_v33 = vld [vmem:[%s17685_s5 + $0x18a8] sm:$0xff]   ;;  %v17066_v40 = vld [vmem:[%s17685_s5 + $0x18a0] sm:$0xff]   ;;  %v17069_v43 = vld [vmem:[%s17685_s5 + $0x1818] sm:$0xff]  }
 0x332   : > { %v11823_v46 = vadd.f32 %v15359_v41, %v18616_v59  ;;  %v15382_v49 = vpop.f32.mrf.mxu1  ;;  %15652 = vmatpush3.bf16.msra.mxu0 %v17024_v36  ;;  %v17035_v59 = vld [vmem:[%s17685_s5 + $0x17d8] sm:$0xff]   ;;  %v17063_v36 = vld [vmem:[%s17685_s5 + $0x1860] sm:$0xff]  }
 0x333   : > { %v15361_v50 = vpop.f32.mrf.mxu0  ;;  %15653 = vmatprep.subr.bf16.mxu0 %v17026_v42  ;;  %15674 = vmatpush3.bf16.msra.mxu1 %v17025_v39  ;;  %v17065_v39 = vld [vmem:[%s17685_s5 + $0x1820] sm:$0xff]   ;;  %v17067_v41 = vld [vmem:[%s17685_s5 + $0x1858] sm:$0xff]   ;;  %v17075_v49 = vld [vmem:[%s17685_s5 + $0x1848] sm:$0xff]  }
 0x334   : > { %v18663_v52 = vadd.f32 %v15381_v47, %v11823_v46  ;;  %v15383_v54 = vpop.f32.mrf.mxu1  ;;  %15675 = vmatprep.subr.bf16.mxu1 %v17027_v45  ;;  %v17068_v42 = vld [vmem:[%s17685_s5 + $0x18d8] sm:$0xff]   ;;  %v17071_v45 = vld [vmem:[%s17685_s5 + $0x1850] sm:$0xff]   ;;  %v17076_v50 = vld [vmem:[%s17685_s5 + $0x18c8] sm:$0xff]  }
 0x335   : > { %v17070_v44 = vld [vmem:[%s17685_s5 + $0x1898] sm:$0xff]   ;;  %v17072_v46 = vld [vmem:[%s17685_s5 + $0x18d0] sm:$0xff]   ;;  %v17080_v54 = vld [vmem:[%s17685_s5 + $0x18c0] sm:$0xff]  }
 0x336   : > { %15654 = vmatpush3.bf16.msra.mxu0 %v17028_v48  ;;  %v17073_v47 = vld [vmem:[%s17685_s5 + $0x1810] sm:$0xff]  }
 0x337   : > { %15655 = vmatprep.subr.bf16.mxu0 %v17030_v53  ;;  %15676 = vmatpush3.bf16.msra.mxu1 %v17029_v51  ;;  %v17074_v48 = vld [vmem:[%s17685_s5 + $0x1890] sm:$0xff]   ;;  %v17077_v51 = vld [vmem:[%s17685_s5 + $0x1808] sm:$0xff]   ;;  %v17079_v53 = vld [vmem:[%s17685_s5 + $0x1840] sm:$0xff]  }
 0x338   : > { %15677 = vmatprep.subr.bf16.mxu1 %v17031_v55  ;;  %v17081_v55 = vld [vmem:[%s17685_s5 + $0x1800] sm:$0xff]  }
 0x33a   : > { %15656 = vmatpush3.bf16.msra.mxu0 %v17032_v56  ;;  %v235_v56 = vld [vmem:[%s19207_s0 + $0x60] sm:$0xff] }
 0x33b   : > { %15657 = vmatprep.subr.bf16.mxu0 %v17034_v58  ;;  %15678 = vmatpush3.bf16.msra.mxu1 %v17033_v57  ;;  %v17082_v57 = vld [vmem:[%s17685_s5 + $0x1880] sm:$0xff]   ;;  %v3165_v58 = vrot.slane %v235_v56, %v17727_v35 }
 0x33c   : > { %15679 = vmatprep.subr.bf16.mxu1 %v17035_v59  ;;  %v3158_v59 = vcombine.high %v235_v56, %v235_v56  ;;  %v17120_v56 = vld [vmem:[%s17685_s5 + $0x1a70] sm:$0xff]  }
 0x33e   : > { %15658 = vmatpush3.bf16.msra.mxu0 %v17036_v60  ;;  %v17083_v60 = vld [vmem:[%s17685_s5 + $0x1978] sm:$0xff]  }
 0x33f   : > { %15659 = vmatprep.subr.bf16.mxu0 %v17038_v62  ;;  %15680 = vmatpush3.bf16.msra.mxu1 %v17037_v61  ;;  %v3173_v61 = vcombine.high %v3165_v58, %v3165_v58  ;;  %v3181_v62 = vrot.slane %v3165_v58, %v17727_v35  ;;  %v17121_v58 = vld [vmem:[%s17685_s5 + $0x1af0] sm:$0xff]  }
 0x340   : > { %15681 = vmatprep.subr.bf16.mxu1 %v17039_v63  ;;  %v17084_v63 = vld [vmem:[%s17685_s5 + $0x19f8] sm:$0xff]  }
 0x342   : > { %15660 = vmatpush3.bf16.msra.mxu0 %v17040_v0  ;;  %v18730_v0 = vrot.slane %v3158_v59, %v17727_v35  ;;  %v17122_v59 = vld [vmem:[%s17685_s5 + $0x1a30] sm:$0xff]  }
 0x343   : > { %15661 = vmatprep.subr.bf16.mxu0 %v17042_v2  ;;  %15682 = vmatpush3.bf16.msra.mxu1 %v17041_v1  ;;  %v17085_v1 = vld [vmem:[%s17685_s5 + $0x1938] sm:$0xff]   ;;  %v3195_v2 = vrot.slane %v3173_v61, %v17727_v35 }
 0x344   : > { %15683 = vmatprep.subr.bf16.mxu1 %v17043_v3  ;;  %v17086_v3 = vld [vmem:[%s17685_s5 + $0x19b8] sm:$0xff]  }
 0x346   : > { %15662 = vmatpush3.bf16.msra.mxu0 %v17044_v4  ;;  %v3174_v4 = vcombine.high %v18730_v0, %v18730_v0 }
 0x347   : > { %15663 = vmatprep.subr.bf16.mxu0 %v17046_v6  ;;  %15684 = vmatpush3.bf16.msra.mxu1 %v17045_v5  ;;  %v3203_v5 = vcombine.high %v3181_v62, %v3181_v62  ;;  %v17087_v6 = vld [vmem:[%s17685_s5 + $0x1970] sm:$0xff]  }
 0x348   : > { %15685 = vmatprep.subr.bf16.mxu1 %v17047_v7  ;;  %v3205_v7 = vcombine.high %v3195_v2, %v3195_v2 }
 0x34a   : > { %15664 = vmatpush3.bf16.msra.mxu0 %v17048_v8 }
 0x34b   : > { %15693 = vmatprep.subr.bf16.mxu0 %v17051_v11  ;;  %15686 = vmatpush3.bf16.msra.mxu1 %v17049_v9  ;;  %v17088_v9 = vld [vmem:[%s17685_s5 + $0x19f0] sm:$0xff]  }
 0x34c   : > { %15715 = vmatprep.subr.bf16.mxu1 %v17052_v12  ;;  %v17089_v11 = vld [vmem:[%s17685_s5 + $0x1930] sm:$0xff]  }
 0x34d   : > { %v15401_v17 = vpop.f32.mrf.mxu0  ;;  %12381 = vmatmul.mubr.bf16.vlgmr.msra.gmra.mxu0 %v3139_v10  ;;  %v3202_v10 = vrot.slane %v3174_v4, %v17727_v35 }
 0x34e   : > { %v15423_v20 = vpop.f32.mrf.mxu1  ;;  %15694 = vmatpush3.bf16.msra.mxu0 %v17053_v13  ;;  %12421 = vmatmul.mubr.bf16.vlgmr.msra.gmra.mxu1 %v3155_v15 }
 0x34f   : > { %v15402_v21 = vpop.f32.mrf.mxu0  ;;  %15695 = vmatprep.subr.bf16.mxu0 %v17055_v16  ;;  %15716 = vmatpush3.bf16.msra.mxu1 %v17054_v14  ;;  %v17090_v14 = vld [vmem:[%s17685_s5 + $0x19b0] sm:$0xff]   ;;  %v3206_v15 = vcombine.high %v3202_v10, %v3202_v10 }
 0x350   : > { %v15403_v23 = vadd.f32 %v15402_v21, %v15401_v17  ;;  %v15424_v25 = vpop.f32.mrf.mxu1  ;;  %15717 = vmatprep.subr.bf16.mxu1 %v17056_v18  ;;  %12460 = vmatprep.mubr.bf16.mxu0 %v3195_v2  ;;  %v17091_v17 = vld [vmem:[%s17685_s5 + $0x1968] sm:$0xff]  }
 0x351   : > { %v15404_v26 = vpop.f32.mrf.mxu0  ;;  %v15425_v29 = vadd.f32 %v15424_v25, %v15423_v20  ;;  %12500 = vmatprep.mubr.bf16.mxu1 %v3205_v7  ;;  %v17092_v20 = vld [vmem:[%s17685_s5 + $0x19e8] sm:$0xff]  }
 0x352   : > { %v11903_v28 = vadd.f32 %v15403_v23, %v18663_v52  ;;  %v15426_v31 = vpop.f32.mrf.mxu1  ;;  %15696 = vmatpush3.bf16.msra.mxu0 %v17057_v19  ;;  %v17078_v52 = vld [vmem:[%s17685_s5 + $0x1888] sm:$0xff]  }
 0x353   : > { %v15405_v32 = vpop.f32.mrf.mxu0  ;;  %15697 = vmatprep.subr.bf16.mxu0 %v17059_v24  ;;  %15718 = vmatpush3.bf16.msra.mxu1 %v17058_v22  ;;  %v17093_v23 = vld [vmem:[%s17685_s5 + $0x1928] sm:$0xff]   ;;  %v17097_v31 = vld [vmem:[%s17685_s5 + $0x1920] sm:$0xff]  }
 0x354   : > { %v18700_v34 = vadd.f32 %v15425_v29, %v11903_v28  ;;  %v15427_v37 = vpop.f32.mrf.mxu1  ;;  %15719 = vmatprep.subr.bf16.mxu1 %v17060_v27  ;;  %v17094_v26 = vld [vmem:[%s17685_s5 + $0x19a8] sm:$0xff]   ;;  %v17095_v28 = vld [vmem:[%s17685_s5 + $0x1960] sm:$0xff]  }
 0x355   : > { %v17098_v32 = vld [vmem:[%s17685_s5 + $0x19a0] sm:$0xff]   ;;  %v17102_v37 = vld [vmem:[%s17685_s5 + $0x1998] sm:$0xff]  }
 0x356   : > { %15698 = vmatpush3.bf16.msra.mxu0 %v17061_v30  ;;  %v17096_v30 = vld [vmem:[%s17685_s5 + $0x19e0] sm:$0xff]  }
 0x357   : > { %15699 = vmatprep.subr.bf16.mxu0 %v17063_v36  ;;  %15720 = vmatpush3.bf16.msra.mxu1 %v17062_v33  ;;  %v17099_v33 = vld [vmem:[%s17685_s5 + $0x1958] sm:$0xff]  }
 0x358   : > { %15721 = vmatprep.subr.bf16.mxu1 %v17064_v38  ;;  %v17101_v36 = vld [vmem:[%s17685_s5 + $0x1918] sm:$0xff]   ;;  %v17103_v38 = vld [vmem:[%s17685_s5 + $0x1950] sm:$0xff]  }
 0x35a   : > { %15700 = vmatpush3.bf16.msra.mxu0 %v17065_v39  ;;  %v17104_v39 = vld [vmem:[%s17685_s5 + $0x19d0] sm:$0xff]  }
 0x35b   : > { %15701 = vmatprep.subr.bf16.mxu0 %v17067_v41  ;;  %15722 = vmatpush3.bf16.msra.mxu1 %v17066_v40  ;;  %v17105_v40 = vld [vmem:[%s17685_s5 + $0x1910] sm:$0xff]  }
 0x35c   : > { %15723 = vmatprep.subr.bf16.mxu1 %v17068_v42  ;;  %v17106_v41 = vld [vmem:[%s17685_s5 + $0x1990] sm:$0xff]   ;;  %v17107_v42 = vld [vmem:[%s17685_s5 + $0x1948] sm:$0xff]  }
 0x35e   : > { %15702 = vmatpush3.bf16.msra.mxu0 %v17069_v43  ;;  %v17108_v43 = vld [vmem:[%s17685_s5 + $0x19c8] sm:$0xff]  }
 0x35f   : > { %15703 = vmatprep.subr.bf16.mxu0 %v17071_v45  ;;  %15724 = vmatpush3.bf16.msra.mxu1 %v17070_v44  ;;  %v17109_v44 = vld [vmem:[%s17685_s5 + $0x1908] sm:$0xff]  }
 0x360   : > { %15725 = vmatprep.subr.bf16.mxu1 %v17072_v46  ;;  %v17110_v45 = vld [vmem:[%s17685_s5 + $0x1988] sm:$0xff]   ;;  %v17111_v46 = vld [vmem:[%s17685_s5 + $0x1940] sm:$0xff]  }
 0x362   : > { %15704 = vmatpush3.bf16.msra.mxu0 %v17073_v47  ;;  %v17112_v47 = vld [vmem:[%s17685_s5 + $0x19c0] sm:$0xff]  }
 0x363   : > { %15705 = vmatprep.subr.bf16.mxu0 %v17075_v49  ;;  %15726 = vmatpush3.bf16.msra.mxu1 %v17074_v48  ;;  %v17113_v48 = vld [vmem:[%s17685_s5 + $0x1900] sm:$0xff]  }
 0x364   : > { %15727 = vmatprep.subr.bf16.mxu1 %v17076_v50  ;;  %v17114_v49 = vld [vmem:[%s17685_s5 + $0x1980] sm:$0xff]   ;;  %v3188_v50 = vrot.slane %v18730_v0, %v17727_v35  ;;  %v17124_v0 = vld [vmem:[%s17685_s5 + $0x1a68] sm:$0xff]  }
 0x366   : > { %15706 = vmatpush3.bf16.msra.mxu0 %v17077_v51  ;;  %v17116_v51 = vld [vmem:[%s17685_s5 + $0x1a78] sm:$0xff]  }
 0x367   : > { %15707 = vmatprep.subr.bf16.mxu0 %v17079_v53  ;;  %15728 = vmatpush3.bf16.msra.mxu1 %v17078_v52  ;;  %v17117_v52 = vld [vmem:[%s17685_s5 + $0x1af8] sm:$0xff]  }
 0x368   : > { %15729 = vmatprep.subr.bf16.mxu1 %v17080_v54  ;;  %v17118_v53 = vld [vmem:[%s17685_s5 + $0x1a38] sm:$0xff]  }
 0x369   : > { %v17119_v54 = vld [vmem:[%s17685_s5 + $0x1ab8] sm:$0xff]  }
 0x36a   : > { %15708 = vmatpush3.bf16.msra.mxu0 %v17081_v55  ;;  %v3204_v55 = vcombine.high %v3188_v50, %v3188_v50 }
 0x36b   : > { %15737 = vmatprep.subr.bf16.mxu0 %v17083_v60  ;;  %15730 = vmatpush3.bf16.msra.mxu1 %v17082_v57 }
 0x36c   : > { %15759 = vmatprep.subr.bf16.mxu1 %v17084_v63 }
 0x36d   : > { %v15445_v8 = vpop.f32.mrf.mxu0  ;;  %12461 = vmatmul.mubr.bf16.vlgmr.msra.gmra.mxu0 %v3181_v62  ;;  %v17123_v62 = vld [vmem:[%s17685_s5 + $0x1ab0] sm:$0xff]  }
 0x36e   : > { %v15467_v12 = vpop.f32.mrf.mxu1  ;;  %15738 = vmatpush3.bf16.msra.mxu0 %v17085_v1  ;;  %12501 = vmatmul.mubr.bf16.vlgmr.msra.gmra.mxu1 %v3203_v5 }
 0x36f   : > { %v15446_v13 = vpop.f32.mrf.mxu0  ;;  %15739 = vmatprep.subr.bf16.mxu0 %v17087_v6  ;;  %15760 = vmatpush3.bf16.msra.mxu1 %v17086_v3  ;;  %v17125_v3 = vld [vmem:[%s17685_s5 + $0x1ae8] sm:$0xff]  }
 0x370   : > { %v15447_v16 = vadd.f32 %v15446_v13, %v15445_v8  ;;  %v15468_v18 = vpop.f32.mrf.mxu1  ;;  %12540 = vmatprep.mubr.bf16.mxu0 %v3202_v10  ;;  %15761 = vmatprep.subr.bf16.mxu1 %v17088_v9  ;;  %v17126_v6 = vld [vmem:[%s17685_s5 + $0x1a28] sm:$0xff]   ;;  %v17129_v13 = vld [vmem:[%s17685_s5 + $0x1ae0] sm:$0xff]  }
 0x371   : > { %v15448_v19 = vpop.f32.mrf.mxu0  ;;  %v15469_v22 = vadd.f32 %v15468_v18, %v15467_v12  ;;  %12580 = vmatprep.mubr.bf16.mxu1 %v3206_v15  ;;  %v17127_v9 = vld [vmem:[%s17685_s5 + $0x1aa8] sm:$0xff]   ;;  %v17131_v15 = vld [vmem:[%s17685_s5 + $0x1aa0] sm:$0xff]   ;;  %v17134_v18 = vld [vmem:[%s17685_s5 + $0x1a18] sm:$0xff]  }
 0x372   : > { %v11983_v21 = vadd.f32 %v15447_v16, %v18700_v34  ;;  %v15470_v24 = vpop.f32.mrf.mxu1  ;;  %15740 = vmatpush3.bf16.msra.mxu0 %v17089_v11  ;;  %v17100_v34 = vld [vmem:[%s17685_s5 + $0x19d8] sm:$0xff]   ;;  %v17128_v11 = vld [vmem:[%s17685_s5 + $0x1a60] sm:$0xff]  }
 0x373   : > { %v15449_v25 = vpop.f32.mrf.mxu0  ;;  %15741 = vmatprep.subr.bf16.mxu0 %v17091_v17  ;;  %15762 = vmatpush3.bf16.msra.mxu1 %v17090_v14  ;;  %v17130_v14 = vld [vmem:[%s17685_s5 + $0x1a20] sm:$0xff]   ;;  %v17132_v16 = vld [vmem:[%s17685_s5 + $0x1a58] sm:$0xff]   ;;  %v17140_v24 = vld [vmem:[%s17685_s5 + $0x1a48] sm:$0xff]  }
 0x374   : > { %v18747_v27 = vadd.f32 %v15469_v22, %v11983_v21  ;;  %v15471_v29 = vpop.f32.mrf.mxu1  ;;  %15763 = vmatprep.subr.bf16.mxu1 %v17092_v20  ;;  %v17133_v17 = vld [vmem:[%s17685_s5 + $0x1ad8] sm:$0xff]   ;;  %v17136_v20 = vld [vmem:[%s17685_s5 + $0x1a50] sm:$0xff]   ;;  %v17141_v25 = vld [vmem:[%s17685_s5 + $0x1ac8] sm:$0xff]  }
 0x375   : > { %v17135_v19 = vld [vmem:[%s17685_s5 + $0x1a98] sm:$0xff]   ;;  %v17137_v21 = vld [vmem:[%s17685_s5 + $0x1ad0] sm:$0xff]   ;;  %v17145_v29 = vld [vmem:[%s17685_s5 + $0x1ac0] sm:$0xff]  }
 0x376   : > { %15742 = vmatpush3.bf16.msra.mxu0 %v17093_v23  ;;  %v17138_v22 = vld [vmem:[%s17685_s5 + $0x1a10] sm:$0xff]  }
 0x377   : > { %15743 = vmatprep.subr.bf16.mxu0 %v17095_v28  ;;  %15764 = vmatpush3.bf16.msra.mxu1 %v17094_v26  ;;  %v17139_v23 = vld [vmem:[%s17685_s5 + $0x1a90] sm:$0xff]   ;;  %v17142_v26 = vld [vmem:[%s17685_s5 + $0x1a08] sm:$0xff]   ;;  %v17144_v28 = vld [vmem:[%s17685_s5 + $0x1a40] sm:$0xff]  }
 0x378   : > { %15765 = vmatprep.subr.bf16.mxu1 %v17096_v30  ;;  %v17146_v30 = vld [vmem:[%s17685_s5 + $0x1a00] sm:$0xff]  }
 0x37a   : > { %15744 = vmatpush3.bf16.msra.mxu0 %v17097_v31  ;;  %v236_v31 = vld [vmem:[%s19207_s0 + $0x68] sm:$0xff] }
 0x37b   : > { %15745 = vmatprep.subr.bf16.mxu0 %v17099_v33  ;;  %15766 = vmatpush3.bf16.msra.mxu1 %v17098_v32  ;;  %v17147_v32 = vld [vmem:[%s17685_s5 + $0x1a80] sm:$0xff]   ;;  %v3214_v33 = vrot.slane %v236_v31, %v17727_v35 }
 0x37c   : > { %15767 = vmatprep.subr.bf16.mxu1 %v17100_v34  ;;  %v3207_v34 = vcombine.high %v236_v31, %v236_v31  ;;  %v17185_v31 = vld [vmem:[%s17685_s5 + $0x1c70] sm:$0xff]  }
 0x37e   : > { %15746 = vmatpush3.bf16.msra.mxu0 %v17101_v36  ;;  %v17148_v36 = vld [vmem:[%s17685_s5 + $0x1b78] sm:$0xff]  }
 0x37f   : > { %15747 = vmatprep.subr.bf16.mxu0 %v17103_v38  ;;  %15768 = vmatpush3.bf16.msra.mxu1 %v17102_v37  ;;  %v3222_v37 = vcombine.high %v3214_v33, %v3214_v33  ;;  %v3230_v38 = vrot.slane %v3214_v33, %v17727_v35  ;;  %v17186_v33 = vld [vmem:[%s17685_s5 + $0x1cf0] sm:$0xff]  }
 0x380   : > { %15769 = vmatprep.subr.bf16.mxu1 %v17104_v39  ;;  %v17149_v39 = vld [vmem:[%s17685_s5 + $0x1bf8] sm:$0xff]  }
 0x382   : > { %15748 = vmatpush3.bf16.msra.mxu0 %v17105_v40  ;;  %v18814_v40 = vrot.slane %v3207_v34, %v17727_v35  ;;  %v17187_v34 = vld [vmem:[%s17685_s5 + $0x1c30] sm:$0xff]  }
 0x383   : > { %15749 = vmatprep.subr.bf16.mxu0 %v17107_v42  ;;  %15770 = vmatpush3.bf16.msra.mxu1 %v17106_v41  ;;  %v17150_v41 = vld [vmem:[%s17685_s5 + $0x1b38] sm:$0xff]   ;;  %v3244_v42 = vrot.slane %v3222_v37, %v17727_v35 }
 0x384   : > { %15771 = vmatprep.subr.bf16.mxu1 %v17108_v43  ;;  %v17151_v43 = vld [vmem:[%s17685_s5 + $0x1bb8] sm:$0xff]  }
 0x386   : > { %15750 = vmatpush3.bf16.msra.mxu0 %v17109_v44  ;;  %v3223_v44 = vcombine.high %v18814_v40, %v18814_v40 }
 0x387   : > { %15751 = vmatprep.subr.bf16.mxu0 %v17111_v46  ;;  %15772 = vmatpush3.bf16.msra.mxu1 %v17110_v45  ;;  %v3252_v45 = vcombine.high %v3230_v38, %v3230_v38  ;;  %v17152_v46 = vld [vmem:[%s17685_s5 + $0x1b70] sm:$0xff]  }
 0x388   : > { %15773 = vmatprep.subr.bf16.mxu1 %v17112_v47  ;;  %v3254_v47 = vcombine.high %v3244_v42, %v3244_v42 }
 0x38a   : > { %15752 = vmatpush3.bf16.msra.mxu0 %v17113_v48 }
 0x38b   : > { %15781 = vmatprep.subr.bf16.mxu0 %v17116_v51  ;;  %15774 = vmatpush3.bf16.msra.mxu1 %v17114_v49  ;;  %v17153_v49 = vld [vmem:[%s17685_s5 + $0x1bf0] sm:$0xff]  }
 0x38c   : > { %15803 = vmatprep.subr.bf16.mxu1 %v17117_v52  ;;  %v17154_v51 = vld [vmem:[%s17685_s5 + $0x1b30] sm:$0xff]  }
 0x38d   : > { %v15489_v57 = vpop.f32.mrf.mxu0  ;;  %12541 = vmatmul.mubr.bf16.vlgmr.msra.gmra.mxu0 %v3188_v50  ;;  %v3251_v50 = vrot.slane %v3223_v44, %v17727_v35 }
 0x38e   : > { %v15511_v60 = vpop.f32.mrf.mxu1  ;;  %15782 = vmatpush3.bf16.msra.mxu0 %v17118_v53  ;;  %12581 = vmatmul.mubr.bf16.vlgmr.msra.gmra.mxu1 %v3204_v55 }
 0x38f   : > { %v15490_v61 = vpop.f32.mrf.mxu0  ;;  %15783 = vmatprep.subr.bf16.mxu0 %v17120_v56  ;;  %15804 = vmatpush3.bf16.msra.mxu1 %v17119_v54  ;;  %v17155_v54 = vld [vmem:[%s17685_s5 + $0x1bb0] sm:$0xff]   ;;  %v3255_v55 = vcombine.high %v3251_v50, %v3251_v50 }
 0x390   : > { %v15491_v63 = vadd.f32 %v15490_v61, %v15489_v57  ;;  %v15512_v1 = vpop.f32.mrf.mxu1  ;;  %15805 = vmatprep.subr.bf16.mxu1 %v17121_v58  ;;  %12620 = vmatprep.mubr.bf16.mxu0 %v3244_v42  ;;  %v17156_v57 = vld [vmem:[%s17685_s5 + $0x1b68] sm:$0xff]  }
 0x391   : > { %v15492_v2 = vpop.f32.mrf.mxu0  ;;  %v15513_v5 = vadd.f32 %v15512_v1, %v15511_v60  ;;  %12660 = vmatprep.mubr.bf16.mxu1 %v3254_v47  ;;  %v17157_v60 = vld [vmem:[%s17685_s5 + $0x1be8] sm:$0xff]  }
 0x392   : > { %v12063_v4 = vadd.f32 %v15491_v63, %v18747_v27  ;;  %v15514_v7 = vpop.f32.mrf.mxu1  ;;  %15784 = vmatpush3.bf16.msra.mxu0 %v17122_v59  ;;  %v17143_v27 = vld [vmem:[%s17685_s5 + $0x1a88] sm:$0xff]  }
 0x393   : > { %v15493_v8 = vpop.f32.mrf.mxu0  ;;  %15785 = vmatprep.subr.bf16.mxu0 %v17124_v0  ;;  %15806 = vmatpush3.bf16.msra.mxu1 %v17123_v62  ;;  %v17158_v63 = vld [vmem:[%s17685_s5 + $0x1b28] sm:$0xff]   ;;  %v17162_v7 = vld [vmem:[%s17685_s5 + $0x1b20] sm:$0xff]  }
 0x394   : > { %v18784_v10 = vadd.f32 %v15513_v5, %v12063_v4  ;;  %v15515_v12 = vpop.f32.mrf.mxu1  ;;  %15807 = vmatprep.subr.bf16.mxu1 %v17125_v3  ;;  %v17159_v2 = vld [vmem:[%s17685_s5 + $0x1ba8] sm:$0xff]   ;;  %v17160_v4 = vld [vmem:[%s17685_s5 + $0x1b60] sm:$0xff]  }
 0x395   : > { %v17163_v8 = vld [vmem:[%s17685_s5 + $0x1ba0] sm:$0xff]   ;;  %v17167_v12 = vld [vmem:[%s17685_s5 + $0x1b98] sm:$0xff]  }
 0x396   : > { %15786 = vmatpush3.bf16.msra.mxu0 %v17126_v6  ;;  %v17161_v6 = vld [vmem:[%s17685_s5 + $0x1be0] sm:$0xff]  }
 0x397   : > { %15787 = vmatprep.subr.bf16.mxu0 %v17128_v11  ;;  %15808 = vmatpush3.bf16.msra.mxu1 %v17127_v9  ;;  %v17164_v9 = vld [vmem:[%s17685_s5 + $0x1b58] sm:$0xff]  }
 0x398   : > { %15809 = vmatprep.subr.bf16.mxu1 %v17129_v13  ;;  %v17166_v11 = vld [vmem:[%s17685_s5 + $0x1b18] sm:$0xff]   ;;  %v17168_v13 = vld [vmem:[%s17685_s5 + $0x1b50] sm:$0xff]  }
 0x39a   : > { %15788 = vmatpush3.bf16.msra.mxu0 %v17130_v14  ;;  %v17169_v14 = vld [vmem:[%s17685_s5 + $0x1bd0] sm:$0xff]  }
 0x39b   : > { %15789 = vmatprep.subr.bf16.mxu0 %v17132_v16  ;;  %15810 = vmatpush3.bf16.msra.mxu1 %v17131_v15  ;;  %v17170_v15 = vld [vmem:[%s17685_s5 + $0x1b10] sm:$0xff]  }
 0x39c   : > { %15811 = vmatprep.subr.bf16.mxu1 %v17133_v17  ;;  %v17171_v16 = vld [vmem:[%s17685_s5 + $0x1b90] sm:$0xff]   ;;  %v17172_v17 = vld [vmem:[%s17685_s5 + $0x1b48] sm:$0xff]  }
 0x39e   : > { %15790 = vmatpush3.bf16.msra.mxu0 %v17134_v18  ;;  %v17173_v18 = vld [vmem:[%s17685_s5 + $0x1bc8] sm:$0xff]  }
 0x39f   : > { %15791 = vmatprep.subr.bf16.mxu0 %v17136_v20  ;;  %15812 = vmatpush3.bf16.msra.mxu1 %v17135_v19  ;;  %v17174_v19 = vld [vmem:[%s17685_s5 + $0x1b08] sm:$0xff]  }
 0x3a0   : > { %15813 = vmatprep.subr.bf16.mxu1 %v17137_v21  ;;  %v17175_v20 = vld [vmem:[%s17685_s5 + $0x1b88] sm:$0xff]   ;;  %v17176_v21 = vld [vmem:[%s17685_s5 + $0x1b40] sm:$0xff]  }
 0x3a2   : > { %15792 = vmatpush3.bf16.msra.mxu0 %v17138_v22  ;;  %v17177_v22 = vld [vmem:[%s17685_s5 + $0x1bc0] sm:$0xff]  }
 0x3a3   : > { %15793 = vmatprep.subr.bf16.mxu0 %v17140_v24  ;;  %15814 = vmatpush3.bf16.msra.mxu1 %v17139_v23  ;;  %v17178_v23 = vld [vmem:[%s17685_s5 + $0x1b00] sm:$0xff]  }
 0x3a4   : > { %15815 = vmatprep.subr.bf16.mxu1 %v17141_v25  ;;  %v17179_v24 = vld [vmem:[%s17685_s5 + $0x1b80] sm:$0xff]   ;;  %v3237_v25 = vrot.slane %v18814_v40, %v17727_v35  ;;  %v17189_v40 = vld [vmem:[%s17685_s5 + $0x1c68] sm:$0xff]  }
 0x3a6   : > { %15794 = vmatpush3.bf16.msra.mxu0 %v17142_v26  ;;  %v17181_v26 = vld [vmem:[%s17685_s5 + $0x1c78] sm:$0xff]  }
 0x3a7   : > { %15795 = vmatprep.subr.bf16.mxu0 %v17144_v28  ;;  %15816 = vmatpush3.bf16.msra.mxu1 %v17143_v27  ;;  %v17182_v27 = vld [vmem:[%s17685_s5 + $0x1cf8] sm:$0xff]  }
 0x3a8   : > { %15817 = vmatprep.subr.bf16.mxu1 %v17145_v29  ;;  %v17183_v28 = vld [vmem:[%s17685_s5 + $0x1c38] sm:$0xff]  }
 0x3a9   : > { %v17184_v29 = vld [vmem:[%s17685_s5 + $0x1cb8] sm:$0xff]  }
 0x3aa   : > { %15796 = vmatpush3.bf16.msra.mxu0 %v17146_v30  ;;  %v3253_v30 = vcombine.high %v3237_v25, %v3237_v25 }
 0x3ab   : > { %15825 = vmatprep.subr.bf16.mxu0 %v17148_v36  ;;  %15818 = vmatpush3.bf16.msra.mxu1 %v17147_v32 }
 0x3ac   : > { %15847 = vmatprep.subr.bf16.mxu1 %v17149_v39 }
 0x3ad   : > { %v15533_v48 = vpop.f32.mrf.mxu0  ;;  %12621 = vmatmul.mubr.bf16.vlgmr.msra.gmra.mxu0 %v3230_v38  ;;  %v17188_v38 = vld [vmem:[%s17685_s5 + $0x1cb0] sm:$0xff]  }
 0x3ae   : > { %v15555_v52 = vpop.f32.mrf.mxu1  ;;  %15826 = vmatpush3.bf16.msra.mxu0 %v17150_v41  ;;  %12661 = vmatmul.mubr.bf16.vlgmr.msra.gmra.mxu1 %v3252_v45 }
 0x3af   : > { %v15534_v53 = vpop.f32.mrf.mxu0  ;;  %15827 = vmatprep.subr.bf16.mxu0 %v17152_v46  ;;  %15848 = vmatpush3.bf16.msra.mxu1 %v17151_v43  ;;  %v17190_v43 = vld [vmem:[%s17685_s5 + $0x1ce8] sm:$0xff]  }
 0x3b0   : > { %v15535_v56 = vadd.f32 %v15534_v53, %v15533_v48  ;;  %v15556_v58 = vpop.f32.mrf.mxu1  ;;  %12700 = vmatprep.mubr.bf16.mxu0 %v3251_v50  ;;  %15849 = vmatprep.subr.bf16.mxu1 %v17153_v49  ;;  %v17191_v46 = vld [vmem:[%s17685_s5 + $0x1c28] sm:$0xff]   ;;  %v17194_v53 = vld [vmem:[%s17685_s5 + $0x1ce0] sm:$0xff]  }
 0x3b1   : > { %v15536_v59 = vpop.f32.mrf.mxu0  ;;  %v15557_v62 = vadd.f32 %v15556_v58, %v15555_v52  ;;  %12740 = vmatprep.mubr.bf16.mxu1 %v3255_v55  ;;  %v17192_v49 = vld [vmem:[%s17685_s5 + $0x1ca8] sm:$0xff]   ;;  %v17196_v55 = vld [vmem:[%s17685_s5 + $0x1ca0] sm:$0xff]   ;;  %v17199_v58 = vld [vmem:[%s17685_s5 + $0x1c18] sm:$0xff]  }
 0x3b2   : > { %v12143_v61 = vadd.f32 %v15535_v56, %v18784_v10  ;;  %v15558_v0 = vpop.f32.mrf.mxu1  ;;  %15828 = vmatpush3.bf16.msra.mxu0 %v17154_v51  ;;  %v17165_v10 = vld [vmem:[%s17685_s5 + $0x1bd8] sm:$0xff]   ;;  %v17193_v51 = vld [vmem:[%s17685_s5 + $0x1c60] sm:$0xff]  }
 0x3b3   : > { %v15537_v1 = vpop.f32.mrf.mxu0  ;;  %15829 = vmatprep.subr.bf16.mxu0 %v17156_v57  ;;  %15850 = vmatpush3.bf16.msra.mxu1 %v17155_v54  ;;  %v17195_v54 = vld [vmem:[%s17685_s5 + $0x1c20] sm:$0xff]   ;;  %v17197_v56 = vld [vmem:[%s17685_s5 + $0x1c58] sm:$0xff]   ;;  %v17205_v0 = vld [vmem:[%s17685_s5 + $0x1c48] sm:$0xff]  }
 0x3b4   : > { %v18831_v3 = vadd.f32 %v15557_v62, %v12143_v61  ;;  %v15559_v5 = vpop.f32.mrf.mxu1  ;;  %15851 = vmatprep.subr.bf16.mxu1 %v17157_v60  ;;  %v17198_v57 = vld [vmem:[%s17685_s5 + $0x1cd8] sm:$0xff]   ;;  %v17201_v60 = vld [vmem:[%s17685_s5 + $0x1c50] sm:$0xff]   ;;  %v17206_v1 = vld [vmem:[%s17685_s5 + $0x1cc8] sm:$0xff]  }
 0x3b5   : > { %v17200_v59 = vld [vmem:[%s17685_s5 + $0x1c98] sm:$0xff]   ;;  %v17202_v61 = vld [vmem:[%s17685_s5 + $0x1cd0] sm:$0xff]   ;;  %v17210_v5 = vld [vmem:[%s17685_s5 + $0x1cc0] sm:$0xff]  }
 0x3b6   : > { %15830 = vmatpush3.bf16.msra.mxu0 %v17158_v63  ;;  %v17203_v62 = vld [vmem:[%s17685_s5 + $0x1c10] sm:$0xff]  }
 0x3b7   : > { %15831 = vmatprep.subr.bf16.mxu0 %v17160_v4  ;;  %15852 = vmatpush3.bf16.msra.mxu1 %v17159_v2  ;;  %v17204_v63 = vld [vmem:[%s17685_s5 + $0x1c90] sm:$0xff]   ;;  %v17207_v2 = vld [vmem:[%s17685_s5 + $0x1c08] sm:$0xff]   ;;  %v17209_v4 = vld [vmem:[%s17685_s5 + $0x1c40] sm:$0xff]  }
 0x3b8   : > { %15853 = vmatprep.subr.bf16.mxu1 %v17161_v6  ;;  %v17211_v6 = vld [vmem:[%s17685_s5 + $0x1c00] sm:$0xff]  }
 0x3ba   : > { %15832 = vmatpush3.bf16.msra.mxu0 %v17162_v7  ;;  %v237_v7 = vld [vmem:[%s19207_s0 + $0x70] sm:$0xff] }
 0x3bb   : > { %15833 = vmatprep.subr.bf16.mxu0 %v17164_v9  ;;  %15854 = vmatpush3.bf16.msra.mxu1 %v17163_v8  ;;  %v3263_v8 = vrot.slane %v237_v7, %v17727_v35  ;;  %v17213_v9 = vld [vmem:[%s17685_s5 + $0x1d78] sm:$0xff]  }
 0x3bc   : > { %15855 = vmatprep.subr.bf16.mxu1 %v17165_v10  ;;  %v3256_v10 = vcombine.high %v237_v7, %v237_v7  ;;  %v17250_v7 = vld [vmem:[%s17685_s5 + $0x1e70] sm:$0xff]  }
 0x3be   : > { %15834 = vmatpush3.bf16.msra.mxu0 %v17166_v11  ;;  %v17212_v11 = vld [vmem:[%s17685_s5 + $0x1c80] sm:$0xff]  }
 0x3bf   : > { %15835 = vmatprep.subr.bf16.mxu0 %v17168_v13  ;;  %15856 = vmatpush3.bf16.msra.mxu1 %v17167_v12  ;;  %v3271_v12 = vcombine.high %v3263_v8, %v3263_v8  ;;  %v3279_v13 = vrot.slane %v3263_v8, %v17727_v35 }
 0x3c0   : > { %15857 = vmatprep.subr.bf16.mxu1 %v17169_v14  ;;  %v17214_v14 = vld [vmem:[%s17685_s5 + $0x1df8] sm:$0xff]  }
 0x3c2   : > { %15836 = vmatpush3.bf16.msra.mxu0 %v17170_v15  ;;  %v18898_v15 = vrot.slane %v3256_v10, %v17727_v35  ;;  %v17252_v10 = vld [vmem:[%s17685_s5 + $0x1e30] sm:$0xff]  }
 0x3c3   : > { %15837 = vmatprep.subr.bf16.mxu0 %v17172_v17  ;;  %15858 = vmatpush3.bf16.msra.mxu1 %v17171_v16  ;;  %v17215_v16 = vld [vmem:[%s17685_s5 + $0x1d38] sm:$0xff]   ;;  %v3293_v17 = vrot.slane %v3271_v12, %v17727_v35 }
 0x3c4   : > { %15859 = vmatprep.subr.bf16.mxu1 %v17173_v18  ;;  %v17216_v18 = vld [vmem:[%s17685_s5 + $0x1db8] sm:$0xff]  }
 0x3c6   : > { %15838 = vmatpush3.bf16.msra.mxu0 %v17174_v19  ;;  %v3272_v19 = vcombine.high %v18898_v15, %v18898_v15 }
 0x3c7   : > { %15839 = vmatprep.subr.bf16.mxu0 %v17176_v21  ;;  %15860 = vmatpush3.bf16.msra.mxu1 %v17175_v20  ;;  %v3301_v20 = vcombine.high %v3279_v13, %v3279_v13  ;;  %v17217_v21 = vld [vmem:[%s17685_s5 + $0x1d70] sm:$0xff]  }
 0x3c8   : > { %15861 = vmatprep.subr.bf16.mxu1 %v17177_v22  ;;  %v3303_v22 = vcombine.high %v3293_v17, %v3293_v17 }
 0x3ca   : > { %15840 = vmatpush3.bf16.msra.mxu0 %v17178_v23 }
 0x3cb   : > { %15869 = vmatprep.subr.bf16.mxu0 %v17181_v26  ;;  %15862 = vmatpush3.bf16.msra.mxu1 %v17179_v24  ;;  %v17218_v24 = vld [vmem:[%s17685_s5 + $0x1df0] sm:$0xff]  }
 0x3cc   : > { %15891 = vmatprep.subr.bf16.mxu1 %v17182_v27  ;;  %v17219_v26 = vld [vmem:[%s17685_s5 + $0x1d30] sm:$0xff]  }
 0x3cd   : > { %v15577_v32 = vpop.f32.mrf.mxu0  ;;  %12701 = vmatmul.mubr.bf16.vlgmr.msra.gmra.mxu0 %v3237_v25  ;;  %v3300_v25 = vrot.slane %v3272_v19, %v17727_v35 }
 0x3ce   : > { %v15599_v36 = vpop.f32.mrf.mxu1  ;;  %15870 = vmatpush3.bf16.msra.mxu0 %v17183_v28  ;;  %12741 = vmatmul.mubr.bf16.vlgmr.msra.gmra.mxu1 %v3253_v30 }
 0x3cf   : > { %v15578_v37 = vpop.f32.mrf.mxu0  ;;  %15871 = vmatprep.subr.bf16.mxu0 %v17185_v31  ;;  %15892 = vmatpush3.bf16.msra.mxu1 %v17184_v29  ;;  %v17220_v29 = vld [vmem:[%s17685_s5 + $0x1db0] sm:$0xff]   ;;  %v3304_v30 = vcombine.high %v3300_v25, %v3300_v25 }
 0x3d0   : > { %v15579_v39 = vadd.f32 %v15578_v37, %v15577_v32  ;;  %v15600_v41 = vpop.f32.mrf.mxu1  ;;  %15893 = vmatprep.subr.bf16.mxu1 %v17186_v33  ;;  %12780 = vmatprep.mubr.bf16.mxu0 %v3293_v17  ;;  %v17221_v32 = vld [vmem:[%s17685_s5 + $0x1d68] sm:$0xff]  }
 0x3d1   : > { %v15580_v42 = vpop.f32.mrf.mxu0  ;;  %v15601_v45 = vadd.f32 %v15600_v41, %v15599_v36  ;;  %12820 = vmatprep.mubr.bf16.mxu1 %v3303_v22  ;;  %v17222_v36 = vld [vmem:[%s17685_s5 + $0x1de8] sm:$0xff]  }
 0x3d2   : > { %v12223_v44 = vadd.f32 %v15579_v39, %v18831_v3  ;;  %v15602_v47 = vpop.f32.mrf.mxu1  ;;  %15872 = vmatpush3.bf16.msra.mxu0 %v17187_v34  ;;  %v17208_v3 = vld [vmem:[%s17685_s5 + $0x1c88] sm:$0xff]  }
 0x3d3   : > { %v15581_v48 = vpop.f32.mrf.mxu0  ;;  %15873 = vmatprep.subr.bf16.mxu0 %v17189_v40  ;;  %15894 = vmatpush3.bf16.msra.mxu1 %v17188_v38  ;;  %v17223_v39 = vld [vmem:[%s17685_s5 + $0x1d28] sm:$0xff]   ;;  %v17227_v47 = vld [vmem:[%s17685_s5 + $0x1d20] sm:$0xff]  }
 0x3d4   : > { %v18868_v50 = vadd.f32 %v15601_v45, %v12223_v44  ;;  %v15603_v52 = vpop.f32.mrf.mxu1  ;;  %15895 = vmatprep.subr.bf16.mxu1 %v17190_v43  ;;  %v17224_v42 = vld [vmem:[%s17685_s5 + $0x1da8] sm:$0xff]   ;;  %v17225_v44 = vld [vmem:[%s17685_s5 + $0x1d60] sm:$0xff]  }
 0x3d5   : > { %v17228_v48 = vld [vmem:[%s17685_s5 + $0x1da0] sm:$0xff]   ;;  %v17232_v52 = vld [vmem:[%s17685_s5 + $0x1d98] sm:$0xff]  }
 0x3d6   : > { %15874 = vmatpush3.bf16.msra.mxu0 %v17191_v46  ;;  %v17226_v46 = vld [vmem:[%s17685_s5 + $0x1de0] sm:$0xff]  }
 0x3d7   : > { %15875 = vmatprep.subr.bf16.mxu0 %v17193_v51  ;;  %15896 = vmatpush3.bf16.msra.mxu1 %v17192_v49  ;;  %v17229_v49 = vld [vmem:[%s17685_s5 + $0x1d58] sm:$0xff]  }
 0x3d8   : > { %15897 = vmatprep.subr.bf16.mxu1 %v17194_v53  ;;  %v17231_v51 = vld [vmem:[%s17685_s5 + $0x1d18] sm:$0xff]   ;;  %v17233_v53 = vld [vmem:[%s17685_s5 + $0x1d50] sm:$0xff]  }
 0x3da   : > { %15876 = vmatpush3.bf16.msra.mxu0 %v17195_v54  ;;  %v17234_v54 = vld [vmem:[%s17685_s5 + $0x1dd0] sm:$0xff]  }
 0x3db   : > { %15877 = vmatprep.subr.bf16.mxu0 %v17197_v56  ;;  %15898 = vmatpush3.bf16.msra.mxu1 %v17196_v55  ;;  %v17235_v55 = vld [vmem:[%s17685_s5 + $0x1d10] sm:$0xff]  }
 0x3dc   : > { %15899 = vmatprep.subr.bf16.mxu1 %v17198_v57  ;;  %v17236_v56 = vld [vmem:[%s17685_s5 + $0x1d90] sm:$0xff]   ;;  %v17237_v57 = vld [vmem:[%s17685_s5 + $0x1d48] sm:$0xff]  }
 0x3de   : > { %15878 = vmatpush3.bf16.msra.mxu0 %v17199_v58  ;;  %v17238_v58 = vld [vmem:[%s17685_s5 + $0x1dc8] sm:$0xff]  }
 0x3df   : > { %15879 = vmatprep.subr.bf16.mxu0 %v17201_v60  ;;  %15900 = vmatpush3.bf16.msra.mxu1 %v17200_v59  ;;  %v17239_v59 = vld [vmem:[%s17685_s5 + $0x1d08] sm:$0xff]  }
 0x3e0   : > { %15901 = vmatprep.subr.bf16.mxu1 %v17202_v61  ;;  %v17240_v60 = vld [vmem:[%s17685_s5 + $0x1d88] sm:$0xff]   ;;  %v17241_v61 = vld [vmem:[%s17685_s5 + $0x1d40] sm:$0xff]  }
 0x3e2   : > { %15880 = vmatpush3.bf16.msra.mxu0 %v17203_v62  ;;  %v17242_v62 = vld [vmem:[%s17685_s5 + $0x1dc0] sm:$0xff]  }
 0x3e3   : > { %15881 = vmatprep.subr.bf16.mxu0 %v17205_v0  ;;  %15902 = vmatpush3.bf16.msra.mxu1 %v17204_v63  ;;  %v17243_v63 = vld [vmem:[%s17685_s5 + $0x1d00] sm:$0xff]  }
 0x3e4   : > { %15903 = vmatprep.subr.bf16.mxu1 %v17206_v1  ;;  %v17244_v0 = vld [vmem:[%s17685_s5 + $0x1d80] sm:$0xff]   ;;  %v3286_v1 = vrot.slane %v18898_v15, %v17727_v35  ;;  %v17254_v15 = vld [vmem:[%s17685_s5 + $0x1e68] sm:$0xff]  }
 0x3e6   : > { %15882 = vmatpush3.bf16.msra.mxu0 %v17207_v2  ;;  %v17246_v2 = vld [vmem:[%s17685_s5 + $0x1e78] sm:$0xff]  }
 0x3e7   : > { %15883 = vmatprep.subr.bf16.mxu0 %v17209_v4  ;;  %15904 = vmatpush3.bf16.msra.mxu1 %v17208_v3  ;;  %v17247_v3 = vld [vmem:[%s17685_s5 + $0x1ef8] sm:$0xff]  }
 0x3e8   : > { %15905 = vmatprep.subr.bf16.mxu1 %v17210_v5  ;;  %v17248_v4 = vld [vmem:[%s17685_s5 + $0x1e38] sm:$0xff]  }
 0x3e9   : > { %v17249_v5 = vld [vmem:[%s17685_s5 + $0x1eb8] sm:$0xff]  }
 0x3ea   : > { %15884 = vmatpush3.bf16.msra.mxu0 %v17211_v6  ;;  %v3302_v6 = vcombine.high %v3286_v1, %v3286_v1 }
 0x3eb   : > { %15913 = vmatprep.subr.bf16.mxu0 %v17213_v9  ;;  %15906 = vmatpush3.bf16.msra.mxu1 %v17212_v11  ;;  %v17251_v9 = vld [vmem:[%s17685_s5 + $0x1ef0] sm:$0xff]  }
 0x3ec   : > { %15935 = vmatprep.subr.bf16.mxu1 %v17214_v14 }
 0x3ed   : > { %v15621_v23 = vpop.f32.mrf.mxu0  ;;  %12781 = vmatmul.mubr.bf16.vlgmr.msra.gmra.mxu0 %v3279_v13  ;;  %v17253_v13 = vld [vmem:[%s17685_s5 + $0x1eb0] sm:$0xff]  }
 0x3ee   : > { %v15643_v27 = vpop.f32.mrf.mxu1  ;;  %15914 = vmatpush3.bf16.msra.mxu0 %v17215_v16  ;;  %12821 = vmatmul.mubr.bf16.vlgmr.msra.gmra.mxu1 %v3301_v20 }
 0x3ef   : > { %v15622_v28 = vpop.f32.mrf.mxu0  ;;  %15915 = vmatprep.subr.bf16.mxu0 %v17217_v21  ;;  %15936 = vmatpush3.bf16.msra.mxu1 %v17216_v18  ;;  %v17255_v18 = vld [vmem:[%s17685_s5 + $0x1ee8] sm:$0xff]  }
 0x3f0   : > { %v15623_v31 = vadd.f32 %v15622_v28, %v15621_v23  ;;  %v15644_v33 = vpop.f32.mrf.mxu1  ;;  %12860 = vmatprep.mubr.bf16.mxu0 %v3300_v25  ;;  %15937 = vmatprep.subr.bf16.mxu1 %v17218_v24  ;;  %v17256_v21 = vld [vmem:[%s17685_s5 + $0x1e28] sm:$0xff]   ;;  %v17259_v28 = vld [vmem:[%s17685_s5 + $0x1ee0] sm:$0xff]  }
 0x3f1   : > { %v15624_v34 = vpop.f32.mrf.mxu0  ;;  %v15645_v38 = vadd.f32 %v15644_v33, %v15643_v27  ;;  %12900 = vmatprep.mubr.bf16.mxu1 %v3304_v30  ;;  %v17257_v24 = vld [vmem:[%s17685_s5 + $0x1ea8] sm:$0xff]   ;;  %v17261_v30 = vld [vmem:[%s17685_s5 + $0x1ea0] sm:$0xff]   ;;  %v17264_v33 = vld [vmem:[%s17685_s5 + $0x1e18] sm:$0xff]  }
 0x3f2   : > { %v12303_v37 = vadd.f32 %v15623_v31, %v18868_v50  ;;  %v15646_v40 = vpop.f32.mrf.mxu1  ;;  %15916 = vmatpush3.bf16.msra.mxu0 %v17219_v26  ;;  %v17230_v50 = vld [vmem:[%s17685_s5 + $0x1dd8] sm:$0xff]   ;;  %v17258_v26 = vld [vmem:[%s17685_s5 + $0x1e60] sm:$0xff]  }
 0x3f3   : > { %v15625_v41 = vpop.f32.mrf.mxu0  ;;  %15917 = vmatprep.subr.bf16.mxu0 %v17221_v32  ;;  %15938 = vmatpush3.bf16.msra.mxu1 %v17220_v29  ;;  %v17260_v29 = vld [vmem:[%s17685_s5 + $0x1e20] sm:$0xff]   ;;  %v17262_v31 = vld [vmem:[%s17685_s5 + $0x1e58] sm:$0xff]   ;;  %v17270_v40 = vld [vmem:[%s17685_s5 + $0x1e48] sm:$0xff]  }
 0x3f4   : > { %v18915_v43 = vadd.f32 %v15645_v38, %v12303_v37  ;;  %v15647_v45 = vpop.f32.mrf.mxu1  ;;  %15939 = vmatprep.subr.bf16.mxu1 %v17222_v36  ;;  %v17263_v32 = vld [vmem:[%s17685_s5 + $0x1ed8] sm:$0xff]   ;;  %v17266_v36 = vld [vmem:[%s17685_s5 + $0x1e50] sm:$0xff]   ;;  %v17271_v41 = vld [vmem:[%s17685_s5 + $0x1ec8] sm:$0xff]  }
 0x3f5   : > { %v17265_v34 = vld [vmem:[%s17685_s5 + $0x1e98] sm:$0xff]   ;;  %v17267_v37 = vld [vmem:[%s17685_s5 + $0x1ed0] sm:$0xff]   ;;  %v17275_v45 = vld [vmem:[%s17685_s5 + $0x1ec0] sm:$0xff]  }
 0x3f6   : > { %15918 = vmatpush3.bf16.msra.mxu0 %v17223_v39  ;;  %v17268_v38 = vld [vmem:[%s17685_s5 + $0x1e10] sm:$0xff]  }
 0x3f7   : > { %15919 = vmatprep.subr.bf16.mxu0 %v17225_v44  ;;  %15940 = vmatpush3.bf16.msra.mxu1 %v17224_v42  ;;  %v17269_v39 = vld [vmem:[%s17685_s5 + $0x1e90] sm:$0xff]   ;;  %v17272_v42 = vld [vmem:[%s17685_s5 + $0x1e08] sm:$0xff]   ;;  %v17274_v44 = vld [vmem:[%s17685_s5 + $0x1e40] sm:$0xff]  }
 0x3f8   : > { %15941 = vmatprep.subr.bf16.mxu1 %v17226_v46  ;;  %v17276_v46 = vld [vmem:[%s17685_s5 + $0x1e00] sm:$0xff]  }
 0x3fa   : > { %15920 = vmatpush3.bf16.msra.mxu0 %v17227_v47  ;;  %v238_v47 = vld [vmem:[%s19207_s0 + $0x78] sm:$0xff] }
 0x3fb   : > { %15921 = vmatprep.subr.bf16.mxu0 %v17229_v49  ;;  %15942 = vmatpush3.bf16.msra.mxu1 %v17228_v48  ;;  %v17277_v48 = vld [vmem:[%s17685_s5 + $0x1e80] sm:$0xff]   ;;  %v3312_v49 = vrot.slane %v238_v47, %v17727_v35 }
 0x3fc   : > { %15943 = vmatprep.subr.bf16.mxu1 %v17230_v50  ;;  %v3305_v50 = vcombine.high %v238_v47, %v238_v47  ;;  %v17315_v47 = vld [vmem:[%s17685_s5 + $0x2070] sm:$0xff]  }
 0x3fe   : > { %15922 = vmatpush3.bf16.msra.mxu0 %v17231_v51  ;;  %v17278_v51 = vld [vmem:[%s17685_s5 + $0x1f78] sm:$0xff]  }
 0x3ff   : > { %15923 = vmatprep.subr.bf16.mxu0 %v17233_v53  ;;  %15944 = vmatpush3.bf16.msra.mxu1 %v17232_v52  ;;  %v3320_v52 = vcombine.high %v3312_v49, %v3312_v49  ;;  %v3328_v53 = vrot.slane %v3312_v49, %v17727_v35  ;;  %v17316_v49 = vld [vmem:[%s17685_s5 + $0x20f0] sm:$0xff]  }
 0x400   : > { %15945 = vmatprep.subr.bf16.mxu1 %v17234_v54  ;;  %v17279_v54 = vld [vmem:[%s17685_s5 + $0x1ff8] sm:$0xff]  }
 0x402   : > { %15924 = vmatpush3.bf16.msra.mxu0 %v17235_v55  ;;  %v18982_v55 = vrot.slane %v3305_v50, %v17727_v35  ;;  %v17317_v50 = vld [vmem:[%s17685_s5 + $0x2030] sm:$0xff]  }
 0x403   : > { %15925 = vmatprep.subr.bf16.mxu0 %v17237_v57  ;;  %15946 = vmatpush3.bf16.msra.mxu1 %v17236_v56  ;;  %v17280_v56 = vld [vmem:[%s17685_s5 + $0x1f38] sm:$0xff]   ;;  %v3342_v57 = vrot.slane %v3320_v52, %v17727_v35 }
 0x404   : > { %15947 = vmatprep.subr.bf16.mxu1 %v17238_v58  ;;  %v17281_v58 = vld [vmem:[%s17685_s5 + $0x1fb8] sm:$0xff]  }
 0x406   : > { %15926 = vmatpush3.bf16.msra.mxu0 %v17239_v59  ;;  %v3321_v59 = vcombine.high %v18982_v55, %v18982_v55 }
 0x407   : > { %15927 = vmatprep.subr.bf16.mxu0 %v17241_v61  ;;  %15948 = vmatpush3.bf16.msra.mxu1 %v17240_v60  ;;  %v3350_v60 = vcombine.high %v3328_v53, %v3328_v53  ;;  %v17282_v61 = vld [vmem:[%s17685_s5 + $0x1f70] sm:$0xff]  }
 0x408   : > { %15949 = vmatprep.subr.bf16.mxu1 %v17242_v62  ;;  %v3352_v62 = vcombine.high %v3342_v57, %v3342_v57 }
 0x40a   : > { %15928 = vmatpush3.bf16.msra.mxu0 %v17243_v63 }
 0x40b   : > { %15957 = vmatprep.subr.bf16.mxu0 %v17246_v2  ;;  %15950 = vmatpush3.bf16.msra.mxu1 %v17244_v0  ;;  %v17283_v0 = vld [vmem:[%s17685_s5 + $0x1ff0] sm:$0xff]  }
 0x40c   : > { %15979 = vmatprep.subr.bf16.mxu1 %v17247_v3  ;;  %v17284_v2 = vld [vmem:[%s17685_s5 + $0x1f30] sm:$0xff]  }
 0x40d   : > { %v15665_v8 = vpop.f32.mrf.mxu0  ;;  %12861 = vmatmul.mubr.bf16.vlgmr.msra.gmra.mxu0 %v3286_v1  ;;  %v3349_v1 = vrot.slane %v3321_v59, %v17727_v35 }
 0x40e   : > { %v15687_v11 = vpop.f32.mrf.mxu1  ;;  %15958 = vmatpush3.bf16.msra.mxu0 %v17248_v4  ;;  %12901 = vmatmul.mubr.bf16.vlgmr.msra.gmra.mxu1 %v3302_v6 }
 0x40f   : > { %v15666_v12 = vpop.f32.mrf.mxu0  ;;  %15959 = vmatprep.subr.bf16.mxu0 %v17250_v7  ;;  %15980 = vmatpush3.bf16.msra.mxu1 %v17249_v5  ;;  %v17285_v5 = vld [vmem:[%s17685_s5 + $0x1fb0] sm:$0xff]   ;;  %v3353_v6 = vcombine.high %v3349_v1, %v3349_v1 }
 0x410   : > { %v15667_v14 = vadd.f32 %v15666_v12, %v15665_v8  ;;  %v15688_v16 = vpop.f32.mrf.mxu1  ;;  %15981 = vmatprep.subr.bf16.mxu1 %v17251_v9  ;;  %12940 = vmatprep.mubr.bf16.mxu0 %v3342_v57  ;;  %v17286_v8 = vld [vmem:[%s17685_s5 + $0x1f68] sm:$0xff]  }
 0x411   : > { %v15668_v17 = vpop.f32.mrf.mxu0  ;;  %v15689_v20 = vadd.f32 %v15688_v16, %v15687_v11  ;;  %12980 = vmatprep.mubr.bf16.mxu1 %v3352_v62  ;;  %v17287_v11 = vld [vmem:[%s17685_s5 + $0x1fe8] sm:$0xff]  }
 0x412   : > { %v12383_v19 = vadd.f32 %v15667_v14, %v18915_v43  ;;  %v15690_v22 = vpop.f32.mrf.mxu1  ;;  %15960 = vmatpush3.bf16.msra.mxu0 %v17252_v10  ;;  %v17273_v43 = vld [vmem:[%s17685_s5 + $0x1e88] sm:$0xff]  }
 0x413   : > { %v15669_v23 = vpop.f32.mrf.mxu0  ;;  %15961 = vmatprep.subr.bf16.mxu0 %v17254_v15  ;;  %15982 = vmatpush3.bf16.msra.mxu1 %v17253_v13  ;;  %v17288_v14 = vld [vmem:[%s17685_s5 + $0x1f28] sm:$0xff]   ;;  %v17292_v22 = vld [vmem:[%s17685_s5 + $0x1f20] sm:$0xff]  }
 0x414   : > { %v18952_v25 = vadd.f32 %v15689_v20, %v12383_v19  ;;  %v15691_v27 = vpop.f32.mrf.mxu1  ;;  %15983 = vmatprep.subr.bf16.mxu1 %v17255_v18  ;;  %v17289_v17 = vld [vmem:[%s17685_s5 + $0x1fa8] sm:$0xff]   ;;  %v17290_v19 = vld [vmem:[%s17685_s5 + $0x1f60] sm:$0xff]  }
 0x415   : > { %v17293_v23 = vld [vmem:[%s17685_s5 + $0x1fa0] sm:$0xff]   ;;  %v17297_v27 = vld [vmem:[%s17685_s5 + $0x1f98] sm:$0xff]  }
 0x416   : > { %15962 = vmatpush3.bf16.msra.mxu0 %v17256_v21  ;;  %v17291_v21 = vld [vmem:[%s17685_s5 + $0x1fe0] sm:$0xff]  }
 0x417   : > { %15963 = vmatprep.subr.bf16.mxu0 %v17258_v26  ;;  %15984 = vmatpush3.bf16.msra.mxu1 %v17257_v24  ;;  %v17294_v24 = vld [vmem:[%s17685_s5 + $0x1f58] sm:$0xff]  }
 0x418   : > { %15985 = vmatprep.subr.bf16.mxu1 %v17259_v28  ;;  %v17296_v26 = vld [vmem:[%s17685_s5 + $0x1f18] sm:$0xff]   ;;  %v17298_v28 = vld [vmem:[%s17685_s5 + $0x1f50] sm:$0xff]  }
 0x41a   : > { %15964 = vmatpush3.bf16.msra.mxu0 %v17260_v29  ;;  %v17299_v29 = vld [vmem:[%s17685_s5 + $0x1fd0] sm:$0xff]  }
 0x41b   : > { %15965 = vmatprep.subr.bf16.mxu0 %v17262_v31  ;;  %15986 = vmatpush3.bf16.msra.mxu1 %v17261_v30  ;;  %v17300_v30 = vld [vmem:[%s17685_s5 + $0x1f10] sm:$0xff]  }
 0x41c   : > { %15987 = vmatprep.subr.bf16.mxu1 %v17263_v32  ;;  %v17301_v31 = vld [vmem:[%s17685_s5 + $0x1f90] sm:$0xff]   ;;  %v17302_v32 = vld [vmem:[%s17685_s5 + $0x1f48] sm:$0xff]  }
 0x41e   : > { %15966 = vmatpush3.bf16.msra.mxu0 %v17264_v33  ;;  %v17303_v33 = vld [vmem:[%s17685_s5 + $0x1fc8] sm:$0xff]  }
 0x41f   : > { %15967 = vmatprep.subr.bf16.mxu0 %v17266_v36  ;;  %15988 = vmatpush3.bf16.msra.mxu1 %v17265_v34  ;;  %v17304_v34 = vld [vmem:[%s17685_s5 + $0x1f08] sm:$0xff]  }
 0x420   : > { %15989 = vmatprep.subr.bf16.mxu1 %v17267_v37  ;;  %v17305_v36 = vld [vmem:[%s17685_s5 + $0x1f88] sm:$0xff]   ;;  %v17306_v37 = vld [vmem:[%s17685_s5 + $0x1f40] sm:$0xff]  }
 0x422   : > { %15968 = vmatpush3.bf16.msra.mxu0 %v17268_v38  ;;  %v17307_v38 = vld [vmem:[%s17685_s5 + $0x1fc0] sm:$0xff]  }
 0x423   : > { %15969 = vmatprep.subr.bf16.mxu0 %v17270_v40  ;;  %15990 = vmatpush3.bf16.msra.mxu1 %v17269_v39  ;;  %v17308_v39 = vld [vmem:[%s17685_s5 + $0x1f00] sm:$0xff]  }
 0x424   : > { %15991 = vmatprep.subr.bf16.mxu1 %v17271_v41  ;;  %v17309_v40 = vld [vmem:[%s17685_s5 + $0x1f80] sm:$0xff]   ;;  %v3335_v41 = vrot.slane %v18982_v55, %v17727_v35  ;;  %v17319_v55 = vld [vmem:[%s17685_s5 + $0x2068] sm:$0xff]  }
 0x426   : > { %15970 = vmatpush3.bf16.msra.mxu0 %v17272_v42  ;;  %v17311_v42 = vld [vmem:[%s17685_s5 + $0x2078] sm:$0xff]  }
 0x427   : > { %15971 = vmatprep.subr.bf16.mxu0 %v17274_v44  ;;  %15992 = vmatpush3.bf16.msra.mxu1 %v17273_v43  ;;  %v17312_v43 = vld [vmem:[%s17685_s5 + $0x20f8] sm:$0xff]  }
 0x428   : > { %15993 = vmatprep.subr.bf16.mxu1 %v17275_v45  ;;  %v17313_v44 = vld [vmem:[%s17685_s5 + $0x2038] sm:$0xff]  }
 0x429   : > { %v17314_v45 = vld [vmem:[%s17685_s5 + $0x20b8] sm:$0xff]  }
 0x42a   : > { %15972 = vmatpush3.bf16.msra.mxu0 %v17276_v46  ;;  %v3351_v46 = vcombine.high %v3335_v41, %v3335_v41 }
 0x42b   : > { %16001 = vmatprep.subr.bf16.mxu0 %v17278_v51  ;;  %15994 = vmatpush3.bf16.msra.mxu1 %v17277_v48 }
 0x42c   : > { %16023 = vmatprep.subr.bf16.mxu1 %v17279_v54 }
 0x42d   : > { %v15709_v63 = vpop.f32.mrf.mxu0  ;;  %12941 = vmatmul.mubr.bf16.vlgmr.msra.gmra.mxu0 %v3328_v53  ;;  %v17318_v53 = vld [vmem:[%s17685_s5 + $0x20b0] sm:$0xff]  }
 0x42e   : > { %v15731_v3 = vpop.f32.mrf.mxu1  ;;  %16002 = vmatpush3.bf16.msra.mxu0 %v17280_v56  ;;  %12981 = vmatmul.mubr.bf16.vlgmr.msra.gmra.mxu1 %v3350_v60 }
 0x42f   : > { %v15710_v4 = vpop.f32.mrf.mxu0  ;;  %16003 = vmatprep.subr.bf16.mxu0 %v17282_v61  ;;  %16024 = vmatpush3.bf16.msra.mxu1 %v17281_v58  ;;  %v17320_v58 = vld [vmem:[%s17685_s5 + $0x20e8] sm:$0xff]  }
 0x430   : > { %v15711_v7 = vadd.f32 %v15710_v4, %v15709_v63  ;;  %v15732_v9 = vpop.f32.mrf.mxu1  ;;  %13020 = vmatprep.mubr.bf16.mxu0 %v3349_v1  ;;  %16025 = vmatprep.subr.bf16.mxu1 %v17283_v0  ;;  %v17321_v61 = vld [vmem:[%s17685_s5 + $0x2028] sm:$0xff]   ;;  %v17324_v4 = vld [vmem:[%s17685_s5 + $0x20e0] sm:$0xff]  }
 0x431   : > { %v15712_v10 = vpop.f32.mrf.mxu0  ;;  %v15733_v13 = vadd.f32 %v15732_v9, %v15731_v3  ;;  %13060 = vmatprep.mubr.bf16.mxu1 %v3353_v6  ;;  %v17322_v0 = vld [vmem:[%s17685_s5 + $0x20a8] sm:$0xff]   ;;  %v17326_v6 = vld [vmem:[%s17685_s5 + $0x20a0] sm:$0xff]   ;;  %v17329_v9 = vld [vmem:[%s17685_s5 + $0x2018] sm:$0xff]  }
 0x432   : > { %v12463_v12 = vadd.f32 %v15711_v7, %v18952_v25  ;;  %v15734_v15 = vpop.f32.mrf.mxu1  ;;  %16004 = vmatpush3.bf16.msra.mxu0 %v17284_v2  ;;  %v17295_v25 = vld [vmem:[%s17685_s5 + $0x1fd8] sm:$0xff]   ;;  %v17323_v2 = vld [vmem:[%s17685_s5 + $0x2060] sm:$0xff]  }
 0x433   : > { %v15713_v16 = vpop.f32.mrf.mxu0  ;;  %16005 = vmatprep.subr.bf16.mxu0 %v17286_v8  ;;  %16026 = vmatpush3.bf16.msra.mxu1 %v17285_v5  ;;  %v17325_v5 = vld [vmem:[%s17685_s5 + $0x2020] sm:$0xff]   ;;  %v17327_v7 = vld [vmem:[%s17685_s5 + $0x2058] sm:$0xff]   ;;  %v17335_v15 = vld [vmem:[%s17685_s5 + $0x2048] sm:$0xff]  }
 0x434   : > { %v18999_v18 = vadd.f32 %v15733_v13, %v12463_v12  ;;  %v15735_v20 = vpop.f32.mrf.mxu1  ;;  %16027 = vmatprep.subr.bf16.mxu1 %v17287_v11  ;;  %v17328_v8 = vld [vmem:[%s17685_s5 + $0x20d8] sm:$0xff]   ;;  %v17331_v11 = vld [vmem:[%s17685_s5 + $0x2050] sm:$0xff]   ;;  %v17336_v16 = vld [vmem:[%s17685_s5 + $0x20c8] sm:$0xff]  }
 0x435   : > { %v17330_v10 = vld [vmem:[%s17685_s5 + $0x2098] sm:$0xff]   ;;  %v17332_v12 = vld [vmem:[%s17685_s5 + $0x20d0] sm:$0xff]   ;;  %v17340_v20 = vld [vmem:[%s17685_s5 + $0x20c0] sm:$0xff]  }
 0x436   : > { %16006 = vmatpush3.bf16.msra.mxu0 %v17288_v14  ;;  %v17333_v13 = vld [vmem:[%s17685_s5 + $0x2010] sm:$0xff]  }
 0x437   : > { %16007 = vmatprep.subr.bf16.mxu0 %v17290_v19  ;;  %16028 = vmatpush3.bf16.msra.mxu1 %v17289_v17  ;;  %v17334_v14 = vld [vmem:[%s17685_s5 + $0x2090] sm:$0xff]   ;;  %v17337_v17 = vld [vmem:[%s17685_s5 + $0x2008] sm:$0xff]   ;;  %v17339_v19 = vld [vmem:[%s17685_s5 + $0x2040] sm:$0xff]  }
 0x438   : > { %16029 = vmatprep.subr.bf16.mxu1 %v17291_v21  ;;  %v17341_v21 = vld [vmem:[%s17685_s5 + $0x2000] sm:$0xff]  }
 0x43a   : > { %16008 = vmatpush3.bf16.msra.mxu0 %v17292_v22  ;;  %v239_v22 = vld [vmem:[%s19207_s0 + $0x80] sm:$0xff] }
 0x43b   : > { %16009 = vmatprep.subr.bf16.mxu0 %v17294_v24  ;;  %16030 = vmatpush3.bf16.msra.mxu1 %v17293_v23  ;;  %v17342_v23 = vld [vmem:[%s17685_s5 + $0x2080] sm:$0xff]   ;;  %v3361_v24 = vrot.slane %v239_v22, %v17727_v35 }
 0x43c   : > { %16031 = vmatprep.subr.bf16.mxu1 %v17295_v25  ;;  %v3354_v25 = vcombine.high %v239_v22, %v239_v22  ;;  %v17380_v22 = vld [vmem:[%s17685_s5 + $0x2270] sm:$0xff]  }
 0x43e   : > { %16010 = vmatpush3.bf16.msra.mxu0 %v17296_v26  ;;  %v17343_v26 = vld [vmem:[%s17685_s5 + $0x2178] sm:$0xff]  }
 0x43f   : > { %16011 = vmatprep.subr.bf16.mxu0 %v17298_v28  ;;  %16032 = vmatpush3.bf16.msra.mxu1 %v17297_v27  ;;  %v3369_v27 = vcombine.high %v3361_v24, %v3361_v24  ;;  %v3377_v28 = vrot.slane %v3361_v24, %v17727_v35  ;;  %v17381_v24 = vld [vmem:[%s17685_s5 + $0x22f0] sm:$0xff]  }
 0x440   : > { %16033 = vmatprep.subr.bf16.mxu1 %v17299_v29  ;;  %v17344_v29 = vld [vmem:[%s17685_s5 + $0x21f8] sm:$0xff]  }
 0x442   : > { %16012 = vmatpush3.bf16.msra.mxu0 %v17300_v30  ;;  %v19066_v30 = vrot.slane %v3354_v25, %v17727_v35  ;;  %v17382_v25 = vld [vmem:[%s17685_s5 + $0x2230] sm:$0xff]  }
 0x443   : > { %16013 = vmatprep.subr.bf16.mxu0 %v17302_v32  ;;  %16034 = vmatpush3.bf16.msra.mxu1 %v17301_v31  ;;  %v17345_v31 = vld [vmem:[%s17685_s5 + $0x2138] sm:$0xff]   ;;  %v3391_v32 = vrot.slane %v3369_v27, %v17727_v35 }
 0x444   : > { %16035 = vmatprep.subr.bf16.mxu1 %v17303_v33  ;;  %v17346_v33 = vld [vmem:[%s17685_s5 + $0x21b8] sm:$0xff]  }
 0x446   : > { %16014 = vmatpush3.bf16.msra.mxu0 %v17304_v34  ;;  %v3370_v34 = vcombine.high %v19066_v30, %v19066_v30 }
 0x447   : > { %16015 = vmatprep.subr.bf16.mxu0 %v17306_v37  ;;  %16036 = vmatpush3.bf16.msra.mxu1 %v17305_v36  ;;  %v3399_v36 = vcombine.high %v3377_v28, %v3377_v28  ;;  %v17347_v37 = vld [vmem:[%s17685_s5 + $0x2170] sm:$0xff]  }
 0x448   : > { %16037 = vmatprep.subr.bf16.mxu1 %v17307_v38  ;;  %v3401_v38 = vcombine.high %v3391_v32, %v3391_v32 }
 0x44a   : > { %16016 = vmatpush3.bf16.msra.mxu0 %v17308_v39 }
 0x44b   : > { %16045 = vmatprep.subr.bf16.mxu0 %v17311_v42  ;;  %16038 = vmatpush3.bf16.msra.mxu1 %v17309_v40  ;;  %v17348_v40 = vld [vmem:[%s17685_s5 + $0x21f0] sm:$0xff]  }
 0x44c   : > { %16067 = vmatprep.subr.bf16.mxu1 %v17312_v43  ;;  %v17349_v42 = vld [vmem:[%s17685_s5 + $0x2130] sm:$0xff]  }
 0x44d   : > { %v15753_v48 = vpop.f32.mrf.mxu0  ;;  %13021 = vmatmul.mubr.bf16.vlgmr.msra.gmra.mxu0 %v3335_v41  ;;  %v3398_v41 = vrot.slane %v3370_v34, %v17727_v35 }
 0x44e   : > { %v15775_v51 = vpop.f32.mrf.mxu1  ;;  %16046 = vmatpush3.bf16.msra.mxu0 %v17313_v44  ;;  %13061 = vmatmul.mubr.bf16.vlgmr.msra.gmra.mxu1 %v3351_v46 }
 0x44f   : > { %v15754_v52 = vpop.f32.mrf.mxu0  ;;  %16047 = vmatprep.subr.bf16.mxu0 %v17315_v47  ;;  %16068 = vmatpush3.bf16.msra.mxu1 %v17314_v45  ;;  %v17350_v45 = vld [vmem:[%s17685_s5 + $0x21b0] sm:$0xff]   ;;  %v3402_v46 = vcombine.high %v3398_v41, %v3398_v41 }
 0x450   : > { %v15755_v54 = vadd.f32 %v15754_v52, %v15753_v48  ;;  %v15776_v56 = vpop.f32.mrf.mxu1  ;;  %16069 = vmatprep.subr.bf16.mxu1 %v17316_v49  ;;  %13100 = vmatprep.mubr.bf16.mxu0 %v3391_v32  ;;  %v17351_v48 = vld [vmem:[%s17685_s5 + $0x2168] sm:$0xff]  }
 0x451   : > { %v15756_v57 = vpop.f32.mrf.mxu0  ;;  %v15777_v60 = vadd.f32 %v15776_v56, %v15775_v51  ;;  %13140 = vmatprep.mubr.bf16.mxu1 %v3401_v38  ;;  %v17352_v51 = vld [vmem:[%s17685_s5 + $0x21e8] sm:$0xff]  }
 0x452   : > { %v12543_v59 = vadd.f32 %v15755_v54, %v18999_v18  ;;  %v15778_v62 = vpop.f32.mrf.mxu1  ;;  %16048 = vmatpush3.bf16.msra.mxu0 %v17317_v50  ;;  %v17338_v18 = vld [vmem:[%s17685_s5 + $0x2088] sm:$0xff]  }
 0x453   : > { %v15757_v63 = vpop.f32.mrf.mxu0  ;;  %16049 = vmatprep.subr.bf16.mxu0 %v17319_v55  ;;  %16070 = vmatpush3.bf16.msra.mxu1 %v17318_v53  ;;  %v17353_v54 = vld [vmem:[%s17685_s5 + $0x2128] sm:$0xff]   ;;  %v17357_v62 = vld [vmem:[%s17685_s5 + $0x2120] sm:$0xff]  }
 0x454   : > { %v19036_v1 = vadd.f32 %v15777_v60, %v12543_v59  ;;  %v15779_v3 = vpop.f32.mrf.mxu1  ;;  %16071 = vmatprep.subr.bf16.mxu1 %v17320_v58  ;;  %v17354_v57 = vld [vmem:[%s17685_s5 + $0x21a8] sm:$0xff]   ;;  %v17355_v59 = vld [vmem:[%s17685_s5 + $0x2160] sm:$0xff]  }
 0x455   : > { %v17358_v63 = vld [vmem:[%s17685_s5 + $0x21a0] sm:$0xff]   ;;  %v17362_v3 = vld [vmem:[%s17685_s5 + $0x2198] sm:$0xff]  }
 0x456   : > { %16050 = vmatpush3.bf16.msra.mxu0 %v17321_v61  ;;  %v17356_v61 = vld [vmem:[%s17685_s5 + $0x21e0] sm:$0xff]  }
 0x457   : > { %16051 = vmatprep.subr.bf16.mxu0 %v17323_v2  ;;  %16072 = vmatpush3.bf16.msra.mxu1 %v17322_v0  ;;  %v17359_v0 = vld [vmem:[%s17685_s5 + $0x2158] sm:$0xff]  }
 0x458   : > { %16073 = vmatprep.subr.bf16.mxu1 %v17324_v4  ;;  %v17361_v2 = vld [vmem:[%s17685_s5 + $0x2118] sm:$0xff]   ;;  %v17363_v4 = vld [vmem:[%s17685_s5 + $0x2150] sm:$0xff]  }
 0x45a   : > { %16052 = vmatpush3.bf16.msra.mxu0 %v17325_v5  ;;  %v17364_v5 = vld [vmem:[%s17685_s5 + $0x21d0] sm:$0xff]  }
 0x45b   : > { %16053 = vmatprep.subr.bf16.mxu0 %v17327_v7  ;;  %16074 = vmatpush3.bf16.msra.mxu1 %v17326_v6  ;;  %v17365_v6 = vld [vmem:[%s17685_s5 + $0x2110] sm:$0xff]  }
 0x45c   : > { %16075 = vmatprep.subr.bf16.mxu1 %v17328_v8  ;;  %v17366_v7 = vld [vmem:[%s17685_s5 + $0x2190] sm:$0xff]   ;;  %v17367_v8 = vld [vmem:[%s17685_s5 + $0x2148] sm:$0xff]  }
 0x45e   : > { %16054 = vmatpush3.bf16.msra.mxu0 %v17329_v9  ;;  %v17368_v9 = vld [vmem:[%s17685_s5 + $0x21c8] sm:$0xff]  }
 0x45f   : > { %16055 = vmatprep.subr.bf16.mxu0 %v17331_v11  ;;  %16076 = vmatpush3.bf16.msra.mxu1 %v17330_v10  ;;  %v17369_v10 = vld [vmem:[%s17685_s5 + $0x2108] sm:$0xff]  }
 0x460   : > { %16077 = vmatprep.subr.bf16.mxu1 %v17332_v12  ;;  %v17370_v11 = vld [vmem:[%s17685_s5 + $0x2188] sm:$0xff]   ;;  %v17371_v12 = vld [vmem:[%s17685_s5 + $0x2140] sm:$0xff]  }
 0x462   : > { %16056 = vmatpush3.bf16.msra.mxu0 %v17333_v13  ;;  %v17372_v13 = vld [vmem:[%s17685_s5 + $0x21c0] sm:$0xff]  }
 0x463   : > { %16057 = vmatprep.subr.bf16.mxu0 %v17335_v15  ;;  %16078 = vmatpush3.bf16.msra.mxu1 %v17334_v14  ;;  %v17373_v14 = vld [vmem:[%s17685_s5 + $0x2100] sm:$0xff]  }
 0x464   : > { %16079 = vmatprep.subr.bf16.mxu1 %v17336_v16  ;;  %v17374_v15 = vld [vmem:[%s17685_s5 + $0x2180] sm:$0xff]   ;;  %v3384_v16 = vrot.slane %v19066_v30, %v17727_v35  ;;  %v17384_v30 = vld [vmem:[%s17685_s5 + $0x2268] sm:$0xff]  }
 0x466   : > { %16058 = vmatpush3.bf16.msra.mxu0 %v17337_v17  ;;  %v17376_v17 = vld [vmem:[%s17685_s5 + $0x2278] sm:$0xff]  }
 0x467   : > { %16059 = vmatprep.subr.bf16.mxu0 %v17339_v19  ;;  %16080 = vmatpush3.bf16.msra.mxu1 %v17338_v18  ;;  %v17377_v18 = vld [vmem:[%s17685_s5 + $0x22f8] sm:$0xff]  }
 0x468   : > { %16081 = vmatprep.subr.bf16.mxu1 %v17340_v20  ;;  %v17378_v19 = vld [vmem:[%s17685_s5 + $0x2238] sm:$0xff]  }
 0x469   : > { %v17379_v20 = vld [vmem:[%s17685_s5 + $0x22b8] sm:$0xff]  }
 0x46a   : > { %16060 = vmatpush3.bf16.msra.mxu0 %v17341_v21  ;;  %v3400_v21 = vcombine.high %v3384_v16, %v3384_v16 }
 0x46b   : > { %16089 = vmatprep.subr.bf16.mxu0 %v17343_v26  ;;  %16082 = vmatpush3.bf16.msra.mxu1 %v17342_v23 }
 0x46c   : > { %16111 = vmatprep.subr.bf16.mxu1 %v17344_v29 }
 0x46d   : > { %v15797_v39 = vpop.f32.mrf.mxu0  ;;  %13101 = vmatmul.mubr.bf16.vlgmr.msra.gmra.mxu0 %v3377_v28  ;;  %v17383_v28 = vld [vmem:[%s17685_s5 + $0x22b0] sm:$0xff]  }
 0x46e   : > { %v15819_v43 = vpop.f32.mrf.mxu1  ;;  %16090 = vmatpush3.bf16.msra.mxu0 %v17345_v31  ;;  %13141 = vmatmul.mubr.bf16.vlgmr.msra.gmra.mxu1 %v3399_v36 }
 0x46f   : > { %v15798_v44 = vpop.f32.mrf.mxu0  ;;  %16091 = vmatprep.subr.bf16.mxu0 %v17347_v37  ;;  %16112 = vmatpush3.bf16.msra.mxu1 %v17346_v33  ;;  %v17385_v33 = vld [vmem:[%s17685_s5 + $0x22e8] sm:$0xff]  }
 0x470   : > { %v15799_v47 = vadd.f32 %v15798_v44, %v15797_v39  ;;  %v15820_v49 = vpop.f32.mrf.mxu1  ;;  %13180 = vmatprep.mubr.bf16.mxu0 %v3398_v41  ;;  %16113 = vmatprep.subr.bf16.mxu1 %v17348_v40  ;;  %v17386_v37 = vld [vmem:[%s17685_s5 + $0x2228] sm:$0xff]   ;;  %v17389_v44 = vld [vmem:[%s17685_s5 + $0x22e0] sm:$0xff]  }
 0x471   : > { %v15800_v50 = vpop.f32.mrf.mxu0  ;;  %v15821_v53 = vadd.f32 %v15820_v49, %v15819_v43  ;;  %13220 = vmatprep.mubr.bf16.mxu1 %v3402_v46  ;;  %v17387_v40 = vld [vmem:[%s17685_s5 + $0x22a8] sm:$0xff]   ;;  %v17391_v46 = vld [vmem:[%s17685_s5 + $0x22a0] sm:$0xff]   ;;  %v17394_v49 = vld [vmem:[%s17685_s5 + $0x2218] sm:$0xff]  }
 0x472   : > { %v12623_v52 = vadd.f32 %v15799_v47, %v19036_v1  ;;  %v15822_v55 = vpop.f32.mrf.mxu1  ;;  %16092 = vmatpush3.bf16.msra.mxu0 %v17349_v42  ;;  %v17360_v1 = vld [vmem:[%s17685_s5 + $0x21d8] sm:$0xff]   ;;  %v17388_v42 = vld [vmem:[%s17685_s5 + $0x2260] sm:$0xff]  }
 0x473   : > { %v15801_v56 = vpop.f32.mrf.mxu0  ;;  %16093 = vmatprep.subr.bf16.mxu0 %v17351_v48  ;;  %16114 = vmatpush3.bf16.msra.mxu1 %v17350_v45  ;;  %v17390_v45 = vld [vmem:[%s17685_s5 + $0x2220] sm:$0xff]   ;;  %v17392_v47 = vld [vmem:[%s17685_s5 + $0x2258] sm:$0xff]   ;;  %v17400_v55 = vld [vmem:[%s17685_s5 + $0x2248] sm:$0xff]  }
 0x474   : > { %v19083_v58 = vadd.f32 %v15821_v53, %v12623_v52  ;;  %v15823_v60 = vpop.f32.mrf.mxu1  ;;  %16115 = vmatprep.subr.bf16.mxu1 %v17352_v51  ;;  %v17393_v48 = vld [vmem:[%s17685_s5 + $0x22d8] sm:$0xff]   ;;  %v17396_v51 = vld [vmem:[%s17685_s5 + $0x2250] sm:$0xff]   ;;  %v17401_v56 = vld [vmem:[%s17685_s5 + $0x22c8] sm:$0xff]  }
 0x475   : > { %v17395_v50 = vld [vmem:[%s17685_s5 + $0x2298] sm:$0xff]   ;;  %v17397_v52 = vld [vmem:[%s17685_s5 + $0x22d0] sm:$0xff]   ;;  %v17405_v60 = vld [vmem:[%s17685_s5 + $0x22c0] sm:$0xff]  }
 0x476   : > { %16094 = vmatpush3.bf16.msra.mxu0 %v17353_v54  ;;  %v17398_v53 = vld [vmem:[%s17685_s5 + $0x2210] sm:$0xff]  }
 0x477   : > { %16095 = vmatprep.subr.bf16.mxu0 %v17355_v59  ;;  %16116 = vmatpush3.bf16.msra.mxu1 %v17354_v57  ;;  %v17399_v54 = vld [vmem:[%s17685_s5 + $0x2290] sm:$0xff]   ;;  %v17402_v57 = vld [vmem:[%s17685_s5 + $0x2208] sm:$0xff]   ;;  %v17404_v59 = vld [vmem:[%s17685_s5 + $0x2240] sm:$0xff]  }
 0x478   : > { %16117 = vmatprep.subr.bf16.mxu1 %v17356_v61  ;;  %v17406_v61 = vld [vmem:[%s17685_s5 + $0x2200] sm:$0xff]  }
 0x47a   : > { %16096 = vmatpush3.bf16.msra.mxu0 %v17357_v62  ;;  %v240_v62 = vld [vmem:[%s19207_s0 + $0x88] sm:$0xff] }
 0x47b   : > { %16097 = vmatprep.subr.bf16.mxu0 %v17359_v0  ;;  %16118 = vmatpush3.bf16.msra.mxu1 %v17358_v63  ;;  %v3410_v63 = vrot.slane %v240_v62, %v17727_v35  ;;  %v17408_v0 = vld [vmem:[%s17685_s5 + $0x2378] sm:$0xff]  }
 0x47c   : > { %16119 = vmatprep.subr.bf16.mxu1 %v17360_v1  ;;  %v3403_v1 = vcombine.high %v240_v62, %v240_v62 }
 0x47e   : > { %16098 = vmatpush3.bf16.msra.mxu0 %v17361_v2  ;;  %v17407_v2 = vld [vmem:[%s17685_s5 + $0x2280] sm:$0xff]  }
 0x47f   : > { %16099 = vmatprep.subr.bf16.mxu0 %v17363_v4  ;;  %16120 = vmatpush3.bf16.msra.mxu1 %v17362_v3  ;;  %v3418_v3 = vcombine.high %v3410_v63, %v3410_v63  ;;  %v3426_v4 = vrot.slane %v3410_v63, %v17727_v35 }
 0x480   : > { %16121 = vmatprep.subr.bf16.mxu1 %v17364_v5  ;;  %v17409_v5 = vld [vmem:[%s17685_s5 + $0x23f8] sm:$0xff]  }
 0x482   : > { %16100 = vmatpush3.bf16.msra.mxu0 %v17365_v6  ;;  %v19150_v6 = vrot.slane %v3403_v1, %v17727_v35 }
 0x483   : > { %16101 = vmatprep.subr.bf16.mxu0 %v17367_v8  ;;  %16122 = vmatpush3.bf16.msra.mxu1 %v17366_v7  ;;  %v3440_v7 = vrot.slane %v3418_v3, %v17727_v35  ;;  %v17410_v8 = vld [vmem:[%s17685_s5 + $0x2338] sm:$0xff]  }
 0x484   : > { %16123 = vmatprep.subr.bf16.mxu1 %v17368_v9  ;;  %v3419_v9 = vcombine.high %v19150_v6, %v19150_v6 }
 0x486   : > { %16102 = vmatpush3.bf16.msra.mxu0 %v17369_v10  ;;  %v3448_v10 = vcombine.high %v3426_v4, %v3426_v4 }
 0x487   : > { %16103 = vmatprep.subr.bf16.mxu0 %v17371_v12  ;;  %16124 = vmatpush3.bf16.msra.mxu1 %v17370_v11  ;;  %v17412_v11 = vld [vmem:[%s17685_s5 + $0x2370] sm:$0xff]   ;;  %v3450_v12 = vcombine.high %v3440_v7, %v3440_v7 }
 0x488   : > { %16125 = vmatprep.subr.bf16.mxu1 %v17372_v13 }
 0x48a   : > { %16104 = vmatpush3.bf16.msra.mxu0 %v17373_v14  ;;  %v17411_v14 = vld [vmem:[%s17685_s5 + $0x23b8] sm:$0xff]  }
 0x48b   : > { %16133 = vmatprep.subr.bf16.mxu0 %v17376_v17  ;;  %16126 = vmatpush3.bf16.msra.mxu1 %v17374_v15  ;;  %v3447_v15 = vrot.slane %v3419_v9, %v17727_v35 }
 0x48c   : > { %16155 = vmatprep.subr.bf16.mxu1 %v17377_v18 }
 0x48d   : > { %v15841_v23 = vpop.f32.mrf.mxu0  ;;  %13181 = vmatmul.mubr.bf16.vlgmr.msra.gmra.mxu0 %v3384_v16  ;;  %v17413_v16 = vld [vmem:[%s17685_s5 + $0x23f0] sm:$0xff]  }
 0x48e   : > { %v15863_v26 = vpop.f32.mrf.mxu1  ;;  %16134 = vmatpush3.bf16.msra.mxu0 %v17378_v19  ;;  %13221 = vmatmul.mubr.bf16.vlgmr.msra.gmra.mxu1 %v3400_v21  ;;  %v17414_v19 = vld [vmem:[%s17685_s5 + $0x2330] sm:$0xff]  }
 0x48f   : > { %v15842_v27 = vpop.f32.mrf.mxu0  ;;  %16135 = vmatprep.subr.bf16.mxu0 %v17380_v22  ;;  %16156 = vmatpush3.bf16.msra.mxu1 %v17379_v20  ;;  %v3451_v20 = vcombine.high %v3447_v15, %v3447_v15  ;;  %v17416_v22 = vld [vmem:[%s17685_s5 + $0x2368] sm:$0xff]  }
 0x490   : > { %v15843_v29 = vadd.f32 %v15842_v27, %v15841_v23  ;;  %v15864_v31 = vpop.f32.mrf.mxu1  ;;  %16157 = vmatprep.subr.bf16.mxu1 %v17381_v24  ;;  %13260 = vmatprep.mubr.bf16.mxu0 %v3440_v7 }
 0x491   : > { %v15844_v32 = vpop.f32.mrf.mxu0  ;;  %v15865_v36 = vadd.f32 %v15864_v31, %v15863_v26  ;;  %13300 = vmatprep.mubr.bf16.mxu1 %v3450_v12  ;;  %v17418_v31 = vld [vmem:[%s17685_s5 + $0x2328] sm:$0xff]  }
 0x492   : > { %v12703_v34 = vadd.f32 %v15843_v29, %v19083_v58  ;;  %v15866_v38 = vpop.f32.mrf.mxu1  ;;  %16136 = vmatpush3.bf16.msra.mxu0 %v17382_v25  ;;  %v17403_v58 = vld [vmem:[%s17685_s5 + $0x2288] sm:$0xff]   ;;  %v17415_v25 = vld [vmem:[%s17685_s5 + $0x23b0] sm:$0xff]  }
 0x493   : > { %v15845_v39 = vpop.f32.mrf.mxu0  ;;  %16137 = vmatprep.subr.bf16.mxu0 %v17384_v30  ;;  %16158 = vmatpush3.bf16.msra.mxu1 %v17383_v28  ;;  %v17417_v28 = vld [vmem:[%s17685_s5 + $0x23e8] sm:$0xff]   ;;  %v17422_v38 = vld [vmem:[%s17685_s5 + $0x2320] sm:$0xff]  }
 0x494   : > { %v19120_v41 = vadd.f32 %v15865_v36, %v12703_v34  ;;  %v15867_v43 = vpop.f32.mrf.mxu1  ;;  %16159 = vmatprep.subr.bf16.mxu1 %v17385_v33  ;;  %v17420_v33 = vld [vmem:[%s17685_s5 + $0x2360] sm:$0xff]   ;;  %v17419_v36 = vld [vmem:[%s17685_s5 + $0x23a8] sm:$0xff]   ;;  %v17424_v39 = vld [vmem:[%s17685_s5 + $0x2358] sm:$0xff]  }
 0x495   : > { %v17428_v43 = vld [vmem:[%s17685_s5 + $0x2350] sm:$0xff]  }
 0x496   : > { %16138 = vmatpush3.bf16.msra.mxu0 %v17386_v37  ;;  %v17421_v37 = vld [vmem:[%s17685_s5 + $0x23e0] sm:$0xff]  }
 0x497   : > { %16139 = vmatprep.subr.bf16.mxu0 %v17388_v42  ;;  %16160 = vmatpush3.bf16.msra.mxu1 %v17387_v40  ;;  %v17423_v40 = vld [vmem:[%s17685_s5 + $0x23a0] sm:$0xff]   ;;  %v17426_v42 = vld [vmem:[%s17685_s5 + $0x2318] sm:$0xff]  }
 0x498   : > { %16161 = vmatprep.subr.bf16.mxu1 %v17389_v44  ;;  %v17427_v44 = vld [vmem:[%s17685_s5 + $0x2398] sm:$0xff]  }
 0x49a   : > { %16140 = vmatpush3.bf16.msra.mxu0 %v17390_v45  ;;  %v17429_v45 = vld [vmem:[%s17685_s5 + $0x23d0] sm:$0xff]  }
 0x49b   : > { %16141 = vmatprep.subr.bf16.mxu0 %v17392_v47  ;;  %16162 = vmatpush3.bf16.msra.mxu1 %v17391_v46  ;;  %v17430_v46 = vld [vmem:[%s17685_s5 + $0x2310] sm:$0xff]   ;;  %v17432_v47 = vld [vmem:[%s17685_s5 + $0x2348] sm:$0xff]  }
 0x49c   : > { %16163 = vmatprep.subr.bf16.mxu1 %v17393_v48  ;;  %v17431_v48 = vld [vmem:[%s17685_s5 + $0x2390] sm:$0xff]  }
 0x49e   : > { %16142 = vmatpush3.bf16.msra.mxu0 %v17394_v49  ;;  %v17433_v49 = vld [vmem:[%s17685_s5 + $0x23c8] sm:$0xff]  }
 0x49f   : > { %16143 = vmatprep.subr.bf16.mxu0 %v17396_v51  ;;  %16164 = vmatpush3.bf16.msra.mxu1 %v17395_v50  ;;  %v17434_v50 = vld [vmem:[%s17685_s5 + $0x2308] sm:$0xff]   ;;  %v17436_v51 = vld [vmem:[%s17685_s5 + $0x2340] sm:$0xff]  }
 0x4a0   : > { %16165 = vmatprep.subr.bf16.mxu1 %v17397_v52  ;;  %v17435_v52 = vld [vmem:[%s17685_s5 + $0x2388] sm:$0xff]  }
 0x4a2   : > { %16144 = vmatpush3.bf16.msra.mxu0 %v17398_v53  ;;  %v17437_v53 = vld [vmem:[%s17685_s5 + $0x23c0] sm:$0xff]  }
 0x4a3   : > { %16145 = vmatprep.subr.bf16.mxu0 %v17400_v55  ;;  %16166 = vmatpush3.bf16.msra.mxu1 %v17399_v54  ;;  %v17438_v54 = vld [vmem:[%s17685_s5 + $0x2300] sm:$0xff]   ;;  %v3433_v55 = vrot.slane %v19150_v6, %v17727_v35 }
 0x4a4   : > { %16167 = vmatprep.subr.bf16.mxu1 %v17401_v56  ;;  %v17439_v56 = vld [vmem:[%s17685_s5 + $0x2380] sm:$0xff]  }
 0x4a6   : > { %16146 = vmatpush3.bf16.msra.mxu0 %v17402_v57  ;;  %v3449_v57 = vcombine.high %v3433_v55, %v3433_v55 }
 0x4a7   : > { %16147 = vmatprep.subr.bf16.mxu0 %v17404_v59  ;;  %16168 = vmatpush3.bf16.msra.mxu1 %v17403_v58 }
 0x4a8   : > { %16169 = vmatprep.subr.bf16.mxu1 %v17405_v60 }
 0x4aa   : > { %16148 = vmatpush3.bf16.msra.mxu0 %v17406_v61 }
 0x4ab   : > { %16177 = vmatprep.subr.bf16.mxu0 %v17408_v0  ;;  %16170 = vmatpush3.bf16.msra.mxu1 %v17407_v2 }
 0x4ac   : > { %16199 = vmatprep.subr.bf16.mxu1 %v17409_v5 }
 0x4ad   : > { %v15885_v13 = vpop.f32.mrf.mxu0  ;;  %13261 = vmatmul.mubr.bf16.vlgmr.msra.gmra.mxu0 %v3426_v4 }
 0x4ae   : > { %v15907_v17 = vpop.f32.mrf.mxu1  ;;  %16178 = vmatpush3.bf16.msra.mxu0 %v17410_v8  ;;  %13301 = vmatmul.mubr.bf16.vlgmr.msra.gmra.mxu1 %v3448_v10 }
 0x4af   : > { %v15886_v18 = vpop.f32.mrf.mxu0  ;;  %16179 = vmatprep.subr.bf16.mxu0 %v17412_v11  ;;  %16200 = vmatpush3.bf16.msra.mxu1 %v17411_v14 }
 0x4b0   : > { %v15887_v21 = vadd.f32 %v15886_v18, %v15885_v13  ;;  %v15908_v23 = vpop.f32.mrf.mxu1  ;;  %13340 = vmatprep.mubr.bf16.mxu0 %v3447_v15  ;;  %16201 = vmatprep.subr.bf16.mxu1 %v17413_v16 }
 0x4b1   : > { %v15888_v24 = vpop.f32.mrf.mxu0  ;;  %v15909_v27 = vadd.f32 %v15908_v23, %v15907_v17  ;;  %13380 = vmatprep.mubr.bf16.mxu1 %v3451_v20 }
 0x4b2   : > { %v12783_v26 = vadd.f32 %v15887_v21, %v19120_v41  ;;  %v15910_v29 = vpop.f32.mrf.mxu1  ;;  %16180 = vmatpush3.bf16.msra.mxu0 %v17414_v19  ;;  %v17425_v41 = vld [vmem:[%s17685_s5 + $0x23d8] sm:$0xff]   ;;  %s13481_s5 = sshll.u32 %s19222_s16, 1 }
 0x4b3   : > { %v15889_v30 = vpop.f32.mrf.mxu0  ;;  %16181 = vmatprep.subr.bf16.mxu0 %v17416_v22  ;;  %16202 = vmatpush3.bf16.msra.mxu1 %v17415_v25  ;;  %s221_s26 = scalar_lea.vmem %s19210_s3, %s13481_s5 }
 0x4b4   : > { %v12823_v32 = vadd.f32 %v15909_v27, %v12783_v26  ;;  %v15911_v34 = vpop.f32.mrf.mxu1  ;;  %16203 = vmatprep.subr.bf16.mxu1 %v17417_v28 }
 0x4b6   : > { %16182 = vmatpush3.bf16.msra.mxu0 %v17418_v31 }
 0x4b7   : > { %16183 = vmatprep.subr.bf16.mxu0 %v17420_v33  ;;  %16204 = vmatpush3.bf16.msra.mxu1 %v17419_v36 }
 0x4b8   : > { %16205 = vmatprep.subr.bf16.mxu1 %v17421_v37 }
 0x4ba   : > { %16184 = vmatpush3.bf16.msra.mxu0 %v17422_v38 }
 0x4bb   : > { %16185 = vmatprep.subr.bf16.mxu0 %v17424_v39  ;;  %16206 = vmatpush3.bf16.msra.mxu1 %v17423_v40 }
 0x4bc   : > { %16207 = vmatprep.subr.bf16.mxu1 %v17425_v41 }
 0x4be   : > { %16186 = vmatpush3.bf16.msra.mxu0 %v17426_v42 }
 0x4bf   : > { %16187 = vmatprep.subr.bf16.mxu0 %v17428_v43  ;;  %16208 = vmatpush3.bf16.msra.mxu1 %v17427_v44 }
 0x4c0   : > { %16209 = vmatprep.subr.bf16.mxu1 %v17429_v45 }
 0x4c2   : > { %16188 = vmatpush3.bf16.msra.mxu0 %v17430_v46 }
 0x4c3   : > { %16189 = vmatprep.subr.bf16.mxu0 %v17432_v47  ;;  %16210 = vmatpush3.bf16.msra.mxu1 %v17431_v48 }
 0x4c4   : > { %16211 = vmatprep.subr.bf16.mxu1 %v17433_v49 }
 0x4c6   : > { %16190 = vmatpush3.bf16.msra.mxu0 %v17434_v50 }
 0x4c7   : > { %16191 = vmatprep.subr.bf16.mxu0 %v17436_v51  ;;  %16212 = vmatpush3.bf16.msra.mxu1 %v17435_v52 }
 0x4c8   : > { %16213 = vmatprep.subr.bf16.mxu1 %v17437_v53 }
 0x4ca   : > { %16192 = vmatpush3.bf16.msra.mxu0 %v17438_v54 }
 0x4cb   : > { %16214 = vmatpush3.bf16.msra.mxu1 %v17439_v56 }
 0x4cd   : > { %v15929_v58 = vpop.f32.mrf.mxu0  ;;  %13341 = vmatmul.mubr.bf16.vlgmr.msra.gmra.mxu0 %v3433_v55 }
 0x4ce   : > { %v15951_v59 = vpop.f32.mrf.mxu1  ;;  %13381 = vmatmul.mubr.bf16.vlgmr.msra.gmra.mxu1 %v3449_v57 }
 0x4cf   : > { %v15930_v60 = vpop.f32.mrf.mxu0 }
 0x4d0   : > { %v15931_v61 = vadd.f32 %v15930_v60, %v15929_v58  ;;  %v15952_v62 = vpop.f32.mrf.mxu1 }
 0x4d1   : > { %v15932_v63 = vpop.f32.mrf.mxu0  ;;  %v15953_v1 = vadd.f32 %v15952_v62, %v15951_v59 }
 0x4d2   : > { %v12863_v0 = vadd.f32 %v15931_v61, %v12823_v32  ;;  %v15954_v2 = vpop.f32.mrf.mxu1 }
 0x4d3   : > { %v15933_v3 = vpop.f32.mrf.mxu0 }
 0x4d4   : > { %v12903_v4 = vadd.f32 %v15953_v1, %v12863_v0  ;;  %v15955_v35 = vpop.f32.mrf.mxu1 }
 0x4ed   : > { %v15973_v5 = vpop.f32.mrf.mxu0 }
 0x4ee   : > { %v15995_v6 = vpop.f32.mrf.mxu1 }
 0x4ef   : > { %v15974_v7 = vpop.f32.mrf.mxu0 }
 0x4f0   : > { %v15975_v8 = vadd.f32 %v15974_v7, %v15973_v5  ;;  %v15996_v9 = vpop.f32.mrf.mxu1 }
 0x4f1   : > { %v15976_v10 = vpop.f32.mrf.mxu0  ;;  %v15997_v12 = vadd.f32 %v15996_v9, %v15995_v6 }
 0x4f2   : > { %v12943_v11 = vadd.f32 %v15975_v8, %v12903_v4  ;;  %v15998_v13 = vpop.f32.mrf.mxu1 }
 0x4f3   : > { %v15977_v14 = vpop.f32.mrf.mxu0 }
 0x4f4   : > { %v12983_v15 = vadd.f32 %v15997_v12, %v12943_v11  ;;  %v15999_v16 = vpop.f32.mrf.mxu1 }
 0x50d   : > { %v16017_v17 = vpop.f32.mrf.mxu0 }
 0x50e   : > { %v16039_v18 = vpop.f32.mrf.mxu1 }
 0x50f   : > { %v16018_v19 = vpop.f32.mrf.mxu0 }
 0x510   : > { %v16019_v20 = vadd.f32 %v16018_v19, %v16017_v17  ;;  %v16040_v21 = vpop.f32.mrf.mxu1 }
 0x511   : > { %v16020_v22 = vpop.f32.mrf.mxu0  ;;  %v16041_v24 = vadd.f32 %v16040_v21, %v16039_v18 }
 0x512   : > { %v13023_v23 = vadd.f32 %v16019_v20, %v12983_v15  ;;  %v16042_v25 = vpop.f32.mrf.mxu1 }
 0x513   : > { %v16021_v26 = vpop.f32.mrf.mxu0 }
 0x514   : > { %v13063_v27 = vadd.f32 %v16041_v24, %v13023_v23  ;;  %v16043_v28 = vpop.f32.mrf.mxu1 }
 0x52d   : > { %v16061_v29 = vpop.f32.mrf.mxu0 }
 0x52e   : > { %v16083_v30 = vpop.f32.mrf.mxu1 }
 0x52f   : > { %v16062_v31 = vpop.f32.mrf.mxu0 }
 0x530   : > { %v16063_v32 = vadd.f32 %v16062_v31, %v16061_v29  ;;  %v16084_v33 = vpop.f32.mrf.mxu1 }
 0x531   : > { %v16064_v34 = vpop.f32.mrf.mxu0  ;;  %v16085_v37 = vadd.f32 %v16084_v33, %v16083_v30 }
 0x532   : > { %v13103_v36 = vadd.f32 %v16063_v32, %v13063_v27  ;;  %v16086_v38 = vpop.f32.mrf.mxu1 }
 0x533   : > { %v16065_v39 = vpop.f32.mrf.mxu0 }
 0x534   : > { %v13143_v40 = vadd.f32 %v16085_v37, %v13103_v36  ;;  %v16087_v41 = vpop.f32.mrf.mxu1 }
 0x54d   : > { %v16105_v42 = vpop.f32.mrf.mxu0 }
 0x54e   : > { %v16127_v43 = vpop.f32.mrf.mxu1 }
 0x54f   : > { %v16106_v44 = vpop.f32.mrf.mxu0 }
 0x550   : > { %v16128_v45 = vpop.f32.mrf.mxu1  ;;  %v16107_v58 = vadd.f32 %v16106_v44, %v16105_v42 }
 0x551   : > { %v16108_v46 = vpop.f32.mrf.mxu0  ;;  %v16129_v60 = vadd.f32 %v16128_v45, %v16127_v43 }
 0x552   : > { %v16130_v47 = vpop.f32.mrf.mxu1  ;;  %v13183_v59 = vadd.f32 %v16107_v58, %v13143_v40 }
 0x553   : > { %v16109_v48 = vpop.f32.mrf.mxu0 }
 0x554   : > { %v16131_v49 = vpop.f32.mrf.mxu1  ;;  %v13223_v62 = vadd.f32 %v16129_v60, %v13183_v59 }
 0x56d   : > { %v16149_v50 = vpop.f32.mrf.mxu0 }
 0x56e   : > { %v16171_v51 = vpop.f32.mrf.mxu1 }
 0x56f   : > { %v16150_v52 = vpop.f32.mrf.mxu0 }
 0x570   : > { %v16172_v53 = vpop.f32.mrf.mxu1  ;;  %v16151_v61 = vadd.f32 %v16150_v52, %v16149_v50 }
 0x571   : > { %v16152_v54 = vpop.f32.mrf.mxu0  ;;  %v16173_v0 = vadd.f32 %v16172_v53, %v16171_v51 }
 0x572   : > { %v16174_v55 = vpop.f32.mrf.mxu1  ;;  %v13263_v63 = vadd.f32 %v16151_v61, %v13223_v62 }
 0x573   : > { %v16153_v56 = vpop.f32.mrf.mxu0 }
 0x574   : > { %v16175_v57 = vpop.f32.mrf.mxu1  ;;  %v13303_v4 = vadd.f32 %v16173_v0, %v13263_v63 }
 0x58d   : > { %v16193_v1 = vpop.f32.mrf.mxu0 }
 0x58e   : > { %v16215_v2 = vpop.f32.mrf.mxu1 }
 0x58f   : > { %v16194_v3 = vpop.f32.mrf.mxu0 }
 0x590   : > { %v16195_v35 = vadd.f32 %v16194_v3, %v16193_v1  ;;  %v16216_v5 = vpop.f32.mrf.mxu1 }
 0x591   : > { %v16196_v6 = vpop.f32.mrf.mxu0  ;;  %v16217_v8 = vadd.f32 %v16216_v5, %v16215_v2 }
 0x592   : > { %v13343_v7 = vadd.f32 %v16195_v35, %v13303_v4  ;;  %v16218_v9 = vpop.f32.mrf.mxu1 }
 0x593   : > { %v16197_v10 = vpop.f32.mrf.mxu0 }
 0x594   : > { %v13383_v11 = vadd.f32 %v16217_v8, %v13343_v7  ;;  %v16219_v12 = vpop.f32.mrf.mxu1 }
 0x596   : > { %v13388_v13 = vmax.f32 %v13383_v11, 0.0 }
 0x598   : > { %13389 = vst [vmem:[%s221_s26] sm:$0x3] %v13388_v13 }
 0x599 PF: > { %p16_p8 = scmp.ge.s32.totalorder %s17585_s17, 4   ;;  %s19217_s12 = smov %s17527_s13 }
 0x59a   : > { %s19218_s13 = smov %s17531_s14  ;;  %s19219_s14 = smov %s17595_s20 }
 0x59b   : > { %s19220_s15 = smov %s17585_s17  ;;  %18 = sbr.rel (!%p16_p8) target bundleno = 5 (0x5), region = 85 }
 0x5a0   :  { %13409 = vsyncpa [#allocation3], 1 }
 0x5a1   :  { %13411 = vsyncpa [#allocation3 + $0x1], 1 }
 0x5a2   :  { %13412 = vsyncpa [#allocation5], 1 }
 0x5a3   :  { %13414 = vsyncpa [#allocation5 + $0x1], 1 }

</bundles_post_ra>
